<compile_context>
chip_gen: v5e
topology: v5e:2x2
jax: 0.10.0
libtpu: 0.0.40
codegen_flags: <defaults>
</compile_context>

<pallas_src>
import jax
import jax.numpy as jnp
from jax.experimental import pallas as pl
from jax.experimental.pallas import tpu as pltpu

# Large-but-finite sentinel used for dummy / padded points (NOT inf: inf would
# produce NaN with the single-divide rewrite).  At d ~ 2e6 the rational-hat
# value is ~ -r/d^2 ~ 2.5e-14 per point, far below the comparison tolerance.
_SENTINEL = 1.0e6
_SUB = 8  # rows processed per inner step -> (8, K, P) live temporaries


def _round_up(x, m):
    return ((x + m - 1) // m) * m


def _make_kernel(num_types, K, out_w, tb):
    """Build the fused 4x SLayerRationalHat + concat kernel for one batch tile."""
    n_sub = tb // _SUB

    def kernel(rad_ref, cx_ref, cy_ref, *refs):
        # refs = (px_0, py_0, ..., px_{T-1}, py_{T-1}, out_ref)
        pt_refs = refs[: 2 * num_types]
        out_ref = refs[2 * num_types]

        # Hoist loop-invariant loads (centers / radii) out of the row loop.
        cxs = [cx_ref[t] for t in range(num_types)]        # each (K, 1)
        cys = [cy_ref[t] for t in range(num_types)]
        rads = [jnp.abs(rad_ref[t]) for t in range(num_types)]  # SMEM scalars

        @pl.loop(0, n_sub)
        def _(s):
            row = pl.multiple_of(s * _SUB, _SUB)
            chunks = []
            for t in range(num_types):                     # T=4, trace-time unroll
                x = pt_refs[2 * t][pl.ds(row, _SUB), :]    # (_SUB, P_t)
                y = pt_refs[2 * t + 1][pl.ds(row, _SUB), :]
                # L1 distance center<->point: (_SUB, K, P_t)
                d = (jnp.abs(cxs[t] - x[:, None, :])
                     + jnp.abs(cys[t] - y[:, None, :]))
                a = jnp.abs(rads[t] - d)
                # v = 1/(1+d) - 1/(1+a) == (a - d) / ((1+d)*(1+a))
                denom = (1.0 + d) * (1.0 + a)
                inv = pl.reciprocal(denom, approx=True)    # EUP slot
                inv = inv * (2.0 - denom * inv)            # one Newton step (~1e-7 rel)
                v = (a - d) * inv
                chunks.append(jnp.sum(v, axis=-1))         # (_SUB, K) lane reduce
            res = jnp.concatenate(chunks, axis=-1)         # (_SUB, T*K)
            if out_w > num_types * K:                      # keep store lane-dense
                pad = jnp.zeros((_SUB, out_w - num_types * K), res.dtype)
                res = jnp.concatenate([res, pad], axis=-1)
            out_ref[pl.ds(row, _SUB), :] = res             # single unmasked vst

    return kernel


def pershom_readout_forward(diagrams, masks, params, *, batch_tile=128,
                            vmem_limit_bytes=None):
    """JAX glue: fold masks into sentinel coords, pad per type, run the kernel.

    diagrams : list of 4 arrays (B, P_t, 2) float (padded persistence diagrams)
    masks    : list of 4 arrays (B, P_t)    (1/True = real point, 0/False = dummy)
    params   : {'centers': (4, K, 2), 'radius': (4,)}
    returns  : (B, 4*K) float32 == torch.cat([SLayer_t(h_t) for t], dim=1)
    """
    num_types = len(diagrams)
    B = diagrams[0].shape[0]
    K = params["centers"].shape[1]
    out_w = _round_up(num_types * K, 128)      # lane-dense output width

    # Batch tile: multiple of 8, clamped so tiny batches don't over-pad.
    TB = max(_SUB, min(_round_up(batch_tile, _SUB), _round_up(B, _SUB)))
    B_pad = _round_up(B, TB)

    # Per-type padding to that type's own multiple-of-128 point count; the
    # not-dummy mask is folded into the coordinates (sentinel), no mask stream.
    pt_arrays = []
    for t in range(num_types):
        pts = diagrams[t].astype(jnp.float32)              # (B, Pt, 2)
        m = jnp.asarray(masks[t]) > 0                       # (B, Pt) bool
        Pt = pts.shape[1]
        P_t = max(128, _round_up(Pt, 128))
        for c in range(2):
            coord = jnp.where(m, pts[..., c], _SENTINEL)
            coord = jnp.pad(coord, ((0, B_pad - B), (0, P_t - Pt)),
                            constant_values=_SENTINEL)
            pt_arrays.append(coord)                          # (B_pad, P_t)

    cx = params["centers"][..., 0:1].astype(jnp.float32)    # (T, K, 1)
    cy = params["centers"][..., 1:2].astype(jnp.float32)    # (T, K, 1)
    radii = params["radius"].astype(jnp.float32)             # (T,) -> SMEM

    kernel = _make_kernel(num_types, K, out_w, TB)

    in_specs = [
        pl.BlockSpec(memory_space=pltpu.MemorySpace.SMEM),           # radii
        pl.BlockSpec((num_types, K, 1), lambda i: (0, 0, 0)),        # centers x
        pl.BlockSpec((num_types, K, 1), lambda i: (0, 0, 0)),        # centers y
    ]
    for arr in pt_arrays:
        in_specs.append(pl.BlockSpec((TB, arr.shape[1]), lambda i: (i, 0)))

    cp_kwargs = dict(dimension_semantics=("parallel",))   # batch tiles independent
    if vmem_limit_bytes is not None:
        # Raise on v5e/v6e (scoped defaults 16/32 MiB) for big TB*P production
        # tiles; keep <= 64 MiB physical on v7x.
        cp_kwargs["vmem_limit_bytes"] = vmem_limit_bytes

    out = pl.pallas_call(
        kernel,
        out_shape=jax.ShapeDtypeStruct((B_pad, out_w), jnp.float32),
        grid=(B_pad // TB,),
        in_specs=in_specs,
        out_specs=pl.BlockSpec((TB, out_w), lambda i: (i, 0)),
        compiler_params=pltpu.CompilerParams(**cp_kwargs),
    )(radii, cx, cy, *pt_arrays)
    return out[:B, : num_types * K]


def pershom_readout_reference(diagrams, masks, params):
    """Plain-JAX reference with identical semantics (sanity check)."""
    outs = []
    for t in range(len(diagrams)):
        pts = diagrams[t].astype(jnp.float32)              # (B, P_t, 2)
        m = jnp.asarray(masks[t]).astype(jnp.float32)       # (B, P_t)
        c = params["centers"][t]                             # (K, 2)
        r = jnp.abs(params["radius"][t])
        d = jnp.sum(jnp.abs(c[None, :, None, :] - pts[:, None, :, :]), axis=-1)
        v = 1.0 / (1.0 + d) - 1.0 / (1.0 + jnp.abs(r - d))
        v = v * m[:, None, :]
        outs.append(jnp.sum(v, axis=-1))                     # (B, K)
    return jnp.concatenate(outs, axis=1)                     # (B, 4*K)


if __name__ == "__main__":
    # Small deterministic example: batch of 16 graphs, K = 32 structure
    # elements, four diagram types (0_up, 0_down, 0_cc, h1) with different
    # (pre-padding) point counts and per-sample lengths (dummy-point masks).
    B = 16
    K = 32                       # num_struct_elements
    P_LIST = [60, 60, 24, 40]    # max points per diagram type before padding

    key = jax.random.PRNGKey(0)
    keys = jax.random.split(key, 9)

    diagrams, masks = [], []
    for t, Pt in enumerate(P_LIST):
        pts = jax.random.uniform(keys[2 * t], (B, Pt, 2), jnp.float32)
        lens = jax.random.randint(keys[2 * t + 1], (B,), 1, Pt + 1)
        m = (jnp.arange(Pt)[None, :] < lens[:, None]).astype(jnp.float32)
        diagrams.append(pts)
        masks.append(m)

    params = {
        # SLayerRationalHat default centers_init = torch.rand(K, point_dim)
        "centers": jax.random.uniform(keys[8], (4, K, 2), jnp.float32),
        # radius_init = 0.1 for all four SLayers
        "radius": jnp.full((4,), 0.1, jnp.float32),
    }

    out = jax.block_until_ready(pershom_readout_forward(diagrams, masks, params))
    ref = jax.block_until_ready(pershom_readout_reference(diagrams, masks, params))

    assert out.shape == (B, 4 * K), out.shape
    assert jnp.allclose(out, ref, rtol=1e-4, atol=1e-4), "mismatch vs reference"

    print("KERNEL_OK")
</pallas_src>

<mosaic_0001>
module attributes {stable_mosaic.version = 11 : i64} {
  func.func @kernel(%arg0: i32, %arg1: memref<4xf32, #tpu.memory_space<smem>>, %arg2: memref<4x32x1xf32, #tpu.memory_space<vmem>>, %arg3: memref<4x32x1xf32, #tpu.memory_space<vmem>>, %arg4: memref<16x128xf32, #tpu.memory_space<vmem>>, %arg5: memref<16x128xf32, #tpu.memory_space<vmem>>, %arg6: memref<16x128xf32, #tpu.memory_space<vmem>>, %arg7: memref<16x128xf32, #tpu.memory_space<vmem>>, %arg8: memref<16x128xf32, #tpu.memory_space<vmem>>, %arg9: memref<16x128xf32, #tpu.memory_space<vmem>>, %arg10: memref<16x128xf32, #tpu.memory_space<vmem>>, %arg11: memref<16x128xf32, #tpu.memory_space<vmem>>, %arg12: memref<16x128xf32, #tpu.memory_space<vmem>>) attributes {dimension_semantics = [#tpu.dimension_semantics<parallel>], iteration_bounds = array<i64: 1>, scalar_prefetch = 0 : i64, scratch_operands = 0 : i64, tpu.core_type = #tpu.core_type<tc>, window_params = [{transform_indices = @transform_0, window_bounds = array<i64: 4>}, {pipeline_mode = #tpu.pipeline_mode<synchronous>, transform_indices = @transform_1, window_bounds = array<i64: 4, 32, 1>}, {pipeline_mode = #tpu.pipeline_mode<synchronous>, transform_indices = @transform_2, window_bounds = array<i64: 4, 32, 1>}, {transform_indices = @transform_3, window_bounds = array<i64: 16, 128>}, {transform_indices = @transform_4, window_bounds = array<i64: 16, 128>}, {transform_indices = @transform_5, window_bounds = array<i64: 16, 128>}, {transform_indices = @transform_6, window_bounds = array<i64: 16, 128>}, {transform_indices = @transform_7, window_bounds = array<i64: 16, 128>}, {transform_indices = @transform_8, window_bounds = array<i64: 16, 128>}, {transform_indices = @transform_9, window_bounds = array<i64: 16, 128>}, {transform_indices = @transform_10, window_bounds = array<i64: 16, 128>}, {transform_indices = @transform_11, window_bounds = array<i64: 16, 128>}]} {
    %c0 = arith.constant 0 : index
    %c0_0 = arith.constant 0 : index
    %c0_1 = arith.constant 0 : index
    %0 = vector.load %arg2[%c0, %c0_0, %c0_1] : memref<4x32x1xf32, #tpu.memory_space<vmem>>, vector<1x32x1xf32>
    %1 = vector.shape_cast %0 : vector<1x32x1xf32> to vector<32x1xf32>
    %c1 = arith.constant 1 : index
    %c0_2 = arith.constant 0 : index
    %c0_3 = arith.constant 0 : index
    %2 = vector.load %arg2[%c1, %c0_2, %c0_3] : memref<4x32x1xf32, #tpu.memory_space<vmem>>, vector<1x32x1xf32>
    %3 = vector.shape_cast %2 : vector<1x32x1xf32> to vector<32x1xf32>
    %c2 = arith.constant 2 : index
    %c0_4 = arith.constant 0 : index
    %c0_5 = arith.constant 0 : index
    %4 = vector.load %arg2[%c2, %c0_4, %c0_5] : memref<4x32x1xf32, #tpu.memory_space<vmem>>, vector<1x32x1xf32>
    %5 = vector.shape_cast %4 : vector<1x32x1xf32> to vector<32x1xf32>
    %c3 = arith.constant 3 : index
    %c0_6 = arith.constant 0 : index
    %c0_7 = arith.constant 0 : index
    %6 = vector.load %arg2[%c3, %c0_6, %c0_7] : memref<4x32x1xf32, #tpu.memory_space<vmem>>, vector<1x32x1xf32>
    %7 = vector.shape_cast %6 : vector<1x32x1xf32> to vector<32x1xf32>
    %c0_8 = arith.constant 0 : index
    %c0_9 = arith.constant 0 : index
    %c0_10 = arith.constant 0 : index
    %8 = vector.load %arg3[%c0_8, %c0_9, %c0_10] : memref<4x32x1xf32, #tpu.memory_space<vmem>>, vector<1x32x1xf32>
    %9 = vector.shape_cast %8 : vector<1x32x1xf32> to vector<32x1xf32>
    %c1_11 = arith.constant 1 : index
    %c0_12 = arith.constant 0 : index
    %c0_13 = arith.constant 0 : index
    %10 = vector.load %arg3[%c1_11, %c0_12, %c0_13] : memref<4x32x1xf32, #tpu.memory_space<vmem>>, vector<1x32x1xf32>
    %11 = vector.shape_cast %10 : vector<1x32x1xf32> to vector<32x1xf32>
    %c2_14 = arith.constant 2 : index
    %c0_15 = arith.constant 0 : index
    %c0_16 = arith.constant 0 : index
    %12 = vector.load %arg3[%c2_14, %c0_15, %c0_16] : memref<4x32x1xf32, #tpu.memory_space<vmem>>, vector<1x32x1xf32>
    %13 = vector.shape_cast %12 : vector<1x32x1xf32> to vector<32x1xf32>
    %c3_17 = arith.constant 3 : index
    %c0_18 = arith.constant 0 : index
    %c0_19 = arith.constant 0 : index
    %14 = vector.load %arg3[%c3_17, %c0_18, %c0_19] : memref<4x32x1xf32, #tpu.memory_space<vmem>>, vector<1x32x1xf32>
    %15 = vector.shape_cast %14 : vector<1x32x1xf32> to vector<32x1xf32>
    %c0_20 = arith.constant 0 : index
    %16 = memref.load %arg1[%c0_20] : memref<4xf32, #tpu.memory_space<smem>>
    %17 = math.absf %16 : f32
    %c1_21 = arith.constant 1 : index
    %18 = memref.load %arg1[%c1_21] : memref<4xf32, #tpu.memory_space<smem>>
    %19 = math.absf %18 : f32
    %c2_22 = arith.constant 2 : index
    %20 = memref.load %arg1[%c2_22] : memref<4xf32, #tpu.memory_space<smem>>
    %21 = math.absf %20 : f32
    %c3_23 = arith.constant 3 : index
    %22 = memref.load %arg1[%c3_23] : memref<4xf32, #tpu.memory_space<smem>>
    %23 = math.absf %22 : f32
    %c0_i32 = arith.constant 0 : i32
    %c2_i32 = arith.constant 2 : i32
    %24 = arith.addi %c0_i32, %c2_i32 : i32
    %c1_i32 = arith.constant 1 : i32
    scf.for %arg13 = %c0_i32 to %24 step %c1_i32  : i32 {
      %c1_i32_25 = arith.constant 1 : i32
      %25 = arith.muli %arg13, %c1_i32_25 : i32
      %c0_i32_26 = arith.constant 0 : i32
      %26 = arith.addi %c0_i32_26, %25 : i32
      %c8_i32 = arith.constant 8 : i32
      %27 = arith.muli %26, %c8_i32 : i32
      %28 = tpu.assume_multiple %27, 8 : i32
      %29 = arith.index_cast %28 : i32 to index
      %c0_27 = arith.constant 0 : index
      %30 = vector.load %arg4[%29, %c0_27] : memref<16x128xf32, #tpu.memory_space<vmem>>, vector<8x128xf32>
      %31 = arith.index_cast %28 : i32 to index
      %c0_28 = arith.constant 0 : index
      %32 = vector.load %arg5[%31, %c0_28] : memref<16x128xf32, #tpu.memory_space<vmem>>, vector<8x128xf32>
      %33 = vector.shape_cast %30 : vector<8x128xf32> to vector<8x1x128xf32>
      %34 = vector.shape_cast %1 : vector<32x1xf32> to vector<1x32x1xf32>
      %35 = vector.broadcast %34 : vector<1x32x1xf32> to vector<8x32x128xf32>
      %36 = vector.broadcast %33 : vector<8x1x128xf32> to vector<8x32x128xf32>
      %37 = arith.subf %35, %36 : vector<8x32x128xf32>
      %38 = math.absf %37 : vector<8x32x128xf32>
      %39 = vector.shape_cast %32 : vector<8x128xf32> to vector<8x1x128xf32>
      %40 = vector.shape_cast %9 : vector<32x1xf32> to vector<1x32x1xf32>
      %41 = vector.broadcast %40 : vector<1x32x1xf32> to vector<8x32x128xf32>
      %42 = vector.broadcast %39 : vector<8x1x128xf32> to vector<8x32x128xf32>
      %43 = arith.subf %41, %42 : vector<8x32x128xf32>
      %44 = math.absf %43 : vector<8x32x128xf32>
      %45 = arith.addf %38, %44 : vector<8x32x128xf32>
      %46 = vector.broadcast %17 : f32 to vector<8x32x128xf32>
      %47 = arith.subf %46, %45 : vector<8x32x128xf32>
      %48 = math.absf %47 : vector<8x32x128xf32>
      %cst = arith.constant 1.000000e+00 : f32
      %49 = vector.broadcast %cst : f32 to vector<8x32x128xf32>
      %50 = arith.addf %49, %45 : vector<8x32x128xf32>
      %cst_29 = arith.constant 1.000000e+00 : f32
      %51 = vector.broadcast %cst_29 : f32 to vector<8x32x128xf32>
      %52 = arith.addf %51, %48 : vector<8x32x128xf32>
      %53 = arith.mulf %50, %52 : vector<8x32x128xf32>
      %54 = tpu.reciprocal %53 {approx = true} : vector<8x32x128xf32> -> vector<8x32x128xf32>
      %55 = arith.mulf %53, %54 : vector<8x32x128xf32>
      %cst_30 = arith.constant 2.000000e+00 : f32
      %56 = vector.broadcast %cst_30 : f32 to vector<8x32x128xf32>
      %57 = arith.subf %56, %55 : vector<8x32x128xf32>
      %58 = arith.mulf %54, %57 : vector<8x32x128xf32>
      %59 = arith.subf %48, %45 : vector<8x32x128xf32>
      %60 = arith.mulf %59, %58 : vector<8x32x128xf32>
      %cst_31 = arith.constant dense<0.000000e+00> : vector<8x32xf32>
      %61 = vector.multi_reduction <add>, %60, %cst_31 [2] : vector<8x32x128xf32> to vector<8x32xf32>
      %62 = arith.index_cast %28 : i32 to index
      %c0_32 = arith.constant 0 : index
      %63 = vector.load %arg6[%62, %c0_32] : memref<16x128xf32, #tpu.memory_space<vmem>>, vector<8x128xf32>
      %64 = arith.index_cast %28 : i32 to index
      %c0_33 = arith.constant 0 : index
      %65 = vector.load %arg7[%64, %c0_33] : memref<16x128xf32, #tpu.memory_space<vmem>>, vector<8x128xf32>
      %66 = vector.shape_cast %63 : vector<8x128xf32> to vector<8x1x128xf32>
      %67 = vector.shape_cast %3 : vector<32x1xf32> to vector<1x32x1xf32>
      %68 = vector.broadcast %67 : vector<1x32x1xf32> to vector<8x32x128xf32>
      %69 = vector.broadcast %66 : vector<8x1x128xf32> to vector<8x32x128xf32>
      %70 = arith.subf %68, %69 : vector<8x32x128xf32>
      %71 = math.absf %70 : vector<8x32x128xf32>
      %72 = vector.shape_cast %65 : vector<8x128xf32> to vector<8x1x128xf32>
      %73 = vector.shape_cast %11 : vector<32x1xf32> to vector<1x32x1xf32>
      %74 = vector.broadcast %73 : vector<1x32x1xf32> to vector<8x32x128xf32>
      %75 = vector.broadcast %72 : vector<8x1x128xf32> to vector<8x32x128xf32>
      %76 = arith.subf %74, %75 : vector<8x32x128xf32>
      %77 = math.absf %76 : vector<8x32x128xf32>
      %78 = arith.addf %71, %77 : vector<8x32x128xf32>
      %79 = vector.broadcast %19 : f32 to vector<8x32x128xf32>
      %80 = arith.subf %79, %78 : vector<8x32x128xf32>
      %81 = math.absf %80 : vector<8x32x128xf32>
      %cst_34 = arith.constant 1.000000e+00 : f32
      %82 = vector.broadcast %cst_34 : f32 to vector<8x32x128xf32>
      %83 = arith.addf %82, %78 : vector<8x32x128xf32>
      %cst_35 = arith.constant 1.000000e+00 : f32
      %84 = vector.broadcast %cst_35 : f32 to vector<8x32x128xf32>
      %85 = arith.addf %84, %81 : vector<8x32x128xf32>
      %86 = arith.mulf %83, %85 : vector<8x32x128xf32>
      %87 = tpu.reciprocal %86 {approx = true} : vector<8x32x128xf32> -> vector<8x32x128xf32>
      %88 = arith.mulf %86, %87 : vector<8x32x128xf32>
      %cst_36 = arith.constant 2.000000e+00 : f32
      %89 = vector.broadcast %cst_36 : f32 to vector<8x32x128xf32>
      %90 = arith.subf %89, %88 : vector<8x32x128xf32>
      %91 = arith.mulf %87, %90 : vector<8x32x128xf32>
      %92 = arith.subf %81, %78 : vector<8x32x128xf32>
      %93 = arith.mulf %92, %91 : vector<8x32x128xf32>
      %cst_37 = arith.constant dense<0.000000e+00> : vector<8x32xf32>
      %94 = vector.multi_reduction <add>, %93, %cst_37 [2] : vector<8x32x128xf32> to vector<8x32xf32>
      %95 = arith.index_cast %28 : i32 to index
      %c0_38 = arith.constant 0 : index
      %96 = vector.load %arg8[%95, %c0_38] : memref<16x128xf32, #tpu.memory_space<vmem>>, vector<8x128xf32>
      %97 = arith.index_cast %28 : i32 to index
      %c0_39 = arith.constant 0 : index
      %98 = vector.load %arg9[%97, %c0_39] : memref<16x128xf32, #tpu.memory_space<vmem>>, vector<8x128xf32>
      %99 = vector.shape_cast %96 : vector<8x128xf32> to vector<8x1x128xf32>
      %100 = vector.shape_cast %5 : vector<32x1xf32> to vector<1x32x1xf32>
      %101 = vector.broadcast %100 : vector<1x32x1xf32> to vector<8x32x128xf32>
      %102 = vector.broadcast %99 : vector<8x1x128xf32> to vector<8x32x128xf32>
      %103 = arith.subf %101, %102 : vector<8x32x128xf32>
      %104 = math.absf %103 : vector<8x32x128xf32>
      %105 = vector.shape_cast %98 : vector<8x128xf32> to vector<8x1x128xf32>
      %106 = vector.shape_cast %13 : vector<32x1xf32> to vector<1x32x1xf32>
      %107 = vector.broadcast %106 : vector<1x32x1xf32> to vector<8x32x128xf32>
      %108 = vector.broadcast %105 : vector<8x1x128xf32> to vector<8x32x128xf32>
      %109 = arith.subf %107, %108 : vector<8x32x128xf32>
      %110 = math.absf %109 : vector<8x32x128xf32>
      %111 = arith.addf %104, %110 : vector<8x32x128xf32>
      %112 = vector.broadcast %21 : f32 to vector<8x32x128xf32>
      %113 = arith.subf %112, %111 : vector<8x32x128xf32>
      %114 = math.absf %113 : vector<8x32x128xf32>
      %cst_40 = arith.constant 1.000000e+00 : f32
      %115 = vector.broadcast %cst_40 : f32 to vector<8x32x128xf32>
      %116 = arith.addf %115, %111 : vector<8x32x128xf32>
      %cst_41 = arith.constant 1.000000e+00 : f32
      %117 = vector.broadcast %cst_41 : f32 to vector<8x32x128xf32>
      %118 = arith.addf %117, %114 : vector<8x32x128xf32>
      %119 = arith.mulf %116, %118 : vector<8x32x128xf32>
      %120 = tpu.reciprocal %119 {approx = true} : vector<8x32x128xf32> -> vector<8x32x128xf32>
      %121 = arith.mulf %119, %120 : vector<8x32x128xf32>
      %cst_42 = arith.constant 2.000000e+00 : f32
      %122 = vector.broadcast %cst_42 : f32 to vector<8x32x128xf32>
      %123 = arith.subf %122, %121 : vector<8x32x128xf32>
      %124 = arith.mulf %120, %123 : vector<8x32x128xf32>
      %125 = arith.subf %114, %111 : vector<8x32x128xf32>
      %126 = arith.mulf %125, %124 : vector<8x32x128xf32>
      %cst_43 = arith.constant dense<0.000000e+00> : vector<8x32xf32>
      %127 = vector.multi_reduction <add>, %126, %cst_43 [2] : vector<8x32x128xf32> to vector<8x32xf32>
      %128 = arith.index_cast %28 : i32 to index
      %c0_44 = arith.constant 0 : index
      %129 = vector.load %arg10[%128, %c0_44] : memref<16x128xf32, #tpu.memory_space<vmem>>, vector<8x128xf32>
      %130 = arith.index_cast %28 : i32 to index
      %c0_45 = arith.constant 0 : index
      %131 = vector.load %arg11[%130, %c0_45] : memref<16x128xf32, #tpu.memory_space<vmem>>, vector<8x128xf32>
      %132 = vector.shape_cast %129 : vector<8x128xf32> to vector<8x1x128xf32>
      %133 = vector.shape_cast %7 : vector<32x1xf32> to vector<1x32x1xf32>
      %134 = vector.broadcast %133 : vector<1x32x1xf32> to vector<8x32x128xf32>
      %135 = vector.broadcast %132 : vector<8x1x128xf32> to vector<8x32x128xf32>
      %136 = arith.subf %134, %135 : vector<8x32x128xf32>
      %137 = math.absf %136 : vector<8x32x128xf32>
      %138 = vector.shape_cast %131 : vector<8x128xf32> to vector<8x1x128xf32>
      %139 = vector.shape_cast %15 : vector<32x1xf32> to vector<1x32x1xf32>
      %140 = vector.broadcast %139 : vector<1x32x1xf32> to vector<8x32x128xf32>
      %141 = vector.broadcast %138 : vector<8x1x128xf32> to vector<8x32x128xf32>
      %142 = arith.subf %140, %141 : vector<8x32x128xf32>
      %143 = math.absf %142 : vector<8x32x128xf32>
      %144 = arith.addf %137, %143 : vector<8x32x128xf32>
      %145 = vector.broadcast %23 : f32 to vector<8x32x128xf32>
      %146 = arith.subf %145, %144 : vector<8x32x128xf32>
      %147 = math.absf %146 : vector<8x32x128xf32>
      %cst_46 = arith.constant 1.000000e+00 : f32
      %148 = vector.broadcast %cst_46 : f32 to vector<8x32x128xf32>
      %149 = arith.addf %148, %144 : vector<8x32x128xf32>
      %cst_47 = arith.constant 1.000000e+00 : f32
      %150 = vector.broadcast %cst_47 : f32 to vector<8x32x128xf32>
      %151 = arith.addf %150, %147 : vector<8x32x128xf32>
      %152 = arith.mulf %149, %151 : vector<8x32x128xf32>
      %153 = tpu.reciprocal %152 {approx = true} : vector<8x32x128xf32> -> vector<8x32x128xf32>
      %154 = arith.mulf %152, %153 : vector<8x32x128xf32>
      %cst_48 = arith.constant 2.000000e+00 : f32
      %155 = vector.broadcast %cst_48 : f32 to vector<8x32x128xf32>
      %156 = arith.subf %155, %154 : vector<8x32x128xf32>
      %157 = arith.mulf %153, %156 : vector<8x32x128xf32>
      %158 = arith.subf %147, %144 : vector<8x32x128xf32>
      %159 = arith.mulf %158, %157 : vector<8x32x128xf32>
      %cst_49 = arith.constant dense<0.000000e+00> : vector<8x32xf32>
      %160 = vector.multi_reduction <add>, %159, %cst_49 [2] : vector<8x32x128xf32> to vector<8x32xf32>
      %161 = tpu.concatenate %61, %94, %127, %160 in 1 : vector<8x32xf32>, vector<8x32xf32>, vector<8x32xf32>, vector<8x32xf32> -> vector<8x128xf32>
      %162 = arith.index_cast %28 : i32 to index
      %c0_50 = arith.constant 0 : index
      %163 = vector.load %arg12[%162, %c0_50] : memref<16x128xf32, #tpu.memory_space<vmem>>, vector<8x128xf32>
      tpu.vector_store %arg12[%162, %c0_50], %161 {strides = array<i32>} : memref<16x128xf32, #tpu.memory_space<vmem>>, vector<8x128xf32>,
    }
    %c2_i32_24 = arith.constant 2 : i32
    return
  }
  func.func @transform_0(%arg0: i32) -> i32 {
    %c0_i32 = arith.constant 0 : i32
    %c0_i32_0 = arith.constant 0 : i32
    return %c0_i32 : i32
  }
  func.func @transform_1(%arg0: i32) -> (i32, i32, i32) {
    %c0_i32 = arith.constant 0 : i32
    %c0_i32_0 = arith.constant 0 : i32
    %c0_i32_1 = arith.constant 0 : i32
    %c0_i32_2 = arith.constant 0 : i32
    return %c0_i32, %c0_i32_0, %c0_i32_1 : i32, i32, i32
  }
  func.func @transform_2(%arg0: i32) -> (i32, i32, i32) {
    %c0_i32 = arith.constant 0 : i32
    %c0_i32_0 = arith.constant 0 : i32
    %c0_i32_1 = arith.constant 0 : i32
    %c0_i32_2 = arith.constant 0 : i32
    return %c0_i32, %c0_i32_0, %c0_i32_1 : i32, i32, i32
  }
  func.func @transform_3(%arg0: i32) -> (i32, i32) {
    %c0_i32 = arith.constant 0 : i32
    %c0_i32_0 = arith.constant 0 : i32
    return %arg0, %c0_i32 : i32, i32
  }
  func.func @transform_4(%arg0: i32) -> (i32, i32) {
    %c0_i32 = arith.constant 0 : i32
    %c0_i32_0 = arith.constant 0 : i32
    return %arg0, %c0_i32 : i32, i32
  }
  func.func @transform_5(%arg0: i32) -> (i32, i32) {
    %c0_i32 = arith.constant 0 : i32
    %c0_i32_0 = arith.constant 0 : i32
    return %arg0, %c0_i32 : i32, i32
  }
  func.func @transform_6(%arg0: i32) -> (i32, i32) {
    %c0_i32 = arith.constant 0 : i32
    %c0_i32_0 = arith.constant 0 : i32
    return %arg0, %c0_i32 : i32, i32
  }
  func.func @transform_7(%arg0: i32) -> (i32, i32) {
    %c0_i32 = arith.constant 0 : i32
    %c0_i32_0 = arith.constant 0 : i32
    return %arg0, %c0_i32 : i32, i32
  }
  func.func @transform_8(%arg0: i32) -> (i32, i32) {
    %c0_i32 = arith.constant 0 : i32
    %c0_i32_0 = arith.constant 0 : i32
    return %arg0, %c0_i32 : i32, i32
  }
  func.func @transform_9(%arg0: i32) -> (i32, i32) {
    %c0_i32 = arith.constant 0 : i32
    %c0_i32_0 = arith.constant 0 : i32
    return %arg0, %c0_i32 : i32, i32
  }
  func.func @transform_10(%arg0: i32) -> (i32, i32) {
    %c0_i32 = arith.constant 0 : i32
    %c0_i32_0 = arith.constant 0 : i32
    return %arg0, %c0_i32 : i32, i32
  }
  func.func @transform_11(%arg0: i32) -> (i32, i32) {
    %c0_i32 = arith.constant 0 : i32
    %c0_i32_0 = arith.constant 0 : i32
    return %arg0, %c0_i32 : i32, i32
  }
}

</mosaic_0001>

<bundles_post_ra>
// kernel: tpu_custom_call.1
= control target key start
LH: loop header
LB: loop body
LE: loop exit
PB: predicated region body
PF: predicated region fallthrough
CT: control target
= control target key end

     0   :  { %16 = vsyncpa [#allocation4], 0  ;;  %s6280_s0 = inlined_call_operand.vmem [shape: f32[4], index: 0, kind: input, shape index: {}]   ;;  %s6281_s1 = inlined_call_operand.vmem [shape: f32[4,32,1], index: 1, kind: input, shape index: {}]   ;;  %s6282_s2 = inlined_call_operand.vmem [shape: f32[4,32,1], index: 2, kind: input, shape index: {}]   ;;  %s6283_s3 = inlined_call_operand.vmem [shape: f32[16,128], index: 3, kind: input, shape index: {}]   ;;  %s6284_s4 = inlined_call_operand.vmem [shape: f32[16,128], index: 4, kind: input, shape index: {}]   ;;  %s6285_s5 = inlined_call_operand.vmem [shape: f32[16,128], index: 5, kind: input, shape index: {}]   ;;  %s6286_s6 = inlined_call_operand.vmem [shape: f32[16,128], index: 6, kind: input, shape index: {}]   ;;  %s6287_s7 = inlined_call_operand.vmem [shape: f32[16,128], index: 7, kind: input, shape index: {}]   ;;  %s6288_s8 = inlined_call_operand.vmem [shape: f32[16,128], index: 8, kind: input, shape index: {}]   ;;  %s6289_s9 = inlined_call_operand.vmem [shape: f32[16,128], index: 9, kind: input, shape index: {}]   ;;  %s6290_s10 = inlined_call_operand.vmem [shape: f32[16,128], index: 10, kind: input, shape index: {}]   ;;  %s6291_s11 = inlined_call_operand.hbm [shape: f32[16,128], index: 11, kind: output, shape index: {}]  }
   0x1   :  { %17 = vsyncpa [#allocation3], 0  ;;  %s23_s19 = sshll.u32 %s6280_s0, 4  ;;  %s3599_s20 = smov [#allocation2]   ;;  %s24_s19 = int_to_ptr.vmem [resolvable:$true] %s23_s19 }
   0x2   :  { %26 = dma.vmem_to_smem %s24_s19, 16, %s3599_s20, [#allocation4]  }
   0x3   :  { %3591 = dma.done.wait [#allocation4], 16  }
   0x4   :  { %3592 = vsyncadd [#allocation4], 4294967280 }
   0x5   :  { %51 = sfence }
   0x6   :  { %v3670_v0 = vld [vmem:[%s6281_s1] sm:$0xff]  ;;  %v3675_v1 = vld [vmem:[%s6281_s1 + $0x8] sm:$0xff]  ;;  %v3680_v2 = vld [vmem:[%s6281_s1 + $0x10] sm:$0xff]  ;;  %s3682_s0 = sld [smem:[#allocation2]]  ;;  %s3839_s24 = smov 0  }
   0x7   :  { %6292 = vst [vmem:[#allocation8_spill] sm:$0xff] %v3670_v0  ;;  %v3687_v3 = vld [vmem:[%s6281_s1 + $0x18] sm:$0xff]  ;;  %v3692_v4 = vld [vmem:[%s6281_s1 + $0x20] sm:$0xff]  ;;  %v3697_v5 = vld [vmem:[%s6281_s1 + $0x28] sm:$0xff]  ;;  %s3699_s14 = sld [smem:[#allocation2 + $0x1]] }
   0x8   :  { %6293 = vst [vmem:[#allocation9_spill] sm:$0xff] %v3675_v1  ;;  %v3704_v6 = vld [vmem:[%s6281_s1 + $0x30] sm:$0xff]  ;;  %v3709_v7 = vld [vmem:[%s6281_s1 + $0x38] sm:$0xff]  ;;  %v3714_v8 = vld [vmem:[%s6281_s1 + $0x40] sm:$0xff]  ;;  %s3716_s21 = sld [smem:[#allocation2 + $0x2]] }
   0x9   :  { %6294 = vst [vmem:[#allocation10_spill] sm:$0xff] %v3680_v2  ;;  %v3721_v9 = vld [vmem:[%s6281_s1 + $0x48] sm:$0xff]  ;;  %v3726_v10 = vld [vmem:[%s6281_s1 + $0x50] sm:$0xff]  ;;  %v3731_v11 = vld [vmem:[%s6281_s1 + $0x58] sm:$0xff]  ;;  %s3733_s28 = sld [smem:[#allocation2 + $0x3]] }
   0xa   :  { %6295 = vst [vmem:[#allocation11_spill] sm:$0xff] %v3687_v3  ;;  %v3738_v12 = vld [vmem:[%s6281_s1 + $0x60] sm:$0xff]  ;;  %v3743_v13 = vld [vmem:[%s6281_s1 + $0x68] sm:$0xff]  ;;  %v3748_v14 = vld [vmem:[%s6281_s1 + $0x70] sm:$0xff] }
   0xb   :  { %6296 = vst [vmem:[#allocation12_spill] sm:$0xff] %v3692_v4  ;;  %v3753_v15 = vld [vmem:[%s6281_s1 + $0x78] sm:$0xff]  ;;  %v3758_v16 = vld [vmem:[%s6282_s2] sm:$0xff]  ;;  %v3763_v17 = vld [vmem:[%s6282_s2 + $0x8] sm:$0xff] }
   0xc   :  { %6297 = vst [vmem:[#allocation13_spill] sm:$0xff] %v3697_v5  ;;  %v3768_v18 = vld [vmem:[%s6282_s2 + $0x10] sm:$0xff]  ;;  %v3773_v19 = vld [vmem:[%s6282_s2 + $0x18] sm:$0xff]  ;;  %v3778_v20 = vld [vmem:[%s6282_s2 + $0x20] sm:$0xff]  ;;  %s91_s30 = sand.u32 2147483647, %s3682_s0 }
   0xd   :  { %6298 = vst [vmem:[#allocation14_spill] sm:$0xff] %v3704_v6  ;;  %v3784_v21 = vld [vmem:[%s6282_s2 + $0x28] sm:$0xff]  ;;  %v3789_v22 = vld [vmem:[%s6282_s2 + $0x30] sm:$0xff]  ;;  %v3794_v23 = vld [vmem:[%s6282_s2 + $0x38] sm:$0xff]  ;;  %s93_s19 = sand.u32 2147483647, %s3699_s14 }
   0xe   :  { %6299 = vst [vmem:[#allocation15_spill] sm:$0xff] %v3709_v7  ;;  %v3800_v24 = vld [vmem:[%s6282_s2 + $0x40] sm:$0xff]  ;;  %v3805_v25 = vld [vmem:[%s6282_s2 + $0x48] sm:$0xff]  ;;  %v3810_v26 = vld [vmem:[%s6282_s2 + $0x50] sm:$0xff]  ;;  %s95_s27 = sand.u32 2147483647, %s3716_s21 }
   0xf   :  { %6300 = vst [vmem:[#allocation16_spill] sm:$0xff] %v3714_v8  ;;  %v3816_v27 = vld [vmem:[%s6282_s2 + $0x58] sm:$0xff]  ;;  %v3821_v28 = vld [vmem:[%s6282_s2 + $0x60] sm:$0xff]  ;;  %v3826_v29 = vld [vmem:[%s6282_s2 + $0x68] sm:$0xff]  ;;  %s97_s17 = sand.u32 2147483647, %s3733_s28 }
  0x10   :  { %6301 = vst [vmem:[#allocation17_spill] sm:$0xff] %v3721_v9  ;;  %v3832_v30 = vld [vmem:[%s6282_s2 + $0x70] sm:$0xff]  ;;  %v3837_v31 = vld [vmem:[%s6282_s2 + $0x78] sm:$0xff] }
  0x11   :  { %6302 = vst [vmem:[#allocation18_spill] sm:$0xff] %v3726_v10 }
  0x12   :  { %6303 = vst [vmem:[#allocation19_spill] sm:$0xff] %v3731_v11 }
  0x13   :  { %6304 = vst [vmem:[#allocation20_spill] sm:$0xff] %v3738_v12 }
  0x14   :  { %6305 = vst [vmem:[#allocation21_spill] sm:$0xff] %v3743_v13 }
  0x15   :  { %6306 = vst [vmem:[#allocation22_spill] sm:$0xff] %v3748_v14 }
  0x16   :  { %6307 = vst [vmem:[#allocation23_spill] sm:$0xff] %v3753_v15 }
  0x17   :  { %6308 = vst [vmem:[#allocation24_spill] sm:$0xff] %v3758_v16 }
  0x18   :  { %6309 = vst [vmem:[#allocation25_spill] sm:$0xff] %v3763_v17 }
  0x19   :  { %6310 = vst [vmem:[#allocation26_spill] sm:$0xff] %v3768_v18 }
  0x1a   :  { %6311 = vst [vmem:[#allocation27_spill] sm:$0xff] %v3773_v19 }
  0x1b   :  { %6312 = vst [vmem:[#allocation28_spill] sm:$0xff] %v3778_v20 }
  0x1c   :  { %6313 = vst [vmem:[#allocation29_spill] sm:$0xff] %v3784_v21 }
  0x1d   :  { %6314 = vst [vmem:[#allocation30_spill] sm:$0xff] %v3789_v22 }
  0x1e   :  { %6315 = vst [vmem:[#allocation31_spill] sm:$0xff] %v3794_v23 }
  0x1f   :  { %6316 = vst [vmem:[#allocation32_spill] sm:$0xff] %v3800_v24 }
  0x20   :  { %6317 = vst [vmem:[#allocation33_spill] sm:$0xff] %v3805_v25 }
  0x21   :  { %6318 = vst [vmem:[#allocation34_spill] sm:$0xff] %v3810_v26 }
  0x22   :  { %6319 = vst [vmem:[#allocation35_spill] sm:$0xff] %v3816_v27 }
  0x23   :  { %6320 = vst [vmem:[#allocation36_spill] sm:$0xff] %v3821_v28 }
  0x24   :  { %6321 = vst [vmem:[#allocation37_spill] sm:$0xff] %v3826_v29 }
  0x25   :  { %6322 = vst [vmem:[#allocation38_spill] sm:$0xff] %v3832_v30 }
  0x26   :  { %6323 = vst [vmem:[#allocation39_spill] sm:$0xff] %v3837_v31 }
  0x27 LB: > { %v3600_v32 = vmov 0   ;;  %v6324_v2 = vld [vmem:[#allocation10_spill] sm:$0xff]  ;;  %v6325_v0 = vld [vmem:[#allocation8_spill] sm:$0xff]  ;;  %v6327_v3 = vld [vmem:[#allocation11_spill] sm:$0xff]  ;;  %s3853_s2 = sshll.u32 %s3597_s24, 3  ;;  %vm2818_vm0 = vcmask 130112   ;;  %s3597_s24 = sphi %s3839_s24, %s103_s24  }
  0x28   : > { %3293 = vset.pattern.permute.xlu1 %v3600_v32  ;;  %3292 = vset.pattern.permute.xlu0 %v3600_v32  ;;  %v6326_v16 = vld [vmem:[#allocation24_spill] sm:$0xff]  ;;  %v6328_v1 = vld [vmem:[#allocation9_spill] sm:$0xff]  ;;  %v6330_v19 = vld [vmem:[#allocation27_spill] sm:$0xff]  ;;  %s107_s1 = scalar_lea.vmem %s6284_s4, %s3853_s2  ;;  %s105_s13 = scalar_lea.vmem %s6283_s3, %s3853_s2  ;;  %vm2822_vm1 = vcmask 195712   ;;  %vm2826_vm2 = vcmask 261312   ;;  %vm2877_vm3 = vcmask 1041409  }
  0x29   : > { %129 = vperm.xlu1 %3293, %v6324_v2   ;;  %119 = vperm.xlu0 %3292, %v6325_v0   ;;  %v6329_v17 = vld [vmem:[#allocation25_spill] sm:$0xff]  ;;  %v6331_v18 = vld [vmem:[#allocation26_spill] sm:$0xff]  ;;  %vm2879_vm4 = vcmask 1042434   ;;  %vm2881_vm5 = vcmask 1043459   ;;  %vm2883_vm6 = vcmask 1044484   ;;  %vm2885_vm7 = vcmask 1045509   ;;  %s774_s18 = scalar_lea.vmem %s6285_s5, %s3853_s2  ;;  %s776_s23 = scalar_lea.vmem %s6286_s6, %s3853_s2 }
  0x2a   : > { %3294 = vset.pattern.permute.xlu2 %v3600_v32  ;;  %v3859_v33 = vld [vmem:[%s107_s1] sm:$0xff]  ;;  %vm2887_vm8 = vcmask 1046534   ;;  %vm2889_vm9 = vcmask 1047559   ;;  %vm2928_vm10 = vcmask 392512   ;;  %vm2932_vm11 = vcmask 458112   ;;  %s1445_s1 = scalar_lea.vmem %s6288_s8, %s3853_s2  ;;  %s3207_s25 = scalar_lea.vmem [#allocation5], %s3853_s2 }
  0x2b   : > { %227 = vperm.xlu2 %3294, %v6326_v16   ;;  %v218_v35 = vrot.slane %v3859_v33, 1  ;;  %v219_v36 = vrot.slane %v3859_v33, 2  ;;  %v3869_v37 = vld [vmem:[%s105_s13] sm:$0xff]  ;;  %v220_v38 = vrot.slane %v3859_v33, 3  ;;  %v3873_v39 = vperm.slane %v3859_v33, 0  ;;  %s1443_s13 = scalar_lea.vmem %s6287_s7, %s3853_s2  ;;  %s103_s24 = sadd.s32 1, %s3597_s24  }
  0x2c   : > { %v111_v42 = vrot.slane %v3869_v37, 2  ;;  %v110_v43 = vrot.slane %v3869_v37, 1  ;;  %v112_v44 = vrot.slane %v3869_v37, 3  ;;  %v3891_v49 = vperm.slane %v3869_v37, 0  ;;  %p100_p0 = scmp.ge.s32.totalorder %s103_s24, 2  }
  0x2d   : > { %v3875_v40 = vperm.slane %v218_v35, 0  ;;  %v3877_v41 = vperm.slane %v219_v36, 0  ;;  %v3882_v45 = vperm.slane %v220_v38, 0  ;;  %vm2936_vm12 = vcmask 523712   ;;  %s3215_s29 = sshll.u32 (%p100_p0), %s6291_s11, 4  ;;  %s3601_s12 = smov (%p100_p0), [#allocation5]   ;;  %s3216_s29 = int_to_ptr.hbm [resolvable:$true] %s3215_s29 }
  0x2e   : > { %v3893_v50 = vperm.slane %v111_v42, 0  ;;  %v3897_v52 = vperm.slane %v110_v43, 0  ;;  %v3899_v53 = vperm.slane %v112_v44, 0  ;;  %vm3201_vm13 = vcmask 261120   ;;  %s3602_s15 = smov (%p100_p0), 128   ;;  %s3603_s16 = smov (%p100_p0), 8  }
  0x2f   : > { %vm3031_vm14 = vcmask 654912   ;;  %vm3035_vm15 = vcmask 720512  }
  0x31   : > { %134 = vperm.xlu1 %3293, %v6327_v3   ;;  %124 = vperm.xlu0 %3292, %v6328_v1  }
  0x33   : > { %232 = vperm.xlu2 %3294, %v6329_v17  }
  0x39   : > { %242 = vperm.xlu1 %3293, %v6330_v19   ;;  %237 = vperm.xlu0 %3292, %v6331_v18  }
  0x85   : > { %v3865_v34 = vpop.permute.xlu2 %227 }
  0x86   : > { %v261_v46 = vsub.f32 %v3865_v34, %v3873_v39  ;;  %v269_v47 = vsub.f32 %v3865_v34, %v3877_v41  ;;  %v265_v48 = vsub.f32 %v3865_v34, %v3875_v40  ;;  %v273_v54 = vsub.f32 %v3865_v34, %v3882_v45 }
  0x88   : > { %v293_v57 = vand.u32 2147483647, %v261_v46  ;;  %v301_v58 = vand.u32 2147483647, %v269_v47  ;;  %v297_v59 = vand.u32 2147483647, %v265_v48  ;;  %v3928_v47 = vstv %s91_s30 }
  0x89   : > { %v305_v38 = vand.u32 2147483647, %v273_v54  ;;  %v113_v46 = vrot.slane %v3869_v37, 4  ;;  %v221_v54 = vrot.slane %v3859_v33, 4 }
  0x8d   : > { %v3895_v51 = vpop.permute.xlu2 %232 }
  0x8e   : > { %v262_v61 = vsub.f32 %v3895_v51, %v3873_v39  ;;  %v266_v62 = vsub.f32 %v3895_v51, %v3875_v40  ;;  %v270_v35 = vsub.f32 %v3895_v51, %v3877_v41 }
  0x90   : > { %v294_v3 = vand.u32 2147483647, %v262_v61  ;;  %v302_v18 = vand.u32 2147483647, %v270_v35 }
  0x9b   : > { %v3903_v55 = vpop.permute.xlu1 %129  ;;  %v3905_v56 = vpop.permute.xlu0 %119 }
  0x9c   : > { %v153_v60 = vsub.f32 %v3905_v56, %v3891_v49  ;;  %v161_v63 = vsub.f32 %v3905_v56, %v3893_v50  ;;  %v157_v32 = vsub.f32 %v3905_v56, %v3897_v52  ;;  %v165_v36 = vsub.f32 %v3905_v56, %v3899_v53 }
  0x9d   : > { %v155_v43 = vsub.f32 %v3903_v55, %v3891_v49  ;;  %v159_v44 = vsub.f32 %v3903_v55, %v3897_v52 }
  0x9e   : > { %v185_v42 = vand.u32 2147483647, %v153_v60  ;;  %v193_v48 = vand.u32 2147483647, %v161_v63  ;;  %v189_v0 = vand.u32 2147483647, %v157_v32 }
  0x9f   : > { %v197_v1 = vand.u32 2147483647, %v165_v36  ;;  %v298_v60 = vand.u32 2147483647, %v266_v62  ;;  %v187_v30 = vand.u32 2147483647, %v155_v43 }
  0xa0   : > { %v3930_v2 = vadd.f32 %v293_v57, %v185_v42  ;;  %v3933_v16 = vadd.f32 %v301_v58, %v193_v48  ;;  %v3935_v17 = vadd.f32 %v297_v59, %v189_v0  ;;  %v3939_v31 = vand.u32 2147483647, %v159_v44 }
  0xa1   : > { %v3941_v63 = vperm.slane %v113_v46, 0  ;;  %v3952_v59 = vadd.f32 %v305_v38, %v197_v1  ;;  %v3960_v42 = vperm.slane %v221_v54, 0 }
  0xa2   : > { %v358_v19 = vsub.f32 %v3928_v47, %v3930_v2  ;;  %v422_v61 = vadd.f32 1.0, %v3930_v2  ;;  %v366_v58 = vsub.f32 %v3928_v47, %v3933_v16  ;;  %v362_v0 = vsub.f32 %v3928_v47, %v3935_v17 }
  0xa3   : > { %v3943_v32 = vpop.permute.xlu1 %134  ;;  %v3945_v57 = vpop.permute.xlu0 %124  ;;  %v430_v48 = vadd.f32 1.0, %v3933_v16  ;;  %v426_v15 = vadd.f32 1.0, %v3935_v17 }
  0xa4   : > { %v3954_v62 = vand.u32 2147483647, %v358_v19  ;;  %v154_v35 = vsub.f32 %v3945_v57, %v3891_v49  ;;  %v158_v36 = vsub.f32 %v3945_v57, %v3897_v52  ;;  %v156_v43 = vsub.f32 %v3943_v32, %v3891_v49 }
  0xa5   : > { %v3964_v44 = vand.u32 2147483647, %v366_v58  ;;  %v3966_v46 = vand.u32 2147483647, %v362_v0  ;;  %v162_v1 = vsub.f32 %v3945_v57, %v3893_v50  ;;  %v164_v49 = vsub.f32 %v3943_v32, %v3893_v50 }
  0xa6   : > { %v454_v19 = vadd.f32 1.0, %v3954_v62  ;;  %v186_v38 = vand.u32 2147483647, %v154_v35  ;;  %v190_v28 = vand.u32 2147483647, %v158_v36  ;;  %v160_v0 = vsub.f32 %v3943_v32, %v3897_v52 }
  0xa7   : > { %v462_v54 = vadd.f32 1.0, %v3964_v44  ;;  %v458_v12 = vadd.f32 1.0, %v3966_v46  ;;  %v194_v14 = vand.u32 2147483647, %v162_v1  ;;  %v188_v35 = vand.u32 2147483647, %v156_v43 }
  0xa8   : > { %v486_v58 = vmul.f32 %v454_v19, %v422_v61  ;;  %v3979_v29 = vadd.f32 %v294_v3, %v186_v38  ;;  %v3981_v13 = vadd.f32 %v298_v60, %v190_v28 }
  0xa9   : > { %v494_v26 = vmul.f32 %v462_v54, %v430_v48  ;;  %v490_v11 = vmul.f32 %v458_v12, %v426_v15  ;;  %v3987_v27 = vadd.f32 %v302_v18, %v194_v14  ;;  %v3997_v15 = vand.u32 2147483647, %v164_v49 }
  0xaa   : > { %3295 = vrcp.f32 %v486_v58  ;;  %v359_v36 = vsub.f32 %v3928_v47, %v3979_v29  ;;  %v363_v3 = vsub.f32 %v3928_v47, %v3981_v13  ;;  %v423_v43 = vadd.f32 1.0, %v3979_v29 }
  0xab   : > { %v3989_v61 = vpop.permute.xlu1 %242  ;;  %v3991_v19 = vpop.permute.xlu0 %237  ;;  %3297 = vrcp.f32 %v494_v26  ;;  %v367_v38 = vsub.f32 %v3928_v47, %v3987_v27  ;;  %v431_v8 = vadd.f32 1.0, %v3987_v27 }
  0xac   : > { %v3999_v28 = vand.u32 2147483647, %v359_v36  ;;  %v263_v60 = vsub.f32 %v3991_v19, %v3873_v39  ;;  %v264_v14 = vsub.f32 %v3989_v61, %v3873_v39  ;;  %v267_v18 = vsub.f32 %v3991_v19, %v3875_v40 }
  0xad   : > { %v4008_v1 = vand.u32 2147483647, %v363_v3  ;;  %3299 = vrcp.f32 %v490_v11  ;;  %v427_v36 = vadd.f32 1.0, %v3981_v13  ;;  %v4015_v25 = vand.u32 2147483647, %v367_v38 }
  0xae   : > { %v455_v48 = vadd.f32 1.0, %v3999_v28  ;;  %v295_v54 = vand.u32 2147483647, %v263_v60  ;;  %v296_v49 = vand.u32 2147483647, %v264_v14  ;;  %v647_v52 = vsub.f32 %v3999_v28, %v3979_v29 }
  0xaf   : > { %v459_v12 = vadd.f32 1.0, %v4008_v1  ;;  %v299_v39 = vand.u32 2147483647, %v267_v18  ;;  %v463_v18 = vadd.f32 1.0, %v4015_v25  ;;  %v272_v28 = vsub.f32 %v3989_v61, %v3877_v41 }
  0xb0   : > { %v3296_v3 = vpop.eup %3295  ;;  %v487_v9 = vmul.f32 %v455_v48, %v423_v43  ;;  %v4019_v10 = vadd.f32 %v295_v54, %v187_v30  ;;  %v4021_v24 = vadd.f32 %v296_v49, %v188_v35 }
  0xb1   : > { %v3298_v60 = vpop.eup %3297  ;;  %v550_v14 = vmul.f32 %v3296_v3, %v486_v58  ;;  %v491_v22 = vmul.f32 %v459_v12, %v427_v36  ;;  %v4025_v23 = vadd.f32 %v299_v39, %v3939_v31  ;;  %v495_v39 = vmul.f32 %v463_v18, %v431_v8 }
  0xb2   : > { %3301 = vrcp.f32 %v487_v9  ;;  %v360_v30 = vsub.f32 %v3928_v47, %v4019_v10  ;;  %v361_v35 = vsub.f32 %v3928_v47, %v4021_v24  ;;  %v558_v29 = vmul.f32 %v3298_v60, %v494_v26 }
  0xb3   : > { %v3300_v43 = vpop.eup %3299  ;;  %v582_v38 = vsub.f32 2.0, %v550_v14  ;;  %3303 = vrcp.f32 %v491_v22  ;;  %v364_v31 = vsub.f32 %v3928_v47, %v4025_v23  ;;  %v424_v14 = vadd.f32 1.0, %v4019_v10 }
  0xb4   : > { %v4038_v12 = vand.u32 2147483647, %v360_v30  ;;  %v4040_v48 = vand.u32 2147483647, %v361_v35  ;;  %v554_v36 = vmul.f32 %v3300_v43, %v490_v11  ;;  %v425_v6 = vadd.f32 1.0, %v4021_v24 }
  0xb5   : > { %v614_v54 = vmul.f32 %v3296_v3, %v582_v38  ;;  %v4044_v49 = vand.u32 2147483647, %v364_v31  ;;  %v6332_v35 = vsub.f32 %v3954_v62, %v3930_v2  ;;  %v428_v20 = vadd.f32 1.0, %v4025_v23 }
  0xb6   : > { %v456_v58 = vadd.f32 1.0, %v4038_v12  ;;  %v457_v30 = vadd.f32 1.0, %v4040_v48  ;;  %v590_v38 = vsub.f32 2.0, %v558_v29  ;;  %v586_v18 = vsub.f32 2.0, %v554_v36 }
  0xb7   : > { %v678_v26 = vmul.f32 %v6332_v35, %v614_v54  ;;  %v460_v3 = vadd.f32 1.0, %v4044_v49  ;;  %3305 = vrcp.f32 %v495_v39  ;;  %v648_v7 = vsub.f32 %v4038_v12, %v4019_v10 }
  0xb8   : > { %v3302_v31 = vpop.eup %3301  ;;  %v488_v11 = vmul.f32 %v456_v58, %v424_v14  ;;  %v489_v8 = vmul.f32 %v457_v30, %v425_v6  ;;  %v649_v2 = vsub.f32 %v4040_v48, %v4021_v24  ;;  %v622_v35 = vmul.f32 %v3298_v60, %v590_v38 }
  0xb9   : > { %v3304_v21 = vpop.eup %3303  ;;  %710 = vadd.xlane.f32.xlu2 %v678_v26  ;;  %v551_v5 = vmul.f32 %v3302_v31, %v487_v9  ;;  %v492_v62 = vmul.f32 %v460_v3, %v428_v20  ;;  %v304_v4 = vand.u32 2147483647, %v272_v28  ;;  %v652_v6 = vsub.f32 %v4044_v49, %v4025_v23 }
  0xba   : > { %3307 = vrcp.f32 %v488_v11  ;;  %v555_v54 = vmul.f32 %v3304_v21, %v491_v22  ;;  %v655_v58 = vsub.f32 %v4015_v25, %v3987_v27  ;;  %v618_v36 = vmul.f32 %v3300_v43, %v586_v18 }
  0xbb   : > { %v583_v29 = vsub.f32 2.0, %v551_v5  ;;  %3309 = vrcp.f32 %v489_v8  ;;  %v4064_v10 = vadd.f32 %v304_v4, %v3997_v15  ;;  %v192_v20 = vand.u32 2147483647, %v160_v0 }
  0xbc   : > { %v587_v9 = vsub.f32 2.0, %v555_v54  ;;  %3311 = vrcp.f32 %v492_v62  ;;  %v268_v22 = vsub.f32 %v3989_v61, %v3875_v40  ;;  %v370_v5 = vsub.f32 %v3928_v47, %v3952_v59 }
  0xbd   : > { %v615_v12 = vmul.f32 %v3302_v31, %v583_v29  ;;  %v3306_v60 = vpop.eup %3305  ;;  %v6333_v14 = vsub.f32 %v3964_v44, %v3933_v16  ;;  %v369_v27 = vsub.f32 %v3928_v47, %v4064_v10  ;;  %v167_v4 = vsub.f32 %v3903_v55, %v3899_v53 }
  0xbe   : > { %v619_v28 = vmul.f32 %v3304_v21, %v587_v9  ;;  %v559_v15 = vmul.f32 %v3306_v60, %v495_v39  ;;  %v300_v43 = vand.u32 2147483647, %v268_v22  ;;  %v4079_v40 = vand.u32 2147483647, %v370_v5 }
  0xbf   : > { %v4073_v25 = vmul.f32 %v6333_v14, %v622_v35  ;;  %v679_v0 = vmul.f32 %v647_v52, %v615_v12  ;;  %v6334_v21 = vsub.f32 %v3966_v46, %v3935_v17  ;;  %v4086_v16 = vand.u32 2147483647, %v369_v27 }
  0xc0   : > { %v3308_v30 = vpop.eup %3307  ;;  %v433_v44 = vadd.f32 1.0, %v4064_v10  ;;  %v434_v3 = vadd.f32 1.0, %v3952_v59  ;;  %v591_v52 = vsub.f32 2.0, %v559_v15  ;;  %v4090_v39 = vadd.f32 %v300_v43, %v192_v20 }
  0xc1   : > { %v4084_v26 = vmul.f32 %v6334_v21, %v618_v36  ;;  %v3310_v38 = vpop.eup %3309  ;;  %712 = vadd.xlane.f32.xlu0 %v679_v0  ;;  %v552_v31 = vmul.f32 %v3308_v30, %v488_v11  ;;  %v466_v18 = vadd.f32 1.0, %v4079_v40  ;;  %v6335_v17 = vsub.f32 %v4008_v1, %v3981_v13 }
  0xc2   : > { %v3312_v54 = vpop.eup %3311  ;;  %v553_v35 = vmul.f32 %v3310_v38, %v489_v8  ;;  %v465_v29 = vadd.f32 1.0, %v4086_v16  ;;  %v275_v9 = vsub.f32 %v3991_v19, %v3882_v45  ;;  %v365_v11 = vsub.f32 %v3928_v47, %v4090_v39 }
  0xc3   : > { %v683_v46 = vmul.f32 %v6335_v17, %v619_v28  ;;  %v584_v36 = vsub.f32 2.0, %v552_v31  ;;  %v556_v12 = vmul.f32 %v3312_v54, %v492_v62  ;;  %v199_v20 = vand.u32 2147483647, %v167_v4 }
  0xc4   : > { %v585_v22 = vsub.f32 2.0, %v553_v35  ;;  %v497_v5 = vmul.f32 %v465_v29, %v433_v44  ;;  %v657_v8 = vsub.f32 %v4086_v16, %v4064_v10  ;;  %v498_v14 = vmul.f32 %v466_v18, %v434_v3 }
  0xc5   : > { %v616_v27 = vmul.f32 %v3308_v30, %v584_v36  ;;  %v588_v13 = vsub.f32 2.0, %v556_v12  ;;  %v623_v1 = vmul.f32 %v3306_v60, %v591_v52  ;;  %v4103_v28 = vand.u32 2147483647, %v365_v11 }
  0xc6   : > { %v617_v0 = vmul.f32 %v3310_v38, %v585_v22  ;;  %3313 = vrcp.f32 %v497_v5  ;;  %v307_v15 = vand.u32 2147483647, %v275_v9  ;;  %v163_v62 = vsub.f32 %v3903_v55, %v3893_v50 }
  0xc7   : > { %v680_v43 = vmul.f32 %v648_v7, %v616_v27  ;;  %v429_v4 = vadd.f32 1.0, %v4090_v39  ;;  %v461_v21 = vadd.f32 1.0, %v4103_v28  ;;  %v658_v44 = vsub.f32 %v4079_v40, %v3952_v59 }
  0xc8   : > { %v681_v60 = vmul.f32 %v649_v2, %v617_v0  ;;  %v620_v30 = vmul.f32 %v3312_v54, %v588_v13  ;;  %3315 = vrcp.f32 %v498_v14  ;;  %v4114_v3 = vadd.f32 %v307_v15, %v199_v20 }
  0xc9   : > { %714 = vadd.xlane.f32.xlu1 %v680_v43  ;;  %720 = vadd.xlane.f32.xlu0 %v683_v46  ;;  %v4116_v38 = vmul.f32 %v655_v58, %v623_v1  ;;  %v493_v7 = vmul.f32 %v461_v21, %v429_v4  ;;  %v195_v50 = vand.u32 2147483647, %v163_v62  ;;  %v271_v31 = vsub.f32 %v3991_v19, %v3877_v41 }
  0xca   : > { %716 = vadd.xlane.f32.xlu2 %v681_v60  ;;  %v653_v52 = vsub.f32 %v4103_v28, %v4090_v39  ;;  %v372_v24 = vsub.f32 %v3928_v47, %v4114_v3  ;;  %v168_v48 = vsub.f32 %v3943_v32, %v3899_v53  ;;  %v276_v2 = vsub.f32 %v3989_v61, %v3882_v45 }
  0xcb   : > { %3317 = vrcp.f32 %v493_v7  ;;  %v303_v58 = vand.u32 2147483647, %v271_v31  ;;  %v170_v18 = vsub.f32 %v3945_v57, %v3941_v63  ;;  %v278_v41 = vsub.f32 %v3895_v51, %v3960_v42 }
  0xcc   : > { %v3314_v54 = vpop.eup %3313  ;;  %v684_v35 = vmul.f32 %v652_v6, %v620_v30  ;;  %v4135_v17 = vand.u32 2147483647, %v372_v24  ;;  %v200_v46 = vand.u32 2147483647, %v168_v48  ;;  %v308_v29 = vand.u32 2147483647, %v276_v2 }
  0xcd   : > { %v561_v9 = vmul.f32 %v3314_v54, %v497_v5  ;;  %v4137_v36 = vadd.f32 %v303_v58, %v195_v50  ;;  %v202_v12 = vand.u32 2147483647, %v170_v18  ;;  %v310_v11 = vand.u32 2147483647, %v278_v41 }
  0xce   : > { %v3316_v20 = vpop.eup %3315  ;;  %v436_v22 = vadd.f32 1.0, %v4114_v3  ;;  %v468_v27 = vadd.f32 1.0, %v4135_v17  ;;  %v4141_v13 = vadd.f32 %v308_v29, %v200_v46  ;;  %v114_v1 = vrot.slane %v3869_v37, 5 }
  0xcf   : > { %v593_v23 = vsub.f32 2.0, %v561_v9  ;;  %v562_v49 = vmul.f32 %v3316_v20, %v498_v14  ;;  %v368_v6 = vsub.f32 %v3928_v47, %v4137_v36  ;;  %v166_v5 = vsub.f32 %v3945_v57, %v3899_v53 }
  0xd0   : > { %v500_v0 = vmul.f32 %v468_v27, %v436_v22  ;;  %v660_v15 = vsub.f32 %v4135_v17, %v4114_v3  ;;  %v373_v62 = vsub.f32 %v3928_v47, %v4141_v13  ;;  %v4152_v43 = vadd.f32 %v310_v11, %v202_v12 }
  0xd1   : > { %v3318_v4 = vpop.eup %3317  ;;  %722 = vadd.xlane.f32.xlu1 %v684_v35  ;;  %726 = vadd.xlane.f32.xlu0 %v4073_v25  ;;  %v625_v14 = vmul.f32 %v3314_v54, %v593_v23  ;;  %v594_v21 = vsub.f32 2.0, %v562_v49  ;;  %v4155_v60 = vand.u32 2147483647, %v368_v6  ;;  %v274_v53 = vsub.f32 %v3895_v51, %v3882_v45 }
  0xd2   : > { %718 = vadd.xlane.f32.xlu2 %v4084_v26  ;;  %v557_v30 = vmul.f32 %v3318_v4, %v493_v7  ;;  %3319 = vrcp.f32 %v500_v0  ;;  %v4160_v50 = vand.u32 2147483647, %v373_v62  ;;  %v375_v31 = vsub.f32 %v3928_v47, %v4152_v43 }
  0xd3   : > { %v432_v24 = vadd.f32 1.0, %v4137_v36  ;;  %v464_v25 = vadd.f32 1.0, %v4155_v60  ;;  %v437_v48 = vadd.f32 1.0, %v4141_v13  ;;  %v198_v2 = vand.u32 2147483647, %v166_v5 }
  0xd4   : > { %v689_v45 = vmul.f32 %v657_v8, %v625_v14  ;;  %v589_v58 = vsub.f32 2.0, %v557_v30  ;;  %v469_v26 = vadd.f32 1.0, %v4160_v50  ;;  %v4171_v7 = vand.u32 2147483647, %v375_v31 }
  0xd5   : > { %v626_v18 = vmul.f32 %v3316_v20, %v594_v21  ;;  %v496_v41 = vmul.f32 %v464_v25, %v432_v24  ;;  %v656_v54 = vsub.f32 %v4155_v60, %v4137_v36  ;;  %v306_v35 = vand.u32 2147483647, %v274_v53 }
  0xd6   : > { %v621_v46 = vmul.f32 %v3318_v4, %v589_v58  ;;  %v501_v29 = vmul.f32 %v469_v26, %v437_v48  ;;  %v439_v9 = vadd.f32 1.0, %v4152_v43  ;;  %v471_v12 = vadd.f32 1.0, %v4171_v7 }
  0xd7   : > { %3321 = vrcp.f32 %v496_v41  ;;  %v4177_v10 = vadd.f32 %v306_v35, %v198_v2  ;;  %v171_v16 = vsub.f32 %v3903_v55, %v3941_v63  ;;  %v279_v8 = vsub.f32 %v3991_v19, %v3960_v42 }
  0xd8   : > { %v3320_v11 = vpop.eup %3319  ;;  %v685_v20 = vmul.f32 %v653_v52, %v621_v46  ;;  %3323 = vrcp.f32 %v501_v29  ;;  %v503_v22 = vmul.f32 %v471_v12, %v439_v9  ;;  %v4186_v27 = vperm.slane %v114_v1, 0 }
  0xd9   : > { %728 = vadd.xlane.f32.xlu1 %v4116_v38  ;;  %732 = vadd.xlane.f32.xlu0 %v689_v45  ;;  %v564_v23 = vmul.f32 %v3320_v11, %v500_v0  ;;  %v661_v49 = vsub.f32 %v4160_v50, %v4141_v13  ;;  %v371_v6 = vsub.f32 %v3928_v47, %v4177_v10  ;;  %v203_v5 = vand.u32 2147483647, %v171_v16 }
  0xda   : > { %724 = vadd.xlane.f32.xlu2 %v685_v20  ;;  %3325 = vrcp.f32 %v503_v22  ;;  %v311_v62 = vand.u32 2147483647, %v279_v8  ;;  %v173_v39 = vsub.f32 %v3905_v56, %v4186_v27  ;;  %v222_v28 = vrot.slane %v3859_v33, 5 }
  0xdb   : > { %v596_v52 = vsub.f32 2.0, %v564_v23  ;;  %v4196_v1 = vand.u32 2147483647, %v371_v6  ;;  %v169_v38 = vsub.f32 %v3905_v56, %v3941_v63  ;;  %v277_v0 = vsub.f32 %v3865_v34, %v3960_v42 }
  0xdc   : > { %v690_v4 = vmul.f32 %v658_v44, %v626_v18  ;;  %v435_v14 = vadd.f32 1.0, %v4177_v10  ;;  %v4206_v21 = vadd.f32 %v311_v62, %v203_v5  ;;  %v4208_v53 = vperm.slane %v222_v28, 0 }
  0xdd   : > { %v3322_v30 = vpop.eup %3321  ;;  %v628_v31 = vmul.f32 %v3320_v11, %v596_v52  ;;  %v467_v24 = vadd.f32 1.0, %v4196_v1  ;;  %v205_v25 = vand.u32 2147483647, %v173_v39  ;;  %v201_v48 = vand.u32 2147483647, %v169_v38 }
  0xde   : > { %v3324_v2 = vpop.eup %3323  ;;  %v560_v45 = vmul.f32 %v3322_v30, %v496_v41  ;;  %v376_v58 = vsub.f32 %v3928_v47, %v4206_v21  ;;  %v281_v59 = vsub.f32 %v3865_v34, %v4208_v53  ;;  %v174_v40 = vsub.f32 %v3945_v57, %v4186_v27 }
  0xdf   : > { %v692_v44 = vmul.f32 %v660_v15, %v628_v31  ;;  %v565_v26 = vmul.f32 %v3324_v2, %v501_v29  ;;  %v499_v18 = vmul.f32 %v467_v24, %v435_v14  ;;  %v309_v35 = vand.u32 2147483647, %v277_v0 }
  0xe0   : > { %v3326_v46 = vpop.eup %3325  ;;  %v592_v9 = vsub.f32 2.0, %v560_v45  ;;  %v4220_v12 = vand.u32 2147483647, %v376_v58  ;;  %v440_v41 = vadd.f32 1.0, %v4206_v21  ;;  %v313_v16 = vand.u32 2147483647, %v281_v59 }
  0xe1   : > { %734 = vadd.xlane.f32.xlu1 %v690_v4  ;;  %738 = vadd.xlane.f32.xlu0 %v692_v44  ;;  %v597_v8 = vsub.f32 2.0, %v565_v26  ;;  %v567_v11 = vmul.f32 %v3326_v46, %v503_v22  ;;  %3327 = vrcp.f32 %v499_v18  ;;  %v4223_v20 = vadd.f32 %v309_v35, %v201_v48 }
  0xe2   : > { %v624_v23 = vmul.f32 %v3322_v30, %v592_v9  ;;  %v472_v3 = vadd.f32 1.0, %v4220_v12  ;;  %v4226_v17 = vadd.f32 %v313_v16, %v205_v25  ;;  %v282_v15 = vsub.f32 %v3895_v51, %v4208_v53 }
  0xe3   : > { %v629_v29 = vmul.f32 %v3324_v2, %v597_v8  ;;  %v599_v6 = vsub.f32 2.0, %v567_v11  ;;  %v663_v5 = vsub.f32 %v4171_v7, %v4152_v43  ;;  %v374_v62 = vsub.f32 %v3928_v47, %v4223_v20 }
  0xe4   : > { %v688_v22 = vmul.f32 %v656_v54, %v624_v23  ;;  %v659_v39 = vsub.f32 %v4196_v1, %v4177_v10  ;;  %v504_v28 = vmul.f32 %v472_v3, %v440_v41  ;;  %v378_v52 = vsub.f32 %v3928_v47, %v4226_v17 }
  0xe5   : > { %v631_v38 = vmul.f32 %v3326_v46, %v599_v6  ;;  %v4241_v0 = vand.u32 2147483647, %v374_v62  ;;  %v438_v4 = vadd.f32 1.0, %v4223_v20  ;;  %v206_v43 = vand.u32 2147483647, %v174_v40 }
  0xe6   : > { %730 = vadd.xlane.f32.xlu2 %v688_v22  ;;  %3329 = vrcp.f32 %v504_v28  ;;  %v4244_v7 = vand.u32 2147483647, %v378_v52  ;;  %v314_v14 = vand.u32 2147483647, %v282_v15  ;;  %v176_v36 = vsub.f32 %v3943_v32, %v4186_v27 }
  0xe7   : > { %v3328_v60 = vpop.eup %3327  ;;  %v693_v54 = vmul.f32 %v661_v49, %v629_v29  ;;  %v695_v10 = vmul.f32 %v663_v5, %v631_v38  ;;  %v470_v1 = vadd.f32 1.0, %v4241_v0  ;;  %v284_v30 = vsub.f32 %v3989_v61, %v4208_v53 }
  0xe8   : > { %v563_v31 = vmul.f32 %v3328_v60, %v499_v18  ;;  %v442_v24 = vadd.f32 1.0, %v4226_v17  ;;  %v474_v25 = vadd.f32 1.0, %v4244_v7  ;;  %v4256_v48 = vadd.f32 %v314_v14, %v206_v43 }
  0xe9   : > { %740 = vadd.xlane.f32.xlu1 %v693_v54  ;;  %744 = vadd.xlane.f32.xlu0 %v695_v10  ;;  %v502_v2 = vmul.f32 %v470_v1, %v438_v4  ;;  %v208_v45 = vand.u32 2147483647, %v176_v36  ;;  %v316_v58 = vand.u32 2147483647, %v284_v30  ;;  %v172_v13 = vsub.f32 %v3943_v32, %v3941_v63 }
  0xea   : > { %v595_v50 = vsub.f32 2.0, %v563_v31  ;;  %v664_v49 = vsub.f32 %v4220_v12, %v4206_v21  ;;  %v506_v59 = vmul.f32 %v474_v25, %v442_v24  ;;  %v379_v40 = vsub.f32 %v3928_v47, %v4256_v48 }
  0xeb   : > { %3331 = vrcp.f32 %v502_v2  ;;  %v4264_v44 = vadd.f32 %v316_v58, %v208_v45  ;;  %v204_v26 = vand.u32 2147483647, %v172_v13  ;;  %v280_v18 = vsub.f32 %v3989_v61, %v3960_v42 }
  0xec   : > { %v3330_v35 = vpop.eup %3329  ;;  %v627_v46 = vmul.f32 %v3328_v60, %v595_v50  ;;  %3333 = vrcp.f32 %v506_v59  ;;  %v4268_v9 = vand.u32 2147483647, %v379_v40  ;;  %v115_v63 = vrot.slane %v3869_v37, 6 }
  0xed   : > { %v568_v41 = vmul.f32 %v3330_v35, %v504_v28  ;;  %v662_v21 = vsub.f32 %v4241_v0, %v4223_v20  ;;  %v381_v12 = vsub.f32 %v3928_v47, %v4264_v44  ;;  %v312_v16 = vand.u32 2147483647, %v280_v18 }
  0xee   : > { %v691_v8 = vmul.f32 %v659_v39, %v627_v46  ;;  %v443_v11 = vadd.f32 1.0, %v4256_v48  ;;  %v475_v42 = vadd.f32 1.0, %v4268_v9  ;;  %v4277_v23 = vperm.slane %v115_v63, 0 }
  0xef   : > { %v600_v3 = vsub.f32 2.0, %v568_v41  ;;  %v4279_v15 = vand.u32 2147483647, %v381_v12  ;;  %v445_v29 = vadd.f32 1.0, %v4264_v44  ;;  %v4282_v6 = vadd.f32 %v312_v16, %v204_v26 }
  0xf0   : > { %736 = vadd.xlane.f32.xlu2 %v691_v8  ;;  %v507_v20 = vmul.f32 %v475_v42, %v443_v11  ;;  %v177_v5 = vsub.f32 %v3905_v56, %v4277_v23  ;;  %v223_v62 = vrot.slane %v3859_v33, 6  ;;  %v179_v22 = vsub.f32 %v3903_v55, %v4277_v23 }
  0xf1   : > { %v3332_v39 = vpop.eup %3331  ;;  %v632_v28 = vmul.f32 %v3330_v35, %v600_v3  ;;  %v477_v52 = vadd.f32 1.0, %v4279_v15  ;;  %v377_v38 = vsub.f32 %v3928_v47, %v4282_v6  ;;  %v175_v0 = vsub.f32 %v3903_v55, %v4186_v27 }
  0xf2   : > { %v3334_v4 = vpop.eup %3333  ;;  %v666_v43 = vsub.f32 %v4244_v7, %v4226_v17  ;;  %v566_v14 = vmul.f32 %v3332_v39, %v502_v2  ;;  %3335 = vrcp.f32 %v507_v20  ;;  %v441_v36 = vadd.f32 1.0, %v4282_v6 }
  0xf3   : > { %v696_v60 = vmul.f32 %v664_v49, %v632_v28  ;;  %v570_v54 = vmul.f32 %v3334_v4, %v506_v59  ;;  %v509_v10 = vmul.f32 %v477_v52, %v445_v29  ;;  %v4297_v1 = vand.u32 2147483647, %v377_v38 }
  0xf4   : > { %v598_v30 = vsub.f32 2.0, %v566_v14  ;;  %v209_v31 = vand.u32 2147483647, %v177_v5  ;;  %v4299_v24 = vperm.slane %v223_v62, 0  ;;  %v211_v25 = vand.u32 2147483647, %v179_v22 }
  0xf5   : > { %746 = vadd.xlane.f32.xlu1 %v696_v60  ;;  %v602_v27 = vsub.f32 2.0, %v570_v54  ;;  %3337 = vrcp.f32 %v509_v10  ;;  %v473_v45 = vadd.f32 1.0, %v4297_v1  ;;  %v207_v17 = vand.u32 2147483647, %v175_v0 }
  0xf6   : > { %v630_v7 = vmul.f32 %v3332_v39, %v598_v30  ;;  %v285_v2 = vsub.f32 %v3865_v34, %v4299_v24  ;;  %v287_v58 = vsub.f32 %v3991_v19, %v4299_v24  ;;  %v283_v13 = vsub.f32 %v3991_v19, %v4208_v53 }
  0xf7   : > { %v634_v50 = vmul.f32 %v3334_v4, %v602_v27  ;;  %v505_v49 = vmul.f32 %v473_v45, %v441_v36  ;;  %v180_v59 = vsub.f32 %v3943_v32, %v4277_v23  ;;  %v288_v40 = vsub.f32 %v3989_v61, %v4299_v24 }
  0xf8   : > { %v3336_v26 = vpop.eup %3335  ;;  %v694_v18 = vmul.f32 %v662_v21, %v630_v7  ;;  %v317_v35 = vand.u32 2147483647, %v285_v2  ;;  %v319_v46 = vand.u32 2147483647, %v287_v58  ;;  %v315_v63 = vand.u32 2147483647, %v283_v13 }
  0xf9   : > { %v698_v41 = vmul.f32 %v666_v43, %v634_v50  ;;  %v571_v12 = vmul.f32 %v3336_v26, %v507_v20  ;;  %3339 = vrcp.f32 %v505_v49  ;;  %v212_v16 = vand.u32 2147483647, %v180_v59 }
  0xfa   : > { %742 = vadd.xlane.f32.xlu2 %v694_v18  ;;  %v4312_v8 = vadd.f32 %v317_v35, %v209_v31  ;;  %v4314_v53 = vadd.f32 %v319_v46, %v211_v25  ;;  %v4316_v11 = vadd.f32 %v315_v63, %v207_v17  ;;  %v320_v42 = vand.u32 2147483647, %v288_v40 }
  0xfb   : > { %v3338_v3 = vpop.eup %3337  ;;  %750 = vadd.xlane.f32.xlu0 %v698_v41  ;;  %v603_v29 = vsub.f32 2.0, %v571_v12  ;;  %v667_v21 = vsub.f32 %v4268_v9, %v4256_v48  ;;  %v669_v5 = vsub.f32 %v4279_v15, %v4264_v44  ;;  %v116_v39 = vrot.slane %v3869_v37, 7 }
  0xfc   : > { %v573_v20 = vmul.f32 %v3338_v3, %v509_v10  ;;  %v382_v62 = vsub.f32 %v3928_v47, %v4312_v8  ;;  %v384_v22 = vsub.f32 %v3928_v47, %v4314_v53  ;;  %v380_v52 = vsub.f32 %v3928_v47, %v4316_v11 }
  0xfd   : > { %v635_v28 = vmul.f32 %v3336_v26, %v603_v29  ;;  %v224_v38 = vrot.slane %v3859_v33, 7  ;;  %v178_v48 = vsub.f32 %v3945_v57, %v4277_v23  ;;  %v4336_v0 = vadd.f32 %v320_v42, %v212_v16 }
  0xfe   : > { %v605_v9 = vsub.f32 2.0, %v573_v20  ;;  %v4332_v44 = vand.u32 2147483647, %v382_v62  ;;  %v4334_v15 = vand.u32 2147483647, %v384_v22  ;;  %v446_v37 = vadd.f32 1.0, %v4312_v8 }
  0xff   : > { %v3340_v4 = vpop.eup %3339  ;;  %v699_v43 = vmul.f32 %v667_v21, %v635_v28  ;;  %v448_v14 = vadd.f32 1.0, %v4314_v53  ;;  %v4340_v36 = vand.u32 2147483647, %v380_v52  ;;  %v444_v23 = vadd.f32 1.0, %v4316_v11 }
 0x100   : > { %v637_v60 = vmul.f32 %v3338_v3, %v605_v9  ;;  %v569_v33 = vmul.f32 %v3340_v4, %v505_v49  ;;  %v478_v54 = vadd.f32 1.0, %v4332_v44  ;;  %v480_v10 = vadd.f32 1.0, %v4334_v15 }
 0x101   : > { %752 = vadd.xlane.f32.xlu1 %v699_v43  ;;  %v476_v30 = vadd.f32 1.0, %v4340_v36  ;;  %v4346_v31 = vperm.slane %v116_v39, 0  ;;  %v4348_v25 = vperm.slane %v224_v38, 0  ;;  %v385_v7 = vsub.f32 %v3928_v47, %v4336_v0 }
 0x102   : > { %v701_v27 = vmul.f32 %v669_v5, %v637_v60  ;;  %v601_v45 = vsub.f32 2.0, %v569_v33  ;;  %v510_v17 = vmul.f32 %v478_v54, %v446_v37  ;;  %v665_v2 = vsub.f32 %v4297_v1, %v4282_v6 }
 0x103   : > { %v512_v58 = vmul.f32 %v480_v10, %v448_v14  ;;  %v508_v13 = vmul.f32 %v476_v30, %v444_v23  ;;  %v182_v50 = vsub.f32 %v3945_v57, %v4346_v31  ;;  %v4356_v59 = vand.u32 2147483647, %v385_v7 }
 0x104   : > { %756 = vadd.xlane.f32.xlu0 %v701_v27  ;;  %v633_v49 = vmul.f32 %v3340_v4, %v601_v45  ;;  %3341 = vrcp.f32 %v510_v17  ;;  %v290_v40 = vsub.f32 %v3895_v51, %v4348_v25  ;;  %v210_v18 = vand.u32 2147483647, %v178_v48 }
 0x105   : > { %3343 = vrcp.f32 %v512_v58  ;;  %v214_v26 = vand.u32 2147483647, %v182_v50  ;;  %v286_v35 = vsub.f32 %v3895_v51, %v4299_v24  ;;  %v449_v1 = vadd.f32 1.0, %v4336_v0 }
 0x106   : > { %v697_v6 = vmul.f32 %v665_v2, %v633_v49  ;;  %3345 = vrcp.f32 %v508_v13  ;;  %v481_v57 = vadd.f32 1.0, %v4356_v59  ;;  %v322_v46 = vand.u32 2147483647, %v290_v40 }
 0x107   : > { %v318_v63 = vand.u32 2147483647, %v286_v35  ;;  %v183_v41 = vsub.f32 %v3903_v55, %v4346_v31  ;;  %v291_v12 = vsub.f32 %v3991_v19, %v4348_v25  ;;  %v181_v42 = vsub.f32 %v3905_v56, %v4346_v31 }
 0x108   : > { %748 = vadd.xlane.f32.xlu2 %v697_v6  ;;  %v513_v16 = vmul.f32 %v481_v57, %v449_v1  ;;  %v289_v51 = vsub.f32 %v3865_v34, %v4348_v25  ;;  %v4372_v24 = vadd.f32 %v322_v46, %v214_v26  ;;  %v670_v55 = vsub.f32 %v4332_v44, %v4312_v8 }
 0x109   : > { %v4374_v3 = vadd.f32 %v318_v63, %v210_v18  ;;  %v215_v29 = vand.u32 2147483647, %v183_v41  ;;  %v323_v21 = vand.u32 2147483647, %v291_v12  ;;  %v213_v19 = vand.u32 2147483647, %v181_v42 }
 0x10a   : > { %v3342_v5 = vpop.eup %3341  ;;  %3347 = vrcp.f32 %v513_v16  ;;  %v321_v20 = vand.u32 2147483647, %v289_v51  ;;  %v672_v56 = vsub.f32 %v4334_v15, %v4314_v53  ;;  %v387_v34 = vsub.f32 %v3928_v47, %v4372_v24 }
 0x10b   : > { %v3344_v62 = vpop.eup %3343  ;;  %v574_v22 = vmul.f32 %v3342_v5, %v510_v17  ;;  %v383_v39 = vsub.f32 %v3928_v47, %v4374_v3  ;;  %v668_v38 = vsub.f32 %v4340_v36, %v4316_v11  ;;  %v4386_v8 = vadd.f32 %v323_v21, %v215_v29 }
 0x10c   : > { %v3346_v28 = vpop.eup %3345  ;;  %v576_v52 = vmul.f32 %v3344_v62, %v512_v58  ;;  %v4388_v48 = vadd.f32 %v321_v20, %v213_v19  ;;  %v4390_v4 = vand.u32 2147483647, %v387_v34  ;;  %v451_v43 = vadd.f32 1.0, %v4372_v24 }
 0x10d   : > { %v606_v9 = vsub.f32 2.0, %v574_v22  ;;  %v572_v44 = vmul.f32 %v3346_v28, %v508_v13  ;;  %v4392_v53 = vand.u32 2147483647, %v383_v39  ;;  %v388_v37 = vsub.f32 %v3928_v47, %v4386_v8 }
 0x10e   : > { %v608_v15 = vsub.f32 2.0, %v576_v52  ;;  %v184_v14 = vsub.f32 %v3943_v32, %v4346_v31  ;;  %v483_v60 = vadd.f32 1.0, %v4390_v4  ;;  %v386_v33 = vsub.f32 %v3928_v47, %v4388_v48 }
 0x10f   : > { %v638_v11 = vmul.f32 %v3342_v5, %v606_v9  ;;  %v604_v36 = vsub.f32 2.0, %v572_v44  ;;  %v447_v10 = vadd.f32 1.0, %v4374_v3  ;;  %v479_v30 = vadd.f32 1.0, %v4392_v53 }
 0x110   : > { %v3348_v54 = vpop.eup %3347  ;;  %v640_v23 = vmul.f32 %v3344_v62, %v608_v15  ;;  %v420_v27 = vand.u32 2147483647, %v388_v37  ;;  %v515_v2 = vmul.f32 %v483_v60, %v451_v43  ;;  %v452_v31 = vadd.f32 1.0, %v4386_v8 }
 0x111   : > { %v702_v45 = vmul.f32 %v670_v55, %v638_v11  ;;  %v636_v17 = vmul.f32 %v3346_v28, %v604_v36  ;;  %v577_v7 = vmul.f32 %v3348_v54, %v513_v16  ;;  %v511_v32 = vmul.f32 %v479_v30, %v447_v10 }
 0x112   : > { %v704_v58 = vmul.f32 %v672_v56, %v640_v23  ;;  %v484_v13 = vadd.f32 1.0, %v420_v27  ;;  %3349 = vrcp.f32 %v515_v2  ;;  %v418_v40 = vand.u32 2147483647, %v386_v33 }
 0x113   : > { %758 = vadd.xlane.f32.xlu1 %v702_v45  ;;  %v700_v50 = vmul.f32 %v668_v38, %v636_v17  ;;  %v609_v49 = vsub.f32 2.0, %v577_v7  ;;  %3351 = vrcp.f32 %v511_v32  ;;  %v216_v18 = vand.u32 2147483647, %v184_v14  ;;  %v6337_v45 = vld [vmem:[#allocation15_spill] sm:$0xff]  ;;  %v6338_v17 = vld [vmem:[#allocation13_spill] sm:$0xff] }
 0x114   : > { %762 = vadd.xlane.f32.xlu0 %v704_v58  ;;  %v516_v26 = vmul.f32 %v484_v13, %v452_v31  ;;  %v292_v35 = vsub.f32 %v3989_v61, %v4348_v25  ;;  %v450_v1 = vadd.f32 1.0, %v4388_v48  ;;  %v482_v57 = vadd.f32 1.0, %v418_v40 }
 0x115   : > { %754 = vadd.xlane.f32.xlu2 %v700_v50  ;;  %v641_v6 = vmul.f32 %v3348_v54, %v609_v49  ;;  %v673_v63 = vsub.f32 %v4356_v59, %v4336_v0  ;;  %v675_v0 = vsub.f32 %v4390_v4, %v4372_v24  ;;  %v671_v39 = vsub.f32 %v4392_v53, %v4374_v3  ;;  %v6339_v50 = vld [vmem:[#allocation29_spill] sm:$0xff]  ;;  %v6340_v49 = vld [vmem:[#allocation28_spill] sm:$0xff] }
 0x116   : > { %3353 = vrcp.f32 %v516_v26  ;;  %v324_v46 = vand.u32 2147483647, %v292_v35  ;;  %v514_v41 = vmul.f32 %v482_v57, %v450_v1  ;;  %v676_v15 = vsub.f32 %v420_v27, %v4386_v8  ;;  %v6336_v8 = vld [vmem:[#allocation12_spill] sm:$0xff]  ;;  %v6341_v1 = vld [vmem:[#allocation14_spill] sm:$0xff] }
 0x117   : > { %v705_v42 = vmul.f32 %v673_v63, %v641_v6  ;;  %v674_v37 = vsub.f32 %v418_v40, %v4388_v48  ;;  %v2813_v30 = vlaneseq }
 0x118   : > { %v356_v12 = vadd.f32 %v324_v46, %v216_v18  ;;  %v3350_v16 = vpop.eup %3349  ;;  %3355 = vrcp.f32 %v514_v41 }
 0x119   : > { %v3352_v51 = vpop.eup %3351  ;;  %v579_v29 = vmul.f32 %v3350_v16, %v515_v2  ;;  %v4420_v7 = vand.u32 127, %v2813_v30 }
 0x11a   : > { %v389_v21 = vsub.f32 %v3928_v47, %v356_v12  ;;  %v575_v61 = vmul.f32 %v3352_v51, %v511_v32  ;;  %v453_v59 = vadd.f32 1.0, %v356_v12 }
 0x11b   : > { %764 = vadd.xlane.f32.xlu1 %v705_v42  ;;  %v611_v5 = vsub.f32 2.0, %v579_v29  ;;  %v4423_v2 = vadd.s32 4294967280, %v4420_v7  ;;  %v4426_v58 = vadd.s32 4294967288, %v4420_v7  ;;  %v4437_v57 = vadd.s32 4294967272, %v4420_v7 }
 0x11c   : > { %v3354_v25 = vpop.eup %3353  ;;  %v421_v55 = vand.u32 2147483647, %v389_v21  ;;  %v607_v19 = vsub.f32 2.0, %v575_v61  ;;  %v6343_v21 = vld [vmem:[#allocation30_spill] sm:$0xff] }
 0x11d   : > { %v580_v20 = vmul.f32 %v3354_v25, %v516_v26  ;;  %v643_v62 = vmul.f32 %v3350_v16, %v611_v5  ;;  %v6342_v16 = vld [vmem:[#allocation31_spill] sm:$0xff] }
 0x11e   : > { %v485_v22 = vadd.f32 1.0, %v421_v55  ;;  %v3356_v56 = vpop.eup %3355  ;;  %v639_v34 = vmul.f32 %v3352_v51, %v607_v19  ;;  %v677_v60 = vsub.f32 %v421_v55, %v356_v12 }
 0x11f   : > { %v612_v28 = vsub.f32 2.0, %v580_v20  ;;  %v707_v47 = vmul.f32 %v675_v0, %v643_v62  ;;  %v578_v52 = vmul.f32 %v3356_v56, %v514_v41 }
 0x120   : > { %v517_v38 = vmul.f32 %v485_v22, %v453_v59  ;;  %v703_v9 = vmul.f32 %v671_v39, %v639_v34 }
 0x121   : > { %v644_v44 = vmul.f32 %v3354_v25, %v612_v28  ;;  %768 = vadd.xlane.f32.xlu0 %v707_v47  ;;  %v610_v43 = vsub.f32 2.0, %v578_v52 }
 0x122   : > { %3357 = vrcp.f32 %v517_v38  ;;  %760 = vadd.xlane.f32.xlu2 %v703_v9 }
 0x123   : > { %v708_v24 = vmul.f32 %v676_v15, %v644_v44  ;;  %v642_v4 = vmul.f32 %v3356_v56, %v610_v43 }
 0x125   : > { %770 = vadd.xlane.f32.xlu1 %v708_v24  ;;  %v706_v11 = vmul.f32 %v674_v37, %v642_v4 }
 0x128   : > { %v3358_v14 = vpop.eup %3357 }
 0x129   : > { %v581_v3 = vmul.f32 %v3358_v14, %v517_v38 }
 0x12a   : > { %766 = vadd.xlane.f32.xlu2 %v706_v11 }
 0x12b   : > { %v613_v53 = vsub.f32 2.0, %v581_v3 }
 0x12c   : > { %v711_v54 = vpop.xlane.xlu2 %710 }
 0x12d   : > { %v645_v36 = vmul.f32 %v3358_v14, %v613_v53  ;;  %v2815_v55 = vperm.slane %v711_v54, %v4420_v7 }
 0x12f   : > { %v709_v33 = vmul.f32 %v677_v60, %v645_v36 }
 0x132   : > { %772 = vadd.xlane.f32.xlu2 %v709_v33 }
 0x134   : > { %v713_v23 = vpop.xlane.xlu0 %712 }
 0x135   : > { %788 = vperm.xlu0 %3292, %v6336_v8   ;;  %v2817_v61 = vperm.slane %v713_v23, %v4426_v58 }
 0x137   : > { %v2819_v20 = vsel %vm2818_vm0, %v2817_v61, %v2815_v55 }
 0x13c   : > { %v715_v10 = vpop.xlane.xlu1 %714  ;;  %v721_v48 = vpop.xlane.xlu0 %720 }
 0x13d   : > { %v717_v27 = vpop.xlane.xlu2 %716  ;;  %803 = vperm.xlu0 %3292, %v6337_v45   ;;  %v2829_v40 = vperm.slane %v721_v48, %v4426_v58  ;;  %v2821_v5 = vperm.slane %v715_v10, %v4423_v2 }
 0x13e   : > { %793 = vperm.xlu1 %3293, %v6338_v17   ;;  %v2825_v62 = vperm.slane %v717_v27, %v4437_v57 }
 0x13f   : > { %v2823_v0 = vsel %vm2822_vm1, %v2821_v5, %v2819_v20 }
 0x140   : > { %v2827_v34 = vsel %vm2826_vm2, %v2825_v62, %v2823_v0 }
 0x144   : > { %v723_v32 = vpop.xlane.xlu1 %722  ;;  %v727_v6 = vpop.xlane.xlu0 %726 }
 0x145   : > { %v2831_v31 = vperm.slane %v723_v32, %v4423_v2  ;;  %v719_v13 = vpop.xlane.xlu2 %718  ;;  %901 = vperm.xlu0 %3292, %v6339_v50   ;;  %v2835_v63 = vperm.slane %v727_v6, %v4420_v7 }
 0x146   : > { %896 = vperm.xlu1 %3293, %v6340_v49   ;;  %v2828_v26 = vperm.slane %v719_v13, %v4420_v7 }
 0x148   : > { %v2830_v18 = vsel %vm2818_vm0, %v2829_v40, %v2828_v26 }
 0x149   : > { %v2832_v35 = vsel %vm2822_vm1, %v2831_v31, %v2830_v18 }
 0x14a   : > { %798 = vperm.xlu2 %3294, %v6341_v1  }
 0x14c   : > { %v729_v46 = vpop.xlane.xlu1 %728  ;;  %v733_v25 = vpop.xlane.xlu0 %732 }
 0x14d   : > { %v2836_v41 = vperm.slane %v729_v46, %v4426_v58  ;;  %v725_v12 = vpop.xlane.xlu2 %724  ;;  %v2840_v56 = vperm.slane %v733_v25, %v4437_v57 }
 0x14e   : > { %911 = vperm.xlu1 %3293, %v6342_v16   ;;  %v2833_v42 = vperm.slane %v725_v12, %v4437_v57 }
 0x14f   : > { %v2837_v51 = vsel %vm2818_vm0, %v2836_v41, %v2835_v63 }
 0x150   : > { %v2834_v29 = vsel %vm2826_vm2, %v2833_v42, %v2832_v35 }
 0x151   : > { %v2878_v28 = vsel %vm2877_vm3, %v2834_v29, %v2827_v34 }
 0x152   : > { %906 = vperm.xlu2 %3294, %v6343_v21  }
 0x154   : > { %v735_v19 = vpop.xlane.xlu1 %734  ;;  %v739_v52 = vpop.xlane.xlu0 %738 }
 0x155   : > { %v2842_v15 = vperm.slane %v735_v19, %v4420_v7  ;;  %v2845_v24 = vperm.slane %v739_v52, %v4423_v2 }
 0x159   : > { %v731_v59 = vpop.xlane.xlu2 %730 }
 0x15a   : > { %v2838_v22 = vperm.slane %v731_v59, %v4423_v2 }
 0x15c   : > { %v2839_v39 = vsel %vm2822_vm1, %v2838_v22, %v2837_v51  ;;  %v741_v9 = vpop.xlane.xlu1 %740  ;;  %v745_v11 = vpop.xlane.xlu0 %744 }
 0x15d   : > { %v2841_v47 = vsel %vm2826_vm2, %v2840_v56, %v2839_v39  ;;  %v2847_v4 = vperm.slane %v741_v9, %v4437_v57  ;;  %v2850_v54 = vperm.slane %v745_v11, %v4426_v58  ;;  %v4519_v9 = vld [vmem:[%s776_s23] sm:$0xff]  ;;  %s2114_s23 = scalar_lea.vmem %s6290_s10, %s3853_s2 }
 0x15e   : > { %v2880_v38 = vsel %vm2879_vm4, %v2841_v47, %v2878_v28 }
 0x163   : > { %v737_v44 = vpop.xlane.xlu2 %736 }
 0x164   : > { %v2843_v43 = vperm.slane %v737_v44, %v4426_v58 }
 0x166   : > { %v2844_v37 = vsel %vm2818_vm0, %v2843_v43, %v2842_v15  ;;  %v914_v15 = vperm.slane %v4519_v9, 0 }
 0x167   : > { %v2846_v14 = vsel %vm2822_vm1, %v2845_v24, %v2844_v37 }
 0x168   : > { %v2848_v3 = vsel %vm2826_vm2, %v2847_v4, %v2846_v14  ;;  %v747_v36 = vpop.xlane.xlu1 %746 }
 0x169   : > { %v2882_v53 = vsel %vm2881_vm5, %v2848_v3, %v2880_v38  ;;  %v2852_v60 = vperm.slane %v747_v36, %v4423_v2  ;;  %v4517_v38 = vld [vmem:[%s774_s18] sm:$0xff]  ;;  %v887_v3 = vrot.slane %v4519_v9, 1  ;;  %s2112_s18 = scalar_lea.vmem %s6289_s9, %s3853_s2 }
 0x16a   : > { %v806_v44 = vperm.slane %v4517_v38, 0  ;;  %v779_v11 = vrot.slane %v4517_v38, 1 }
 0x16d   : > { %v743_v33 = vpop.xlane.xlu2 %742 }
 0x16e   : > { %v2849_v8 = vperm.slane %v743_v33, %v4420_v7  ;;  %v751_v30 = vpop.xlane.xlu0 %750 }
 0x16f   : > { %v2856_v45 = vperm.slane %v751_v30, %v4420_v7 }
 0x170   : > { %v2851_v23 = vsel %vm2818_vm0, %v2850_v54, %v2849_v8 }
 0x171   : > { %v2853_v10 = vsel %vm2822_vm1, %v2852_v60, %v2851_v23  ;;  %v4537_v23 = vperm.slane %v779_v11, 0  ;;  %v780_v11 = vrot.slane %v4517_v38, 2 }
 0x174   : > { %v753_v27 = vpop.xlane.xlu1 %752 }
 0x175   : > { %v2857_v17 = vperm.slane %v753_v27, %v4426_v58 }
 0x177   : > { %v2858_v48 = vsel %vm2818_vm0, %v2857_v17, %v2856_v45  ;;  %v757_v49 = vpop.xlane.xlu0 %756  ;;  %v4543_v45 = vperm.slane %v887_v3, 0 }
 0x178   : > { %v2861_v35 = vperm.slane %v757_v49, %v4437_v57 }
 0x17b   : > { %v749_v32 = vpop.xlane.xlu2 %748 }
 0x17c   : > { %v2854_v31 = vperm.slane %v749_v32, %v4437_v57 }
 0x17e   : > { %v2855_v13 = vsel %vm2826_vm2, %v2854_v31, %v2853_v10  ;;  %v4541_v10 = vstv %s93_s19 }
 0x17f   : > { %v2884_v50 = vsel %vm2883_vm6, %v2855_v13, %v2882_v53 }
 0x186   : > { %v759_v40 = vpop.xlane.xlu1 %758 }
 0x187   : > { %v763_v41 = vpop.xlane.xlu0 %762  ;;  %v2863_v16 = vperm.slane %v759_v40, %v4420_v7 }
 0x188   : > { %v755_v26 = vpop.xlane.xlu2 %754  ;;  %v2866_v51 = vperm.slane %v763_v41, %v4423_v2 }
 0x189   : > { %v2859_v18 = vperm.slane %v755_v26, %v4423_v2 }
 0x18b   : > { %v2860_v6 = vsel %vm2822_vm1, %v2859_v18, %v2858_v48 }
 0x18c   : > { %v2862_v1 = vsel %vm2826_vm2, %v2861_v35, %v2860_v6 }
 0x18d   : > { %v2886_v46 = vsel %vm2885_vm7, %v2862_v1, %v2884_v50 }
 0x18e   : > { %v765_v63 = vpop.xlane.xlu1 %764 }
 0x18f   : > { %v2868_v29 = vperm.slane %v765_v63, %v4437_v57 }
 0x194   : > { %v769_v55 = vpop.xlane.xlu0 %768 }
 0x195   : > { %v761_v12 = vpop.xlane.xlu2 %760  ;;  %v2871_v0 = vperm.slane %v769_v55, %v4426_v58 }
 0x196   : > { %v2864_v42 = vperm.slane %v761_v12, %v4426_v58 }
 0x198   : > { %v2865_v21 = vsel %vm2818_vm0, %v2864_v42, %v2863_v16  ;;  %v771_v5 = vpop.xlane.xlu1 %770 }
 0x199   : > { %v2867_v61 = vsel %vm2822_vm1, %v2866_v51, %v2865_v21  ;;  %v2873_v20 = vperm.slane %v771_v5, %v4423_v2 }
 0x19a   : > { %v2869_v25 = vsel %vm2826_vm2, %v2868_v29, %v2867_v61 }
 0x19b   : > { %v2888_v19 = vsel %vm2887_vm8, %v2869_v25, %v2886_v46 }
 0x19d   : > { %v767_v62 = vpop.xlane.xlu2 %766 }
 0x19e   : > { %v2870_v59 = vperm.slane %v767_v62, %v4420_v7 }
 0x1a0   : > { %v2872_v22 = vsel %vm2818_vm0, %v2871_v0, %v2870_v59  ;;  %vm3039_vm0 = vcmask 786112  }
 0x1a1   : > { %v2874_v56 = vsel %vm2822_vm1, %v2873_v20, %v2872_v22  ;;  %vm3203_vm1 = vcmask 523264  }
 0x1a5   : > { %v773_v34 = vpop.xlane.xlu2 %772 }
 0x1a6   : > { %v2875_v39 = vperm.slane %v773_v34, %v4437_v57 }
 0x1a7   : > { %v4497_v28 = vpop.permute.xlu0 %788 }
 0x1a8   : > { %v2876_v47 = vsel %vm2826_vm2, %v2875_v39, %v2874_v56  ;;  %v822_v37 = vsub.f32 %v4497_v28, %v806_v44  ;;  %v826_v50 = vsub.f32 %v4497_v28, %v4537_v23  ;;  %vm3134_vm2 = vcmask 917312  }
 0x1a9   : > { %v4501_v52 = vsel %vm2889_vm9, %v2876_v47, %v2888_v19 }
 0x1aa   : > { %v854_v27 = vand.u32 2147483647, %v822_v37  ;;  %v858_v16 = vand.u32 2147483647, %v826_v50 }
 0x1ad   : > { %v4503_v2 = vpop.permute.xlu2 %798 }
 0x1ae   : > { %v824_v43 = vsub.f32 %v4503_v2, %v806_v44 }
 0x1af   : > { %v4513_v58 = vpop.permute.xlu0 %803 }
 0x1b0   : > { %v4515_v57 = vpop.permute.xlu1 %793  ;;  %v856_v60 = vand.u32 2147483647, %v824_v43  ;;  %v825_v51 = vsub.f32 %v4513_v58, %v806_v44 }
 0x1b1   : > { %v823_v4 = vsub.f32 %v4515_v57, %v806_v44  ;;  %v827_v31 = vsub.f32 %v4515_v57, %v4537_v23 }
 0x1b2   : > { %v857_v47 = vand.u32 2147483647, %v825_v51 }
 0x1b3   : > { %v855_v30 = vand.u32 2147483647, %v823_v4  ;;  %v859_v35 = vand.u32 2147483647, %v827_v31 }
 0x1b5   : > { %v4524_v24 = vpop.permute.xlu2 %906 }
 0x1b6   : > { %v932_v14 = vsub.f32 %v4524_v24, %v914_v15 }
 0x1b7   : > { %v4531_v53 = vpop.permute.xlu0 %901 }
 0x1b8   : > { %v4533_v36 = vpop.permute.xlu1 %896  ;;  %v964_v33 = vand.u32 2147483647, %v932_v14  ;;  %v931_v54 = vsub.f32 %v4531_v53, %v914_v15  ;;  %v935_v13 = vsub.f32 %v4531_v53, %v4543_v45 }
 0x1b9   : > { %v930_v8 = vsub.f32 %v4533_v36, %v914_v15  ;;  %v934_v49 = vsub.f32 %v4533_v36, %v4543_v45 }
 0x1ba   : > { %v4545_v17 = vadd.f32 %v964_v33, %v856_v60  ;;  %v963_v48 = vand.u32 2147483647, %v931_v54  ;;  %v967_v6 = vand.u32 2147483647, %v935_v13  ;;  %v888_v33 = vrot.slane %v4519_v9, 2 }
 0x1bb   : > { %v962_v32 = vand.u32 2147483647, %v930_v8  ;;  %v966_v42 = vand.u32 2147483647, %v934_v49  ;;  %v829_v13 = vsub.f32 %v4513_v58, %v4537_v23 }
 0x1bc   : > { %v1029_v40 = vsub.f32 %v4541_v10, %v4545_v17  ;;  %v4557_v26 = vadd.f32 %v963_v48, %v855_v30  ;;  %v4569_v12 = vadd.f32 %v967_v6, %v859_v35  ;;  %v1093_v29 = vadd.f32 1.0, %v4545_v17 }
 0x1bd   : > { %v4559_v18 = vadd.f32 %v962_v32, %v854_v27  ;;  %v4581_v19 = vadd.f32 %v966_v42, %v858_v16  ;;  %v4609_v48 = vperm.slane %v780_v11, 0  ;;  %v4611_v32 = vperm.slane %v888_v33, 0 }
 0x1be   : > { %v4561_v1 = vand.u32 2147483647, %v1029_v40  ;;  %v1028_v46 = vsub.f32 %v4541_v10, %v4557_v26  ;;  %v1092_v5 = vadd.f32 1.0, %v4557_v26  ;;  %v1032_v55 = vsub.f32 %v4541_v10, %v4569_v12 }
 0x1bf   : > { %v1027_v63 = vsub.f32 %v4541_v10, %v4559_v18  ;;  %v1091_v59 = vadd.f32 1.0, %v4559_v18  ;;  %v1031_v39 = vsub.f32 %v4541_v10, %v4581_v19  ;;  %v1096_v4 = vadd.f32 1.0, %v4569_v12 }
 0x1c0   : > { %v4567_v41 = vpop.permute.xlu1 %911  ;;  %v1125_v21 = vadd.f32 1.0, %v4561_v1  ;;  %v4574_v61 = vand.u32 2147483647, %v1028_v46  ;;  %v1317_v56 = vsub.f32 %v4561_v1, %v4545_v17  ;;  %v4589_v34 = vand.u32 2147483647, %v1032_v55 }
 0x1c1   : > { %v4576_v25 = vand.u32 2147483647, %v1027_v63  ;;  %v933_v20 = vsub.f32 %v4567_v41, %v914_v15  ;;  %v4595_v14 = vand.u32 2147483647, %v1031_v39  ;;  %v1095_v8 = vadd.f32 1.0, %v4581_v19 }
 0x1c2   : > { %v1157_v62 = vmul.f32 %v1125_v21, %v1093_v29  ;;  %v1124_v0 = vadd.f32 1.0, %v4574_v61  ;;  %v1128_v37 = vadd.f32 1.0, %v4589_v34  ;;  %v1316_v3 = vsub.f32 %v4574_v61, %v4557_v26 }
 0x1c3   : > { %v1123_v22 = vadd.f32 1.0, %v4576_v25  ;;  %v965_v15 = vand.u32 2147483647, %v933_v20  ;;  %v1127_v30 = vadd.f32 1.0, %v4595_v14  ;;  %v1315_v27 = vsub.f32 %v4576_v25, %v4559_v18 }
 0x1c4   : > { %3359 = vrcp.f32 %v1157_v62  ;;  %v1156_v44 = vmul.f32 %v1124_v0, %v1092_v5  ;;  %v1160_v54 = vmul.f32 %v1128_v37, %v1096_v4  ;;  %v937_v50 = vsub.f32 %v4567_v41, %v4543_v45 }
 0x1c5   : > { %v1155_v43 = vmul.f32 %v1123_v22, %v1091_v59  ;;  %v4600_v60 = vadd.f32 %v965_v15, %v857_v47  ;;  %v1159_v31 = vmul.f32 %v1127_v30, %v1095_v8  ;;  %v830_v26 = vsub.f32 %v4497_v28, %v4609_v48 }
 0x1c6   : > { %3361 = vrcp.f32 %v1156_v44  ;;  %v938_v18 = vsub.f32 %v4533_v36, %v4611_v32  ;;  %v828_v35 = vsub.f32 %v4503_v2, %v4537_v23  ;;  %v861_v1 = vand.u32 2147483647, %v829_v13 }
 0x1c7   : > { %3363 = vrcp.f32 %v1155_v43  ;;  %v1030_v17 = vsub.f32 %v4541_v10, %v4600_v60  ;;  %v969_v46 = vand.u32 2147483647, %v937_v50  ;;  %v1094_v16 = vadd.f32 1.0, %v4600_v60 }
 0x1c8   : > { %3365 = vrcp.f32 %v1160_v54  ;;  %v862_v51 = vand.u32 2147483647, %v830_v26  ;;  %v970_v29 = vand.u32 2147483647, %v938_v18  ;;  %v1320_v5 = vsub.f32 %v4589_v34, %v4569_v12 }
 0x1c9   : > { %v4617_v40 = vand.u32 2147483647, %v1030_v17  ;;  %3367 = vrcp.f32 %v1159_v31  ;;  %v4629_v55 = vadd.f32 %v969_v46, %v861_v1  ;;  %v860_v0 = vand.u32 2147483647, %v828_v35 }
 0x1ca   : > { %v3360_v49 = vpop.eup %3359  ;;  %v936_v15 = vsub.f32 %v4524_v24, %v4543_v45 }
 0x1cb   : > { %v1221_v6 = vmul.f32 %v3360_v49, %v1157_v62  ;;  %v1126_v42 = vadd.f32 1.0, %v4617_v40  ;;  %v4631_v62 = vadd.f32 %v970_v29, %v862_v51  ;;  %v1034_v47 = vsub.f32 %v4541_v10, %v4629_v55 }
 0x1cc   : > { %v3362_v63 = vpop.eup %3361  ;;  %v1098_v33 = vadd.f32 1.0, %v4629_v55 }
 0x1cd   : > { %v3364_v21 = vpop.eup %3363  ;;  %v1253_v61 = vsub.f32 2.0, %v1221_v6  ;;  %v1220_v25 = vmul.f32 %v3362_v63, %v1156_v44  ;;  %v1158_v20 = vmul.f32 %v1126_v42, %v1094_v16  ;;  %v1035_v12 = vsub.f32 %v4541_v10, %v4631_v62 }
 0x1ce   : > { %v1219_v23 = vmul.f32 %v3364_v21, %v1155_v43  ;;  %v3366_v59 = vpop.eup %3365  ;;  %v4639_v11 = vand.u32 2147483647, %v1034_v47  ;;  %v1319_v6 = vsub.f32 %v4595_v14, %v4581_v19  ;;  %v941_v42 = vsub.f32 %v4567_v41, %v4611_v32 }
 0x1cf   : > { %v1285_v22 = vmul.f32 %v3360_v49, %v1253_v61  ;;  %v1252_v39 = vsub.f32 2.0, %v1220_v25  ;;  %v1224_v4 = vmul.f32 %v3366_v59, %v1160_v54  ;;  %3369 = vrcp.f32 %v1158_v20  ;;  %v3368_v34 = vpop.eup %3367 }
 0x1d0   : > { %v1251_v44 = vsub.f32 2.0, %v1219_v23  ;;  %v1223_v17 = vmul.f32 %v3368_v34, %v1159_v31  ;;  %v4642_v13 = vand.u32 2147483647, %v1035_v12  ;;  %v1099_v54 = vadd.f32 1.0, %v4631_v62 }
 0x1d1   : > { %v1349_v43 = vmul.f32 %v1317_v56, %v1285_v22  ;;  %v1284_v37 = vmul.f32 %v3362_v63, %v1252_v39  ;;  %v1256_v30 = vsub.f32 2.0, %v1224_v4  ;;  %v1130_v50 = vadd.f32 1.0, %v4639_v11 }
 0x1d2   : > { %v1283_v8 = vmul.f32 %v3364_v21, %v1251_v44  ;;  %v968_v49 = vand.u32 2147483647, %v936_v15  ;;  %v1255_v56 = vsub.f32 2.0, %v1223_v17  ;;  %v1131_v35 = vadd.f32 1.0, %v4642_v13 }
 0x1d3   : > { %1383 = vadd.xlane.f32.xlu1 %v1349_v43  ;;  %v1348_v45 = vmul.f32 %v1316_v3, %v1284_v37  ;;  %v1288_v18 = vmul.f32 %v3366_v59, %v1256_v30  ;;  %v1162_v1 = vmul.f32 %v1130_v50, %v1098_v33  ;;  %v833_v3 = vsub.f32 %v4513_v58, %v4609_v48 }
 0x1d4   : > { %v1347_v26 = vmul.f32 %v1315_v27, %v1283_v8  ;;  %v4649_v31 = vadd.f32 %v968_v49, %v860_v0  ;;  %v1318_v63 = vsub.f32 %v4617_v40, %v4600_v60  ;;  %v1163_v27 = vmul.f32 %v1131_v35, %v1099_v54 }
 0x1d5   : > { %1381 = vadd.xlane.f32.xlu2 %v1348_v45  ;;  %v3370_v46 = vpop.eup %3369  ;;  %v1322_v16 = vsub.f32 %v4639_v11, %v4629_v55  ;;  %v1287_v51 = vmul.f32 %v3368_v34, %v1255_v56  ;;  %3371 = vrcp.f32 %v1162_v1  ;;  %v1352_v29 = vmul.f32 %v1320_v5, %v1288_v18 }
 0x1d6   : > { %1379 = vadd.xlane.f32.xlu0 %v1347_v26  ;;  %v1222_v19 = vmul.f32 %v3370_v46, %v1158_v20  ;;  %v1033_v14 = vsub.f32 %v4541_v10, %v4649_v31  ;;  %3373 = vrcp.f32 %v1163_v27  ;;  %v865_v21 = vand.u32 2147483647, %v833_v3 }
 0x1d7   : > { %v973_v61 = vand.u32 2147483647, %v941_v42  ;;  %v832_v60 = vsub.f32 %v4503_v2, %v4609_v48  ;;  %v940_v40 = vsub.f32 %v4524_v24, %v4611_v32  ;;  %v831_v20 = vsub.f32 %v4515_v57, %v4609_v48 }
 0x1d8   : > { %v1254_v25 = vsub.f32 2.0, %v1222_v19  ;;  %v4661_v23 = vand.u32 2147483647, %v1033_v14  ;;  %v939_v5 = vsub.f32 %v4531_v53, %v4611_v32  ;;  %v781_v0 = vrot.slane %v4517_v38, 3 }
 0x1d9   : > { %v4667_v55 = vadd.f32 %v973_v61, %v865_v21  ;;  %v1351_v59 = vmul.f32 %v1319_v6, %v1287_v51  ;;  %v1097_v39 = vadd.f32 1.0, %v4649_v31  ;;  %v1323_v15 = vsub.f32 %v4642_v13, %v4631_v62 }
 0x1da   : > { %v1286_v22 = vmul.f32 %v3370_v46, %v1254_v25  ;;  %v1129_v47 = vadd.f32 1.0, %v4661_v23  ;;  %v864_v4 = vand.u32 2147483647, %v832_v60  ;;  %v972_v48 = vand.u32 2147483647, %v940_v40 }
 0x1db   : > { %1389 = vadd.xlane.f32.xlu1 %v1352_v29  ;;  %v1038_v44 = vsub.f32 %v4541_v10, %v4667_v55  ;;  %v3372_v12 = vpop.eup %3371  ;;  %v863_v43 = vand.u32 2147483647, %v831_v20  ;;  %v971_v37 = vand.u32 2147483647, %v939_v5  ;;  %v4684_v17 = vperm.slane %v781_v0, 0 }
 0x1dc   : > { %v1350_v32 = vmul.f32 %v1318_v63, %v1286_v22  ;;  %v1161_v34 = vmul.f32 %v1129_v47, %v1097_v39  ;;  %v3374_v11 = vpop.eup %3373  ;;  %v1226_v33 = vmul.f32 %v3372_v12, %v1162_v1  ;;  %v4682_v30 = vadd.f32 %v972_v48, %v864_v4 }
 0x1dd   : > { %1387 = vadd.xlane.f32.xlu2 %v1351_v59  ;;  %v4680_v8 = vand.u32 2147483647, %v1038_v44  ;;  %v1227_v62 = vmul.f32 %v3374_v11, %v1163_v27  ;;  %v4686_v13 = vadd.f32 %v971_v37, %v863_v43  ;;  %v889_v45 = vrot.slane %v4519_v9, 3 }
 0x1de   : > { %1385 = vadd.xlane.f32.xlu0 %v1350_v32  ;;  %3375 = vrcp.f32 %v1161_v34  ;;  %v1258_v54 = vsub.f32 2.0, %v1226_v33  ;;  %v1102_v50 = vadd.f32 1.0, %v4667_v55  ;;  %v1037_v26 = vsub.f32 %v4541_v10, %v4682_v30 }
 0x1df   : > { %v1134_v49 = vadd.f32 1.0, %v4680_v8  ;;  %v1259_v18 = vsub.f32 2.0, %v1227_v62  ;;  %v1321_v56 = vsub.f32 %v4661_v23, %v4649_v31  ;;  %v1036_v35 = vsub.f32 %v4541_v10, %v4686_v13 }
 0x1e0   : > { %v836_v6 = vsub.f32 %v4503_v2, %v4684_v17  ;;  %v1290_v1 = vmul.f32 %v3372_v12, %v1258_v54  ;;  %v4699_v46 = vand.u32 2147483647, %v1037_v26  ;;  %v1101_v63 = vadd.f32 1.0, %v4682_v30 }
 0x1e1   : > { %v1166_v3 = vmul.f32 %v1134_v49, %v1102_v50  ;;  %v1291_v27 = vmul.f32 %v3374_v11, %v1259_v18  ;;  %v4702_v42 = vand.u32 2147483647, %v1036_v35  ;;  %v4704_v51 = vperm.slane %v889_v45, 0 }
 0x1e2   : > { %v835_v31 = vsub.f32 %v4515_v57, %v4684_v17  ;;  %v1354_v19 = vmul.f32 %v1322_v16, %v1290_v1  ;;  %v1133_v14 = vadd.f32 1.0, %v4699_v46  ;;  %v1100_v29 = vadd.f32 1.0, %v4686_v13 }
 0x1e3   : > { %3377 = vrcp.f32 %v1166_v3  ;;  %v1355_v61 = vmul.f32 %v1323_v15, %v1291_v27  ;;  %v1132_v25 = vadd.f32 1.0, %v4702_v42  ;;  %v868_v23 = vand.u32 2147483647, %v836_v6 }
 0x1e4   : > { %v3376_v21 = vpop.eup %3375  ;;  %v944_v60 = vsub.f32 %v4524_v24, %v4704_v51  ;;  %v1165_v20 = vmul.f32 %v1133_v14, %v1101_v63  ;;  %v867_v5 = vand.u32 2147483647, %v835_v31  ;;  %v943_v16 = vsub.f32 %v4531_v53, %v4704_v51 }
 0x1e5   : > { %1393 = vadd.xlane.f32.xlu2 %v1354_v19  ;;  %v1225_v40 = vmul.f32 %v3376_v21, %v1161_v34  ;;  %1395 = vadd.xlane.f32.xlu1 %v1355_v61  ;;  %v1164_v0 = vmul.f32 %v1132_v25, %v1100_v29  ;;  %v834_v22 = vsub.f32 %v4497_v28, %v4684_v17  ;;  %v782_v44 = vrot.slane %v4517_v38, 4 }
 0x1e6   : > { %v976_v59 = vand.u32 2147483647, %v944_v60  ;;  %v942_v39 = vsub.f32 %v4533_v36, %v4704_v51  ;;  %3379 = vrcp.f32 %v1165_v20  ;;  %v975_v15 = vand.u32 2147483647, %v943_v16 }
 0x1e7   : > { %v1257_v47 = vsub.f32 2.0, %v1225_v40  ;;  %3381 = vrcp.f32 %v1164_v0  ;;  %v866_v48 = vand.u32 2147483647, %v834_v22  ;;  %v1326_v43 = vsub.f32 %v4680_v8, %v4667_v55 }
 0x1e8   : > { %v4720_v4 = vadd.f32 %v976_v59, %v868_v23  ;;  %v974_v12 = vand.u32 2147483647, %v942_v39  ;;  %v4724_v37 = vadd.f32 %v975_v15, %v867_v5  ;;  %v890_v11 = vrot.slane %v4519_v9, 4 }
 0x1e9   : > { %v3378_v32 = vpop.eup %3377  ;;  %v1289_v34 = vmul.f32 %v3376_v21, %v1257_v47  ;;  %v4731_v54 = vperm.slane %v782_v44, 0  ;;  %v1325_v49 = vsub.f32 %v4699_v46, %v4682_v30  ;;  %v1324_v26 = vsub.f32 %v4702_v42, %v4686_v13 }
 0x1ea   : > { %v1230_v33 = vmul.f32 %v3378_v32, %v1166_v3  ;;  %v1041_v62 = vsub.f32 %v4541_v10, %v4720_v4  ;;  %v4729_v45 = vadd.f32 %v974_v12, %v866_v48  ;;  %v1040_v55 = vsub.f32 %v4541_v10, %v4724_v37 }
 0x1eb   : > { %v1353_v50 = vmul.f32 %v1321_v56, %v1289_v34  ;;  %v1105_v35 = vadd.f32 1.0, %v4720_v4  ;;  %v1104_v30 = vadd.f32 1.0, %v4724_v37  ;;  %v839_v13 = vsub.f32 %v4515_v57, %v4731_v54 }
 0x1ec   : > { %v1262_v8 = vsub.f32 2.0, %v1230_v33  ;;  %v4739_v18 = vand.u32 2147483647, %v1041_v62  ;;  %v1039_v6 = vsub.f32 %v4541_v10, %v4729_v45  ;;  %v3380_v1 = vpop.eup %3379  ;;  %v4744_v56 = vand.u32 2147483647, %v1040_v55 }
 0x1ed   : > { %1391 = vadd.xlane.f32.xlu0 %v1353_v50  ;;  %v4749_v3 = vperm.slane %v890_v11, 0  ;;  %v3382_v46 = vpop.eup %3381  ;;  %v1229_v27 = vmul.f32 %v3380_v1, %v1165_v20  ;;  %v838_v31 = vsub.f32 %v4497_v28, %v4731_v54  ;;  %v1103_v21 = vadd.f32 1.0, %v4729_v45 }
 0x1ee   : > { %v1294_v63 = vmul.f32 %v3378_v32, %v1262_v8  ;;  %v1137_v42 = vadd.f32 1.0, %v4739_v18  ;;  %v1228_v19 = vmul.f32 %v3382_v46, %v1164_v0  ;;  %v1136_v14 = vadd.f32 1.0, %v4744_v56 }
 0x1ef   : > { %v4755_v29 = vand.u32 2147483647, %v1039_v6  ;;  %v1261_v25 = vsub.f32 2.0, %v1229_v27  ;;  %v947_v60 = vsub.f32 %v4531_v53, %v4749_v3  ;;  %v871_v16 = vand.u32 2147483647, %v839_v13 }
 0x1f0   : > { %v1358_v61 = vmul.f32 %v1326_v43, %v1294_v63  ;;  %v1169_v23 = vmul.f32 %v1137_v42, %v1105_v35  ;;  %v1260_v40 = vsub.f32 2.0, %v1228_v19  ;;  %v1168_v20 = vmul.f32 %v1136_v14, %v1104_v30 }
 0x1f1   : > { %v1135_v5 = vadd.f32 1.0, %v4755_v29  ;;  %v1293_v59 = vmul.f32 %v3380_v1, %v1261_v25  ;;  %v979_v0 = vand.u32 2147483647, %v947_v60  ;;  %v870_v22 = vand.u32 2147483647, %v838_v31 }
 0x1f2   : > { %1401 = vadd.xlane.f32.xlu1 %v1358_v61  ;;  %3383 = vrcp.f32 %v1169_v23  ;;  %v1292_v39 = vmul.f32 %v3382_v46, %v1260_v40  ;;  %v946_v15 = vsub.f32 %v4533_v36, %v4749_v3  ;;  %v837_v12 = vsub.f32 %v4513_v58, %v4684_v17 }
 0x1f3   : > { %3385 = vrcp.f32 %v1168_v20  ;;  %v1167_v47 = vmul.f32 %v1135_v5, %v1103_v21  ;;  %v1357_v44 = vmul.f32 %v1325_v49, %v1293_v59  ;;  %v4763_v48 = vadd.f32 %v979_v0, %v871_v16 }
 0x1f4   : > { %v945_v32 = vsub.f32 %v4567_v41, %v4704_v51  ;;  %v1356_v34 = vmul.f32 %v1324_v26, %v1292_v39  ;;  %v978_v43 = vand.u32 2147483647, %v946_v15  ;;  %v783_v11 = vrot.slane %v4517_v38, 5 }
 0x1f5   : > { %3387 = vrcp.f32 %v1167_v47  ;;  %1399 = vadd.xlane.f32.xlu2 %v1357_v44  ;;  %v1044_v33 = vsub.f32 %v4541_v10, %v4763_v48  ;;  %v869_v62 = vand.u32 2147483647, %v837_v12  ;;  %v1329_v49 = vsub.f32 %v4739_v18, %v4720_v4 }
 0x1f6   : > { %v977_v50 = vand.u32 2147483647, %v945_v32  ;;  %1397 = vadd.xlane.f32.xlu0 %v1356_v34  ;;  %v1328_v17 = vsub.f32 %v4744_v56, %v4724_v37  ;;  %v4776_v55 = vadd.f32 %v978_v43, %v870_v22  ;;  %v4778_v51 = vperm.slane %v783_v11, 0 }
 0x1f7   : > { %v1327_v8 = vsub.f32 %v4755_v29, %v4729_v45  ;;  %v4782_v35 = vand.u32 2147483647, %v1044_v33  ;;  %v1108_v6 = vadd.f32 1.0, %v4763_v48  ;;  %v891_v37 = vrot.slane %v4519_v9, 5 }
 0x1f8   : > { %v3384_v26 = vpop.eup %3383  ;;  %v4785_v1 = vadd.f32 %v977_v50, %v869_v62  ;;  %v1043_v4 = vsub.f32 %v4541_v10, %v4776_v55  ;;  %v840_v18 = vsub.f32 %v4503_v2, %v4731_v54  ;;  %v948_v63 = vsub.f32 %v4524_v24, %v4749_v3 }
 0x1f9   : > { %v3386_v30 = vpop.eup %3385  ;;  %v1233_v13 = vmul.f32 %v3384_v26, %v1169_v23  ;;  %v1140_v46 = vadd.f32 1.0, %v4782_v35  ;;  %v1107_v19 = vadd.f32 1.0, %v4776_v55  ;;  %v842_v14 = vsub.f32 %v4497_v28, %v4778_v51 }
 0x1fa   : > { %v1232_v56 = vmul.f32 %v3386_v30, %v1168_v20  ;;  %v1042_v45 = vsub.f32 %v4541_v10, %v4785_v1  ;;  %v4797_v31 = vand.u32 2147483647, %v1043_v4  ;;  %v1106_v40 = vadd.f32 1.0, %v4785_v1 }
 0x1fb   : > { %v3388_v27 = vpop.eup %3387  ;;  %v1265_v42 = vsub.f32 2.0, %v1233_v13  ;;  %v1172_v61 = vmul.f32 %v1140_v46, %v1108_v6  ;;  %v4806_v20 = vperm.slane %v891_v37, 0  ;;  %v874_v32 = vand.u32 2147483647, %v842_v14 }
 0x1fc   : > { %v1264_v29 = vsub.f32 2.0, %v1232_v56  ;;  %v1231_v21 = vmul.f32 %v3388_v27, %v1167_v47  ;;  %v4802_v25 = vand.u32 2147483647, %v1042_v45  ;;  %v1139_v60 = vadd.f32 1.0, %v4797_v31 }
 0x1fd   : > { %v1297_v23 = vmul.f32 %v3384_v26, %v1265_v42  ;;  %3389 = vrcp.f32 %v1172_v61  ;;  %v950_v39 = vsub.f32 %v4533_v36, %v4806_v20  ;;  %v841_v47 = vsub.f32 %v4513_v58, %v4731_v54 }
 0x1fe   : > { %v1296_v5 = vmul.f32 %v3386_v30, %v1264_v29  ;;  %v1263_v16 = vsub.f32 2.0, %v1231_v21  ;;  %v1138_v59 = vadd.f32 1.0, %v4802_v25  ;;  %v1171_v22 = vmul.f32 %v1139_v60, %v1107_v19 }
 0x1ff   : > { %v1361_v0 = vmul.f32 %v1329_v49, %v1297_v23  ;;  %v982_v34 = vand.u32 2147483647, %v950_v39  ;;  %v949_v43 = vsub.f32 %v4567_v41, %v4749_v3  ;;  %v872_v11 = vand.u32 2147483647, %v840_v18 }
 0x200   : > { %v1360_v15 = vmul.f32 %v1328_v17, %v1296_v5  ;;  %v1295_v44 = vmul.f32 %v3388_v27, %v1263_v16  ;;  %v1170_v12 = vmul.f32 %v1138_v59, %v1106_v40  ;;  %3391 = vrcp.f32 %v1171_v22 }
 0x201   : > { %1407 = vadd.xlane.f32.xlu1 %v1361_v0  ;;  %v980_v62 = vand.u32 2147483647, %v948_v63  ;;  %v845_v50 = vsub.f32 %v4513_v58, %v4778_v51  ;;  %v4817_v49 = vadd.f32 %v982_v34, %v874_v32  ;;  %v873_v54 = vand.u32 2147483647, %v841_v47 }
 0x202   : > { %1405 = vadd.xlane.f32.xlu2 %v1360_v15  ;;  %v1359_v33 = vmul.f32 %v1327_v8, %v1295_v44  ;;  %3393 = vrcp.f32 %v1170_v12  ;;  %v981_v17 = vand.u32 2147483647, %v949_v43  ;;  %v953_v26 = vsub.f32 %v4567_v41, %v4806_v20 }
 0x203   : > { %v3390_v6 = vpop.eup %3389  ;;  %v1332_v3 = vsub.f32 %v4782_v35, %v4763_v48  ;;  %v1331_v8 = vsub.f32 %v4797_v31, %v4776_v55  ;;  %v1330_v30 = vsub.f32 %v4802_v25, %v4785_v1  ;;  %v4827_v13 = vadd.f32 %v980_v62, %v872_v11 }
 0x204   : > { %1403 = vadd.xlane.f32.xlu0 %v1359_v33  ;;  %v1236_v4 = vmul.f32 %v3390_v6, %v1172_v61  ;;  %v1047_v37 = vsub.f32 %v4541_v10, %v4817_v49  ;;  %v4831_v18 = vadd.f32 %v981_v17, %v873_v54  ;;  %v844_v56 = vsub.f32 %v4503_v2, %v4778_v51 }
 0x205   : > { %v1045_v48 = vsub.f32 %v4541_v10, %v4827_v13  ;;  %v877_v35 = vand.u32 2147483647, %v845_v50  ;;  %v985_v46 = vand.u32 2147483647, %v953_v26  ;;  %v952_v55 = vsub.f32 %v4524_v24, %v4806_v20 }
 0x206   : > { %v3392_v1 = vpop.eup %3391  ;;  %v1268_v45 = vsub.f32 2.0, %v1236_v4  ;;  %v4839_v63 = vand.u32 2147483647, %v1047_v37  ;;  %v1111_v27 = vadd.f32 1.0, %v4817_v49  ;;  %v1046_v42 = vsub.f32 %v4541_v10, %v4831_v18 }
 0x207   : > { %v1235_v19 = vmul.f32 %v3392_v1, %v1171_v22  ;;  %v4844_v14 = vand.u32 2147483647, %v1045_v48  ;;  %v1109_v29 = vadd.f32 1.0, %v4827_v13  ;;  %v4847_v21 = vadd.f32 %v985_v46, %v877_v35 }
 0x208   : > { %v3394_v31 = vpop.eup %3393  ;;  %v1300_v61 = vmul.f32 %v3390_v6, %v1268_v45  ;;  %v1143_v23 = vadd.f32 1.0, %v4839_v63  ;;  %v876_v60 = vand.u32 2147483647, %v844_v56  ;;  %v4850_v5 = vand.u32 2147483647, %v1046_v42 }
 0x209   : > { %v1234_v25 = vmul.f32 %v3394_v31, %v1170_v12  ;;  %v1267_v40 = vsub.f32 2.0, %v1235_v19  ;;  %v1141_v16 = vadd.f32 1.0, %v4844_v14  ;;  %v984_v59 = vand.u32 2147483647, %v952_v55 }
 0x20a   : > { %v1364_v0 = vmul.f32 %v1332_v3, %v1300_v61  ;;  %v1175_v22 = vmul.f32 %v1143_v23, %v1111_v27  ;;  %v1050_v47 = vsub.f32 %v4541_v10, %v4847_v21  ;;  %v1110_v44 = vadd.f32 1.0, %v4831_v18 }
 0x20b   : > { %v1266_v39 = vsub.f32 2.0, %v1234_v25  ;;  %v1299_v15 = vmul.f32 %v3392_v1, %v1267_v40  ;;  %v1142_v12 = vadd.f32 1.0, %v4850_v5  ;;  %v1173_v32 = vmul.f32 %v1141_v16, %v1109_v29 }
 0x20c   : > { %1413 = vadd.xlane.f32.xlu1 %v1364_v0  ;;  %3395 = vrcp.f32 %v1175_v22  ;;  %v4857_v43 = vand.u32 2147483647, %v1050_v47  ;;  %v843_v11 = vsub.f32 %v4515_v57, %v4778_v51  ;;  %v4861_v50 = vadd.f32 %v984_v59, %v876_v60 }
 0x20d   : > { %v1298_v34 = vmul.f32 %v3394_v31, %v1266_v39  ;;  %v1363_v33 = vmul.f32 %v1331_v8, %v1299_v15  ;;  %v1174_v62 = vmul.f32 %v1142_v12, %v1110_v44  ;;  %3397 = vrcp.f32 %v1173_v32 }
 0x20e   : > { %v1114_v17 = vadd.f32 1.0, %v4847_v21  ;;  %v1146_v26 = vadd.f32 1.0, %v4857_v43  ;;  %v1335_v6 = vsub.f32 %v4839_v63, %v4817_v49  ;;  %v1049_v3 = vsub.f32 %v4541_v10, %v4861_v50 }
 0x20f   : > { %v1362_v54 = vmul.f32 %v1330_v30, %v1298_v34  ;;  %1411 = vadd.xlane.f32.xlu2 %v1363_v33  ;;  %3399 = vrcp.f32 %v1174_v62  ;;  %v951_v51 = vsub.f32 %v4531_v53, %v4806_v20  ;;  %v1333_v8 = vsub.f32 %v4844_v14, %v4827_v13 }
 0x210   : > { %v1178_v30 = vmul.f32 %v1146_v26, %v1114_v17  ;;  %v784_v4 = vrot.slane %v4517_v38, 6  ;;  %v892_v37 = vrot.slane %v4519_v9, 6  ;;  %v1334_v56 = vsub.f32 %v4850_v5, %v4831_v18 }
 0x211   : > { %1409 = vadd.xlane.f32.xlu0 %v1362_v54  ;;  %v4877_v49 = vand.u32 2147483647, %v1049_v3  ;;  %v875_v48 = vand.u32 2147483647, %v843_v11  ;;  %v983_v35 = vand.u32 2147483647, %v951_v51  ;;  %v1338_v20 = vsub.f32 %v4857_v43, %v4847_v21 }
 0x212   : > { %v3396_v46 = vpop.eup %3395  ;;  %3401 = vrcp.f32 %v1178_v30  ;;  %v4881_v55 = vperm.slane %v784_v4, 0  ;;  %v4883_v13 = vperm.slane %v892_v37, 0  ;;  %v1113_v63 = vadd.f32 1.0, %v4861_v50 }
 0x213   : > { %v3398_v1 = vpop.eup %3397  ;;  %v1239_v45 = vmul.f32 %v3396_v46, %v1175_v22  ;;  %v1145_v27 = vadd.f32 1.0, %v4877_v49  ;;  %v4887_v18 = vadd.f32 %v983_v35, %v875_v48  ;;  %v785_v14 = vrot.slane %v4517_v38, 7 }
 0x214   : > { %v1237_v42 = vmul.f32 %v3398_v1, %v1173_v32  ;;  %v848_v31 = vsub.f32 %v4503_v2, %v4881_v55  ;;  %v956_v19 = vsub.f32 %v4524_v24, %v4883_v13  ;;  %v847_v23 = vsub.f32 %v4515_v57, %v4881_v55 }
 0x215   : > { %v3400_v29 = vpop.eup %3399  ;;  %v1271_v21 = vsub.f32 2.0, %v1239_v45  ;;  %v1177_v61 = vmul.f32 %v1145_v27, %v1113_v63  ;;  %v1048_v25 = vsub.f32 %v4541_v10, %v4887_v18  ;;  %v893_v39 = vrot.slane %v4519_v9, 7 }
 0x216   : > { %v1238_v60 = vmul.f32 %v3400_v29, %v1174_v62  ;;  %v1269_v40 = vsub.f32 2.0, %v1237_v42  ;;  %v880_v5 = vand.u32 2147483647, %v848_v31  ;;  %v988_v16 = vand.u32 2147483647, %v956_v19 }
 0x217   : > { %v1303_v59 = vmul.f32 %v3396_v46, %v1271_v21  ;;  %3403 = vrcp.f32 %v1177_v61  ;;  %v4898_v0 = vand.u32 2147483647, %v1048_v25  ;;  %v955_v44 = vsub.f32 %v4531_v53, %v4883_v13 }
 0x218   : > { %v3402_v38 = vpop.eup %3401  ;;  %v1270_v22 = vsub.f32 2.0, %v1238_v60  ;;  %v1301_v47 = vmul.f32 %v3398_v1, %v1269_v40  ;;  %v4901_v15 = vadd.f32 %v988_v16, %v880_v5  ;;  %v1112_v34 = vadd.f32 1.0, %v4887_v18 }
 0x219   : > { %v1367_v12 = vmul.f32 %v1335_v6, %v1303_v59  ;;  %v1242_v32 = vmul.f32 %v3402_v38, %v1178_v30  ;;  %v1144_v43 = vadd.f32 1.0, %v4898_v0  ;;  %v879_v9 = vand.u32 2147483647, %v847_v23 }
 0x21a   : > { %v1302_v11 = vmul.f32 %v3400_v29, %v1270_v22  ;;  %v1365_v33 = vmul.f32 %v1333_v8, %v1301_v47  ;;  %v1053_v62 = vsub.f32 %v4541_v10, %v4901_v15  ;;  %v987_v26 = vand.u32 2147483647, %v955_v44 }
 0x21b   : > { %1419 = vadd.xlane.f32.xlu1 %v1367_v12  ;;  %v1274_v54 = vsub.f32 2.0, %v1242_v32  ;;  %v1176_v17 = vmul.f32 %v1144_v43, %v1112_v34  ;;  %v846_v3 = vsub.f32 %v4497_v28, %v4881_v55  ;;  %v954_v30 = vsub.f32 %v4533_v36, %v4883_v13 }
 0x21c   : > { %v1366_v51 = vmul.f32 %v1334_v56, %v1302_v11  ;;  %1415 = vadd.xlane.f32.xlu0 %v1365_v33  ;;  %v4911_v6 = vand.u32 2147483647, %v1053_v62  ;;  %v4915_v4 = vperm.slane %v785_v14, 0  ;;  %v1117_v48 = vadd.f32 1.0, %v4901_v15 }
 0x21d   : > { %v3404_v8 = vpop.eup %3403  ;;  %v1306_v37 = vmul.f32 %v3402_v38, %v1274_v54  ;;  %3405 = vrcp.f32 %v1176_v17  ;;  %v4918_v35 = vadd.f32 %v987_v26, %v879_v9  ;;  %v878_v56 = vand.u32 2147483647, %v846_v3 }
 0x21e   : > { %1417 = vadd.xlane.f32.xlu2 %v1366_v51  ;;  %v1241_v46 = vmul.f32 %v3404_v8, %v1177_v61  ;;  %v1149_v1 = vadd.f32 1.0, %v4911_v6  ;;  %v986_v45 = vand.u32 2147483647, %v954_v30  ;;  %v1337_v27 = vsub.f32 %v4877_v49, %v4861_v50 }
 0x21f   : > { %v1370_v63 = vmul.f32 %v1338_v20, %v1306_v37  ;;  %v1052_v42 = vsub.f32 %v4541_v10, %v4918_v35  ;;  %v851_v31 = vsub.f32 %v4515_v57, %v4915_v4  ;;  %v1116_v29 = vadd.f32 1.0, %v4918_v35 }
 0x220   : > { %v1273_v19 = vsub.f32 2.0, %v1241_v46  ;;  %v1181_v14 = vmul.f32 %v1149_v1, %v1117_v48  ;;  %v4928_v21 = vadd.f32 %v986_v45, %v878_v56  ;;  %v4932_v25 = vperm.slane %v893_v39, 0 }
 0x221   : > { %v4930_v61 = vand.u32 2147483647, %v1052_v42  ;;  %v849_v20 = vsub.f32 %v4513_v58, %v4881_v55  ;;  %v957_v50 = vsub.f32 %v4567_v41, %v4883_v13  ;;  %v850_v23 = vsub.f32 %v4497_v28, %v4915_v4 }
 0x222   : > { %v1305_v49 = vmul.f32 %v3404_v8, %v1273_v19  ;;  %3407 = vrcp.f32 %v1181_v14  ;;  %v1051_v57 = vsub.f32 %v4541_v10, %v4928_v21  ;;  %v1115_v5 = vadd.f32 1.0, %v4928_v21 }
 0x223   : > { %v3406_v60 = vpop.eup %3405  ;;  %1425 = vadd.xlane.f32.xlu1 %v1370_v63  ;;  %v1148_v40 = vadd.f32 1.0, %v4930_v61  ;;  %v883_v16 = vand.u32 2147483647, %v851_v31  ;;  %v959_v55 = vsub.f32 %v4531_v53, %v4932_v25  ;;  %v958_v38 = vsub.f32 %v4533_v36, %v4932_v25 }
 0x224   : > { %v1369_v59 = vmul.f32 %v1337_v27, %v1305_v49  ;;  %v1240_v13 = vmul.f32 %v3406_v60, %v1176_v17  ;;  %v4946_v39 = vand.u32 2147483647, %v1051_v57  ;;  %v881_v28 = vand.u32 2147483647, %v849_v20 }
 0x225   : > { %v1180_v22 = vmul.f32 %v1148_v40, %v1116_v29  ;;  %v991_v47 = vand.u32 2147483647, %v959_v55  ;;  %v989_v44 = vand.u32 2147483647, %v957_v50  ;;  %v882_v34 = vand.u32 2147483647, %v850_v23 }
 0x226   : > { %1423 = vadd.xlane.f32.xlu2 %v1369_v59  ;;  %v1272_v12 = vsub.f32 2.0, %v1240_v13  ;;  %v1147_v32 = vadd.f32 1.0, %v4946_v39  ;;  %v990_v43 = vand.u32 2147483647, %v958_v38  ;;  %v1336_v53 = vsub.f32 %v4898_v0, %v4887_v18 }
 0x227   : > { %3409 = vrcp.f32 %v1180_v22  ;;  %v4953_v11 = vadd.f32 %v991_v47, %v883_v16  ;;  %v4955_v33 = vadd.f32 %v989_v44, %v881_v28  ;;  %v961_v17 = vsub.f32 %v4567_v41, %v4932_v25 }
 0x228   : > { %v3408_v62 = vpop.eup %3407  ;;  %v1304_v36 = vmul.f32 %v3406_v60, %v1272_v12  ;;  %v1179_v9 = vmul.f32 %v1147_v32, %v1115_v5  ;;  %v4957_v54 = vadd.f32 %v990_v43, %v882_v34  ;;  %v853_v0 = vsub.f32 %v4513_v58, %v4915_v4 }
 0x229   : > { %v1245_v26 = vmul.f32 %v3408_v62, %v1181_v14  ;;  %v1056_v3 = vsub.f32 %v4541_v10, %v4953_v11  ;;  %v1054_v18 = vsub.f32 %v4541_v10, %v4955_v33  ;;  %v1341_v37 = vsub.f32 %v4911_v6, %v4901_v15 }
 0x22a   : > { %v1368_v51 = vmul.f32 %v1336_v53, %v1304_v36  ;;  %3411 = vrcp.f32 %v1179_v9  ;;  %v1055_v30 = vsub.f32 %v4541_v10, %v4957_v54  ;;  %v1120_v46 = vadd.f32 1.0, %v4953_v11 }
 0x22b   : > { %v1277_v8 = vsub.f32 2.0, %v1245_v26  ;;  %v4971_v41 = vand.u32 2147483647, %v1056_v3  ;;  %v4973_v48 = vand.u32 2147483647, %v1054_v18  ;;  %v1118_v58 = vadd.f32 1.0, %v4955_v33 }
 0x22c   : > { %1421 = vadd.xlane.f32.xlu0 %v1368_v51  ;;  %v4976_v1 = vand.u32 2147483647, %v1055_v30  ;;  %v993_v56 = vand.u32 2147483647, %v961_v17  ;;  %v885_v31 = vand.u32 2147483647, %v853_v0  ;;  %v852_v14 = vsub.f32 %v4503_v2, %v4915_v4 }
 0x22d   : > { %v3410_v45 = vpop.eup %3409  ;;  %v1309_v63 = vmul.f32 %v3408_v62, %v1277_v8  ;;  %v1152_v27 = vadd.f32 1.0, %v4971_v41  ;;  %v1150_v42 = vadd.f32 1.0, %v4973_v48  ;;  %v1119_v6 = vadd.f32 1.0, %v4957_v54 }
 0x22e   : > { %v1244_v15 = vmul.f32 %v3410_v45, %v1180_v22  ;;  %v1151_v19 = vadd.f32 1.0, %v4976_v1  ;;  %v4985_v49 = vadd.f32 %v993_v56, %v885_v31  ;;  %v960_v40 = vsub.f32 %v4524_v24, %v4932_v25 }
 0x22f   : > { %v1373_v29 = vmul.f32 %v1341_v37, %v1309_v63  ;;  %v1184_v20 = vmul.f32 %v1152_v27, %v1120_v46  ;;  %v1182_v50 = vmul.f32 %v1150_v42, %v1118_v58  ;;  %v1340_v5 = vsub.f32 %v4930_v61, %v4918_v35 }
 0x230   : > { %v3412_v57 = vpop.eup %3411  ;;  %v1276_v23 = vsub.f32 2.0, %v1244_v15  ;;  %v1183_v60 = vmul.f32 %v1151_v19, %v1119_v6  ;;  %v1058_v2 = vsub.f32 %v4541_v10, %v4985_v49  ;;  %v884_v55 = vand.u32 2147483647, %v852_v14 }
 0x231   : > { %1431 = vadd.xlane.f32.xlu1 %v1373_v29  ;;  %v1243_v16 = vmul.f32 %v3412_v57, %v1179_v9  ;;  %3413 = vrcp.f32 %v1184_v20  ;;  %v992_v59 = vand.u32 2147483647, %v960_v40  ;;  %v1339_v24 = vsub.f32 %v4946_v39, %v4928_v21 }
 0x232   : > { %v1308_v4 = vmul.f32 %v3410_v45, %v1276_v23  ;;  %3415 = vrcp.f32 %v1183_v60  ;;  %v1090_v38 = vand.u32 2147483647, %v1058_v2  ;;  %v1122_v35 = vadd.f32 1.0, %v4985_v49 }
 0x233   : > { %v1275_v13 = vsub.f32 2.0, %v1243_v16  ;;  %3417 = vrcp.f32 %v1182_v50  ;;  %v1024_v47 = vadd.f32 %v992_v59, %v884_v55  ;;  %v1344_v18 = vsub.f32 %v4971_v41, %v4953_v11 }
 0x234   : > { %v1372_v22 = vmul.f32 %v1340_v5, %v1308_v4  ;;  %v1154_v61 = vadd.f32 1.0, %v1090_v38  ;;  %v1343_v30 = vsub.f32 %v4976_v1, %v4957_v54  ;;  %v1342_v46 = vsub.f32 %v4973_v48, %v4955_v33 }
 0x235   : > { %v1307_v28 = vmul.f32 %v3412_v57, %v1275_v13  ;;  %v1057_v25 = vsub.f32 %v4541_v10, %v1024_v47  ;;  %v1121_v26 = vadd.f32 1.0, %v1024_v47  ;;  %v1346_v42 = vsub.f32 %v1090_v38, %v4985_v49 }
 0x236   : > { %1429 = vadd.xlane.f32.xlu2 %v1372_v22  ;;  %v1186_v32 = vmul.f32 %v1154_v61, %v1122_v35  ;;  %v5005_v48 = vadd.s32 4294967256, %v4420_v7  ;;  %v5008_v14 = vadd.s32 4294967264, %v4420_v7  ;;  %v5013_v57 = vadd.s32 4294967248, %v4420_v7 }
 0x237   : > { %v3414_v44 = vpop.eup %3413  ;;  %v1371_v12 = vmul.f32 %v1339_v24, %v1307_v28  ;;  %v1089_v53 = vand.u32 2147483647, %v1057_v25  ;;  %v5018_v16 = vadd.s32 4294967240, %v4420_v7  ;;  %v6345_v25 = vld [vmem:[#allocation32_spill] sm:$0xff] }
 0x238   : > { %v3416_v34 = vpop.eup %3415  ;;  %v1248_v43 = vmul.f32 %v3414_v44, %v1184_v20  ;;  %3419 = vrcp.f32 %v1186_v32 }
 0x239   : > { %v3418_v62 = vpop.eup %3417  ;;  %1427 = vadd.xlane.f32.xlu0 %v1371_v12  ;;  %v1247_v36 = vmul.f32 %v3416_v34, %v1183_v60  ;;  %v1153_v21 = vadd.f32 1.0, %v1089_v53  ;;  %v1345_v6 = vsub.f32 %v1089_v53, %v1024_v47  ;;  %v6344_v47 = vld [vmem:[#allocation16_spill] sm:$0xff] }
 0x23a   : > { %v1280_v9 = vsub.f32 2.0, %v1248_v43  ;;  %v1246_v17 = vmul.f32 %v3418_v62, %v1182_v50 }
 0x23b   : > { %v1279_v39 = vsub.f32 2.0, %v1247_v36  ;;  %v1185_v0 = vmul.f32 %v1153_v21, %v1121_v26  ;;  %v6348_v36 = vld [vmem:[#allocation35_spill] sm:$0xff] }
 0x23c   : > { %v1312_v3 = vmul.f32 %v3414_v44, %v1280_v9  ;;  %v1278_v10 = vsub.f32 2.0, %v1246_v17  ;;  %v6346_v44 = vld [vmem:[#allocation18_spill] sm:$0xff]  ;;  %v6349_v9 = vld [vmem:[#allocation33_spill] sm:$0xff]  ;;  %v6350_v21 = vld [vmem:[#allocation19_spill] sm:$0xff] }
 0x23d   : > { %v1311_v51 = vmul.f32 %v3416_v34, %v1279_v39  ;;  %3421 = vrcp.f32 %v1185_v0 }
 0x23e   : > { %v1376_v8 = vmul.f32 %v1344_v18, %v1312_v3  ;;  %v1310_v37 = vmul.f32 %v3418_v62, %v1278_v10  ;;  %v3420_v58 = vpop.eup %3419 }
 0x23f   : > { %v1375_v56 = vmul.f32 %v1343_v30, %v1311_v51  ;;  %v1250_v63 = vmul.f32 %v3420_v58, %v1186_v32  ;;  %v6347_v32 = vld [vmem:[#allocation17_spill] sm:$0xff] }
 0x240   : > { %1437 = vadd.xlane.f32.xlu1 %v1376_v8  ;;  %v1374_v45 = vmul.f32 %v1342_v46, %v1310_v37  ;;  %v6351_v37 = vld [vmem:[#allocation34_spill] sm:$0xff] }
 0x241   : > { %1435 = vadd.xlane.f32.xlu2 %v1375_v56  ;;  %v1282_v11 = vsub.f32 2.0, %v1250_v63 }
 0x242   : > { %1433 = vadd.xlane.f32.xlu0 %v1374_v45 }
 0x243   : > { %v3422_v41 = vpop.eup %3421  ;;  %v1314_v27 = vmul.f32 %v3420_v58, %v1282_v11 }
 0x244   : > { %v1249_v31 = vmul.f32 %v3422_v41, %v1185_v0 }
 0x245   : > { %v1378_v54 = vmul.f32 %v1346_v42, %v1314_v27 }
 0x246   : > { %v1281_v1 = vsub.f32 2.0, %v1249_v31  ;;  %v1384_v33 = vpop.xlane.xlu1 %1383 }
 0x247   : > { %v2931_v60 = vperm.slane %v1384_v33, %v5013_v57 }
 0x248   : > { %v1313_v15 = vmul.f32 %v3422_v41, %v1281_v1  ;;  %v1382_v19 = vpop.xlane.xlu2 %1381 }
 0x249   : > { %1441 = vadd.xlane.f32.xlu2 %v1378_v54  ;;  %v1380_v29 = vpop.xlane.xlu0 %1379  ;;  %v2927_v50 = vperm.slane %v1382_v19, %v5005_v48 }
 0x24a   : > { %v1377_v20 = vmul.f32 %v1345_v6, %v1313_v15  ;;  %v2925_v49 = vperm.slane %v1380_v29, %v5008_v14 }
 0x24c   : > { %1439 = vadd.xlane.f32.xlu0 %v1377_v20  ;;  %v2929_v23 = vsel %vm2928_vm10, %v2927_v50, %v2925_v49 }
 0x24d   : > { %v2933_v59 = vsel %vm2932_vm11, %v2931_v60, %v2929_v23 }
 0x24e   : > { %v1390_v40 = vpop.xlane.xlu1 %1389 }
 0x24f   : > { %v2939_v4 = vperm.slane %v1390_v40, %v5005_v48 }
 0x250   : > { %v1388_v5 = vpop.xlane.xlu2 %1387 }
 0x251   : > { %v1386_v2 = vpop.xlane.xlu0 %1385  ;;  %v2938_v55 = vperm.slane %v1388_v5, %v5008_v14 }
 0x252   : > { %v2935_v13 = vperm.slane %v1386_v2, %v5018_v16 }
 0x253   : > { %v2940_v38 = vsel %vm2928_vm10, %v2939_v4, %v2938_v55 }
 0x254   : > { %v2937_v22 = vsel %vm2936_vm12, %v2935_v13, %v2933_v59 }
 0x258   : > { %v1394_v28 = vpop.xlane.xlu2 %1393  ;;  %v1396_v24 = vpop.xlane.xlu1 %1395 }
 0x259   : > { %1457 = vperm.xlu1 %3293, %v6344_v47   ;;  %v2943_v12 = vperm.slane %v1394_v28, %v5018_v16  ;;  %v2945_v39 = vperm.slane %v1396_v24, %v5008_v14 }
 0x260   : > { %v1392_v35 = vpop.xlane.xlu0 %1391  ;;  %1462 = vperm.xlu0 %3292, %v6347_v32  }
 0x261   : > { %v2941_v61 = vperm.slane %v1392_v35, %v5013_v57  ;;  %1565 = vperm.xlu1 %3293, %v6345_v25   ;;  %1467 = vperm.xlu2 %3294, %v6346_v44  }
 0x263   : > { %v2942_v34 = vsel %vm2932_vm11, %v2941_v61, %v2940_v38 }
 0x264   : > { %v2944_v43 = vsel %vm2936_vm12, %v2943_v12, %v2942_v34 }
 0x265   : > { %v2987_v53 = vsel %vm2877_vm3, %v2944_v43, %v2937_v22  ;;  %v1402_v17 = vpop.xlane.xlu1 %1401 }
 0x266   : > { %v2950_v10 = vperm.slane %v1402_v17, %v5018_v16 }
 0x268   : > { %v1400_v62 = vpop.xlane.xlu2 %1399  ;;  %1472 = vperm.xlu0 %3292, %v6350_v21  }
 0x269   : > { %1580 = vperm.xlu1 %3293, %v6348_v36   ;;  %1570 = vperm.xlu2 %3294, %v6349_v9   ;;  %v1398_v26 = vpop.xlane.xlu0 %1397  ;;  %v2948_v18 = vperm.slane %v1400_v62, %v5013_v57 }
 0x26a   : > { %v2946_v3 = vperm.slane %v1398_v26, %v5005_v48 }
 0x26c   : > { %v2947_v0 = vsel %vm2928_vm10, %v2946_v3, %v2945_v39 }
 0x26d   : > { %v2949_v51 = vsel %vm2932_vm11, %v2948_v18, %v2947_v0 }
 0x26e   : > { %v2951_v30 = vsel %vm2936_vm12, %v2950_v10, %v2949_v51 }
 0x26f   : > { %v2988_v8 = vsel %vm2879_vm4, %v2951_v30, %v2987_v53 }
 0x270   : > { %1575 = vperm.xlu0 %3292, %v6351_v37  }
 0x274   : > { %v1408_v58 = vpop.xlane.xlu1 %1407 }
 0x275   : > { %v1406_v46 = vpop.xlane.xlu2 %1405  ;;  %v2955_v11 = vperm.slane %v1408_v58, %v5013_v57 }
 0x276   : > { %v2953_v45 = vperm.slane %v1406_v46, %v5005_v48 }
 0x277   : > { %v1404_v56 = vpop.xlane.xlu0 %1403 }
 0x278   : > { %v2952_v63 = vperm.slane %v1404_v56, %v5008_v14 }
 0x27a   : > { %v2954_v41 = vsel %vm2928_vm10, %v2953_v45, %v2952_v63 }
 0x27b   : > { %v2956_v27 = vsel %vm2932_vm11, %v2955_v11, %v2954_v41 }
 0x27f   : > { %v1414_v42 = vpop.xlane.xlu1 %1413 }
 0x280   : > { %v2960_v54 = vperm.slane %v1414_v42, %v5005_v48 }
 0x282   : > { %v1412_v31 = vpop.xlane.xlu2 %1411 }
 0x283   : > { %v2959_v1 = vperm.slane %v1412_v31, %v5008_v14 }
 0x284   : > { %v1410_v15 = vpop.xlane.xlu0 %1409 }
 0x285   : > { %v2957_v6 = vperm.slane %v1410_v15, %v5018_v16  ;;  %v2961_v33 = vsel %vm2928_vm10, %v2960_v54, %v2959_v1 }
 0x287   : > { %v2958_v19 = vsel %vm2936_vm12, %v2957_v6, %v2956_v27  ;;  %v5128_v6 = vstv %s95_s27 }
 0x288   : > { %v2989_v29 = vsel %vm2881_vm5, %v2958_v19, %v2988_v8 }
 0x28e   : > { %v1420_v5 = vpop.xlane.xlu1 %1419 }
 0x28f   : > { %v1416_v20 = vpop.xlane.xlu0 %1415  ;;  %v2966_v13 = vperm.slane %v1420_v5, %v5008_v14 }
 0x290   : > { %v2962_v50 = vperm.slane %v1416_v20, %v5013_v57 }
 0x291   : > { %v1418_v49 = vpop.xlane.xlu2 %1417 }
 0x292   : > { %v2964_v23 = vperm.slane %v1418_v49, %v5018_v16  ;;  %v2963_v60 = vsel %vm2932_vm11, %v2962_v50, %v2961_v33 }
 0x294   : > { %v2965_v40 = vsel %vm2936_vm12, %v2964_v23, %v2963_v60 }
 0x295   : > { %v2990_v2 = vsel %vm2883_vm6, %v2965_v40, %v2989_v29 }
 0x296   : > { %v1426_v55 = vpop.xlane.xlu1 %1425 }
 0x297   : > { %v2971_v47 = vperm.slane %v1426_v55, %v5018_v16 }
 0x299   : > { %v1424_v4 = vpop.xlane.xlu2 %1423 }
 0x29a   : > { %v2969_v22 = vperm.slane %v1424_v4, %v5013_v57 }
 0x29f   : > { %v1422_v59 = vpop.xlane.xlu0 %1421 }
 0x2a0   : > { %v2967_v38 = vperm.slane %v1422_v59, %v5005_v48 }
 0x2a2   : > { %v2968_v28 = vsel %vm2928_vm10, %v2967_v38, %v2966_v13 }
 0x2a3   : > { %v2970_v24 = vsel %vm2932_vm11, %v2969_v22, %v2968_v28 }
 0x2a4   : > { %v2972_v35 = vsel %vm2936_vm12, %v2971_v47, %v2970_v24  ;;  %v1432_v25 = vpop.xlane.xlu1 %1431 }
 0x2a5   : > { %v2991_v61 = vsel %vm2885_vm7, %v2972_v35, %v2990_v2  ;;  %v2976_v43 = vperm.slane %v1432_v25, %v5013_v57 }
 0x2a9   : > { %v1430_v44 = vpop.xlane.xlu2 %1429 }
 0x2aa   : > { %v2974_v32 = vperm.slane %v1430_v44, %v5005_v48 }
 0x2ac   : > { %v1428_v12 = vpop.xlane.xlu0 %1427 }
 0x2ad   : > { %v2973_v34 = vperm.slane %v1428_v12, %v5008_v14 }
 0x2af   : > { %v2975_v53 = vsel %vm2928_vm10, %v2974_v32, %v2973_v34 }
 0x2b0   : > { %v2977_v62 = vsel %vm2932_vm11, %v2976_v43, %v2975_v53 }
 0x2b3   : > { %v1438_v36 = vpop.xlane.xlu1 %1437 }
 0x2b4   : > { %v1436_v9 = vpop.xlane.xlu2 %1435  ;;  %v2981_v17 = vperm.slane %v1438_v36, %v5005_v48 }
 0x2b5   : > { %v2980_v26 = vperm.slane %v1436_v9, %v5008_v14  ;;  %v1434_v21 = vpop.xlane.xlu0 %1433 }
 0x2b6   : > { %v2978_v39 = vperm.slane %v1434_v21, %v5018_v16 }
 0x2b7   : > { %v2982_v3 = vsel %vm2928_vm10, %v2981_v17, %v2980_v26  ;;  %vm3138_vm10 = vcmask 982912  }
 0x2b8   : > { %v2979_v18 = vsel %vm2936_vm12, %v2978_v39, %v2977_v62 }
 0x2b9   : > { %v2992_v10 = vsel %vm2887_vm8, %v2979_v18, %v2991_v61 }
 0x2bc   : > { %v1442_v0 = vpop.xlane.xlu2 %1441 }
 0x2bd   : > { %v2985_v8 = vperm.slane %v1442_v0, %v5018_v16  ;;  %v5104_v16 = vld [vmem:[%s1443_s13] sm:$0xff]  ;;  %s3213_s13 = sshll.u32 (%p100_p0), %s3601_s12, 4  ;;  %s3214_s13 = int_to_ptr.vmem [resolvable:$true] %s3213_s13 }
 0x2be   : > { %v5112_v63 = vperm.slane %v5104_v16, 0  ;;  %v1448_v49 = vrot.slane %v5104_v16, 1 }
 0x2bf   : > { %v1440_v51 = vpop.xlane.xlu0 %1439 }
 0x2c0   : > { %v2983_v30 = vperm.slane %v1440_v51, %v5013_v57  ;;  %v5102_v57 = vld [vmem:[%s1445_s1] sm:$0xff]  ;;  %v5148_v55 = vperm.slane %v1448_v49, 0 }
 0x2c1   : > { %v1556_v23 = vrot.slane %v5102_v57, 1 }
 0x2c2   : > { %v2984_v48 = vsel %vm2932_vm11, %v2983_v30, %v2982_v3  ;;  %vm3142_vm11 = vcmask 1048512  }
 0x2c3   : > { %v2986_v14 = vsel %vm2936_vm12, %v2985_v8, %v2984_v48  ;;  %v5154_v38 = vperm.slane %v1556_v23, 0 }
 0x2c4   : > { %v2993_v37 = vsel %vm2889_vm9, %v2986_v14, %v2992_v10  ;;  %v5090_v58 = vpop.permute.xlu2 %1467 }
 0x2c5   : > { %v5088_v46 = vsel %vm3201_vm13, %v4501_v52, %v2993_v37  ;;  %v5107_v52 = vperm.slane %v5102_v57, 0  ;;  %v1497_v62 = vsub.f32 %v5090_v58, %v5148_v55  ;;  %v1493_v39 = vsub.f32 %v5090_v58, %v5112_v63 }
 0x2c7   : > { %v1529_v51 = vand.u32 2147483647, %v1497_v62 }
 0x2cb   : > { %v5092_v56 = vpop.permute.xlu1 %1457 }
 0x2cc   : > { %v5109_v45 = vpop.permute.xlu2 %1570  ;;  %v1491_v11 = vsub.f32 %v5092_v56, %v5112_v63  ;;  %v1495_v24 = vsub.f32 %v5092_v56, %v5148_v55 }
 0x2cd   : > { %v1600_v27 = vsub.f32 %v5109_v45, %v5107_v52 }
 0x2ce   : > { %v1523_v1 = vand.u32 2147483647, %v1491_v11  ;;  %v1527_v32 = vand.u32 2147483647, %v1495_v24 }
 0x2cf   : > { %v1632_v19 = vand.u32 2147483647, %v1600_v27 }
 0x2d2   : > { %v5120_v42 = vpop.permute.xlu0 %1462 }
 0x2d3   : > { %v5116_v41 = vpop.permute.xlu1 %1565  ;;  %v1492_v54 = vsub.f32 %v5120_v42, %v5112_v63 }
 0x2d4   : > { %v1599_v31 = vsub.f32 %v5116_v41, %v5107_v52  ;;  %v1603_v44 = vsub.f32 %v5116_v41, %v5154_v38 }
 0x2d5   : > { %v1524_v33 = vand.u32 2147483647, %v1492_v54 }
 0x2d6   : > { %v1631_v15 = vand.u32 2147483647, %v1599_v31  ;;  %v1635_v53 = vand.u32 2147483647, %v1603_v44  ;;  %v1449_v31 = vrot.slane %v5104_v16, 2 }
 0x2d7   : > { %v5132_v20 = vadd.f32 %v1632_v19, %v1524_v33 }
 0x2d8   : > { %v5130_v29 = vadd.f32 %v1631_v15, %v1523_v1  ;;  %v5172_v17 = vadd.f32 %v1635_v53, %v1527_v32  ;;  %v1525_v15 = vand.u32 2147483647, %v1493_v39 }
 0x2d9   : > { %v1697_v40 = vsub.f32 %v5128_v6, %v5132_v20  ;;  %v1761_v28 = vadd.f32 1.0, %v5132_v20 }
 0x2da   : > { %v1696_v50 = vsub.f32 %v5128_v6, %v5130_v29  ;;  %v5142_v5 = vpop.permute.xlu0 %1472  ;;  %v1760_v22 = vadd.f32 1.0, %v5130_v29  ;;  %v1700_v0 = vsub.f32 %v5128_v6, %v5172_v17  ;;  %v1764_v1 = vadd.f32 1.0, %v5172_v17 }
 0x2db   : > { %v5138_v60 = vpop.permute.xlu1 %1580  ;;  %v5150_v59 = vand.u32 2147483647, %v1697_v40  ;;  %v1494_v13 = vsub.f32 %v5142_v5, %v5112_v63  ;;  %v1498_v3 = vsub.f32 %v5142_v5, %v5148_v55 }
 0x2dc   : > { %v5144_v2 = vand.u32 2147483647, %v1696_v50  ;;  %v1602_v4 = vsub.f32 %v5138_v60, %v5107_v52  ;;  %v1606_v18 = vsub.f32 %v5138_v60, %v5154_v38  ;;  %v5194_v11 = vand.u32 2147483647, %v1700_v0 }
 0x2dd   : > { %v1793_v35 = vadd.f32 1.0, %v5150_v59  ;;  %v1526_v61 = vand.u32 2147483647, %v1494_v13  ;;  %v1985_v21 = vsub.f32 %v5150_v59, %v5132_v20  ;;  %v1530_v14 = vand.u32 2147483647, %v1498_v3 }
 0x2de   : > { %v1792_v47 = vadd.f32 1.0, %v5144_v2  ;;  %v1634_v25 = vand.u32 2147483647, %v1602_v4  ;;  %v1984_v36 = vsub.f32 %v5144_v2, %v5130_v29  ;;  %v1638_v37 = vand.u32 2147483647, %v1606_v18 }
 0x2df   : > { %v1825_v34 = vmul.f32 %v1793_v35, %v1761_v28  ;;  %v1796_v49 = vadd.f32 1.0, %v5194_v11  ;;  %v5214_v35 = vperm.slane %v1449_v31, 0 }
 0x2e0   : > { %v1824_v12 = vmul.f32 %v1792_v47, %v1760_v22  ;;  %v5164_v43 = vadd.f32 %v1634_v25, %v1526_v61  ;;  %v5198_v19 = vadd.f32 %v1638_v37, %v1530_v14  ;;  %v1557_v22 = vrot.slane %v5102_v57, 2 }
 0x2e1   : > { %v1828_v13 = vmul.f32 %v1796_v49, %v1764_v1 }
 0x2e2   : > { %3423 = vrcp.f32 %v1824_v12  ;;  %v1699_v9 = vsub.f32 %v5128_v6, %v5164_v43  ;;  %v5174_v26 = vpop.permute.xlu0 %1575  ;;  %v1763_v8 = vadd.f32 1.0, %v5164_v43  ;;  %v1703_v4 = vsub.f32 %v5128_v6, %v5198_v19 }
 0x2e3   : > { %3425 = vrcp.f32 %v1825_v34  ;;  %v1605_v30 = vsub.f32 %v5174_v26, %v5154_v38  ;;  %v1601_v48 = vsub.f32 %v5174_v26, %v5107_v52  ;;  %v1767_v44 = vadd.f32 1.0, %v5198_v19 }
 0x2e4   : > { %v5184_v10 = vand.u32 2147483647, %v1699_v9  ;;  %v5216_v25 = vand.u32 2147483647, %v1703_v4  ;;  %v5227_v39 = vperm.slane %v1557_v22, 0 }
 0x2e5   : > { %v1637_v27 = vand.u32 2147483647, %v1605_v30  ;;  %v1633_v33 = vand.u32 2147483647, %v1601_v48  ;;  %v1988_v30 = vsub.f32 %v5194_v11, %v5172_v17  ;;  %v1501_v17 = vsub.f32 %v5090_v58, %v5214_v35 }
 0x2e6   : > { %v1795_v63 = vadd.f32 1.0, %v5184_v10  ;;  %v1987_v52 = vsub.f32 %v5184_v10, %v5164_v43  ;;  %v1500_v43 = vsub.f32 %v5120_v42, %v5214_v35  ;;  %v1799_v9 = vadd.f32 1.0, %v5216_v25 }
 0x2e7   : > { %v5203_v40 = vadd.f32 %v1637_v27, %v1529_v51  ;;  %v5205_v2 = vadd.f32 %v1633_v33, %v1525_v15  ;;  %v1608_v48 = vsub.f32 %v5109_v45, %v5227_v39  ;;  %v1991_v33 = vsub.f32 %v5216_v25, %v5198_v19 }
 0x2e8   : > { %v3424_v54 = vpop.eup %3423  ;;  %v1827_v50 = vmul.f32 %v1795_v63, %v1763_v8  ;;  %v1831_v8 = vmul.f32 %v1799_v9, %v1767_v44  ;;  %v1496_v63 = vsub.f32 %v5120_v42, %v5148_v55  ;;  %v1609_v49 = vsub.f32 %v5174_v26, %v5227_v39 }
 0x2e9   : > { %v3426_v29 = vpop.eup %3425  ;;  %v1888_v20 = vmul.f32 %v3424_v54, %v1824_v12  ;;  %v1702_v28 = vsub.f32 %v5128_v6, %v5203_v40  ;;  %v1698_v24 = vsub.f32 %v5128_v6, %v5205_v2  ;;  %v1766_v62 = vadd.f32 1.0, %v5203_v40 }
 0x2ea   : > { %v1889_v23 = vmul.f32 %v3426_v29, %v1825_v34  ;;  %3427 = vrcp.f32 %v1827_v50  ;;  %v1762_v10 = vadd.f32 1.0, %v5205_v2  ;;  %v1640_v31 = vand.u32 2147483647, %v1608_v48 }
 0x2eb   : > { %v1920_v59 = vsub.f32 2.0, %v1888_v20  ;;  %3429 = vrcp.f32 %v1828_v13  ;;  %v5219_v32 = vand.u32 2147483647, %v1702_v28  ;;  %v5221_v34 = vand.u32 2147483647, %v1698_v24 }
 0x2ec   : > { %v1921_v47 = vsub.f32 2.0, %v1889_v23  ;;  %3431 = vrcp.f32 %v1831_v8  ;;  %v1528_v15 = vand.u32 2147483647, %v1496_v63  ;;  %v1641_v28 = vand.u32 2147483647, %v1609_v49 }
 0x2ed   : > { %v1952_v61 = vmul.f32 %v3424_v54, %v1920_v59  ;;  %v1798_v18 = vadd.f32 1.0, %v5219_v32  ;;  %v1794_v0 = vadd.f32 1.0, %v5221_v34  ;;  %v1604_v54 = vsub.f32 %v5109_v45, %v5154_v38 }
 0x2ee   : > { %v1953_v12 = vmul.f32 %v3426_v29, %v1921_v47  ;;  %v1450_v38 = vrot.slane %v5104_v16, 3  ;;  %v1990_v23 = vsub.f32 %v5219_v32, %v5203_v40  ;;  %v1986_v4 = vsub.f32 %v5221_v34, %v5205_v2 }
 0x2ef   : > { %v2016_v53 = vmul.f32 %v1984_v36, %v1952_v61  ;;  %v1532_v36 = vand.u32 2147483647, %v1500_v43  ;;  %v1830_v37 = vmul.f32 %v1798_v18, %v1766_v62  ;;  %v1636_v55 = vand.u32 2147483647, %v1604_v54 }
 0x2f0   : > { %v2017_v3 = vmul.f32 %v1985_v21, %v1953_v12  ;;  %v3428_v51 = vpop.eup %3427  ;;  %v1826_v21 = vmul.f32 %v1794_v0, %v1762_v10  ;;  %v1533_v47 = vand.u32 2147483647, %v1501_v17  ;;  %v1558_v44 = vrot.slane %v5102_v57, 3 }
 0x2f1   : > { %2048 = vadd.xlane.f32.xlu2 %v2016_v53  ;;  %v1891_v14 = vmul.f32 %v3428_v51, %v1827_v50  ;;  %v3430_v27 = vpop.eup %3429  ;;  %3433 = vrcp.f32 %v1830_v37  ;;  %v5244_v29 = vadd.f32 %v1640_v31, %v1532_v36  ;;  %v5255_v19 = vadd.f32 %v1636_v55, %v1528_v15 }
 0x2f2   : > { %2050 = vadd.xlane.f32.xlu0 %v2017_v3  ;;  %v1892_v1 = vmul.f32 %v3430_v27, %v1828_v13  ;;  %3435 = vrcp.f32 %v1826_v21  ;;  %v3432_v24 = vpop.eup %3431  ;;  %v5263_v34 = vadd.f32 %v1641_v28, %v1533_v47  ;;  %v5276_v48 = vperm.slane %v1558_v44, 0 }
 0x2f3   : > { %v1923_v11 = vsub.f32 2.0, %v1891_v14  ;;  %v1705_v59 = vsub.f32 %v5128_v6, %v5244_v29  ;;  %v1769_v25 = vadd.f32 1.0, %v5244_v29  ;;  %v1701_v40 = vsub.f32 %v5128_v6, %v5255_v19 }
 0x2f4   : > { %v1924_v50 = vsub.f32 2.0, %v1892_v1  ;;  %v1895_v32 = vmul.f32 %v3432_v24, %v1831_v8  ;;  %v1765_v3 = vadd.f32 1.0, %v5255_v19  ;;  %v1706_v0 = vsub.f32 %v5128_v6, %v5263_v34 }
 0x2f5   : > { %v1955_v20 = vmul.f32 %v3428_v51, %v1923_v11  ;;  %v5257_v61 = vand.u32 2147483647, %v1705_v59  ;;  %v5268_v9 = vand.u32 2147483647, %v1701_v40  ;;  %v1611_v54 = vsub.f32 %v5116_v41, %v5276_v48 }
 0x2f6   : > { %v1956_v22 = vmul.f32 %v3430_v27, %v1924_v50  ;;  %v1927_v10 = vsub.f32 2.0, %v1895_v32  ;;  %v5278_v63 = vand.u32 2147483647, %v1706_v0  ;;  %v1770_v27 = vadd.f32 1.0, %v5263_v34 }
 0x2f7   : > { %v2019_v13 = vmul.f32 %v1987_v52, %v1955_v20  ;;  %v3434_v2 = vpop.eup %3433  ;;  %v5265_v52 = vperm.slane %v1450_v38, 0  ;;  %v1801_v62 = vadd.f32 1.0, %v5257_v61  ;;  %v1797_v36 = vadd.f32 1.0, %v5268_v9 }
 0x2f8   : > { %v2020_v12 = vmul.f32 %v1988_v30, %v1956_v22  ;;  %v3436_v43 = vpop.eup %3435  ;;  %v1894_v53 = vmul.f32 %v3434_v2, %v1830_v37  ;;  %v1959_v37 = vmul.f32 %v3432_v24, %v1927_v10  ;;  %v1802_v1 = vadd.f32 1.0, %v5278_v63 }
 0x2f9   : > { %2054 = vadd.xlane.f32.xlu2 %v2019_v13  ;;  %v1890_v18 = vmul.f32 %v3436_v43, %v1826_v21  ;;  %v1503_v51 = vsub.f32 %v5092_v56, %v5265_v52  ;;  %v1833_v8 = vmul.f32 %v1801_v62, %v1769_v25  ;;  %v1829_v31 = vmul.f32 %v1797_v36, %v1765_v3 }
 0x2fa   : > { %2056 = vadd.xlane.f32.xlu0 %v2020_v12  ;;  %v1926_v30 = vsub.f32 2.0, %v1894_v53  ;;  %v2023_v11 = vmul.f32 %v1991_v33, %v1959_v37  ;;  %v1643_v20 = vand.u32 2147483647, %v1611_v54  ;;  %v1499_v50 = vsub.f32 %v5092_v56, %v5214_v35 }
 0x2fb   : > { %v1922_v14 = vsub.f32 2.0, %v1890_v18  ;;  %3437 = vrcp.f32 %v1833_v8  ;;  %v1535_v15 = vand.u32 2147483647, %v1503_v51  ;;  %v1834_v38 = vmul.f32 %v1802_v1, %v1770_v27 }
 0x2fc   : > { %v1958_v21 = vmul.f32 %v3434_v2, %v1926_v30  ;;  %3439 = vrcp.f32 %v1829_v31  ;;  %v1607_v59 = vsub.f32 %v5116_v41, %v5227_v39  ;;  %v1504_v13 = vsub.f32 %v5120_v42, %v5265_v52 }
 0x2fd   : > { %v1954_v17 = vmul.f32 %v3436_v43, %v1922_v14  ;;  %v5290_v22 = vadd.f32 %v1643_v20, %v1535_v15  ;;  %v1531_v33 = vand.u32 2147483647, %v1499_v50  ;;  %v1506_v47 = vsub.f32 %v5142_v5, %v5265_v52 }
 0x2fe   : > { %v2022_v55 = vmul.f32 %v1990_v23, %v1958_v21  ;;  %v1612_v23 = vsub.f32 %v5109_v45, %v5276_v48  ;;  %3441 = vrcp.f32 %v1834_v38  ;;  %v1536_v28 = vand.u32 2147483647, %v1504_v13 }
 0x2ff   : > { %v2018_v49 = vmul.f32 %v1986_v4, %v1954_v17  ;;  %v1639_v4 = vand.u32 2147483647, %v1607_v59  ;;  %v1614_v24 = vsub.f32 %v5138_v60, %v5276_v48  ;;  %v1993_v40 = vsub.f32 %v5257_v61, %v5244_v29 }
 0x300   : > { %v1989_v44 = vsub.f32 %v5268_v9, %v5255_v19  ;;  %v1708_v2 = vsub.f32 %v5128_v6, %v5290_v22  ;;  %v1644_v12 = vand.u32 2147483647, %v1612_v23  ;;  %v1994_v43 = vsub.f32 %v5278_v63, %v5263_v34 }
 0x301   : > { %2060 = vadd.xlane.f32.xlu2 %v2022_v55  ;;  %2052 = vadd.xlane.f32.xlu1 %v2018_v49  ;;  %v3438_v25 = vpop.eup %3437  ;;  %v5306_v53 = vadd.f32 %v1639_v4, %v1531_v33  ;;  %v1538_v62 = vand.u32 2147483647, %v1506_v47  ;;  %v1772_v10 = vadd.f32 1.0, %v5290_v22  ;;  %v1646_v61 = vand.u32 2147483647, %v1614_v24 }
 0x302   : > { %2062 = vadd.xlane.f32.xlu0 %v2023_v11  ;;  %v1897_v32 = vmul.f32 %v3438_v25, %v1833_v8  ;;  %v3440_v3 = vpop.eup %3439  ;;  %v5308_v18 = vand.u32 2147483647, %v1708_v2  ;;  %v5311_v29 = vadd.f32 %v1644_v12, %v1536_v28  ;;  %v1502_v51 = vsub.f32 %v5142_v5, %v5214_v35 }
 0x303   : > { %v1893_v9 = vmul.f32 %v3440_v3, %v1829_v31  ;;  %v1704_v0 = vsub.f32 %v5128_v6, %v5306_v53  ;;  %v1610_v8 = vsub.f32 %v5138_v60, %v5227_v39  ;;  %v1451_v36 = vrot.slane %v5104_v16, 4 }
 0x304   : > { %v1929_v19 = vsub.f32 2.0, %v1897_v32  ;;  %v1804_v34 = vadd.f32 1.0, %v5308_v18  ;;  %v1709_v30 = vsub.f32 %v5128_v6, %v5311_v29  ;;  %v3442_v14 = vpop.eup %3441  ;;  %v5325_v21 = vadd.f32 %v1646_v61, %v1538_v62 }
 0x305   : > { %v1925_v63 = vsub.f32 2.0, %v1893_v9  ;;  %v5323_v27 = vand.u32 2147483647, %v1704_v0  ;;  %v1898_v31 = vmul.f32 %v3442_v14, %v1834_v38  ;;  %v1768_v35 = vadd.f32 1.0, %v5306_v53 }
 0x306   : > { %v1961_v37 = vmul.f32 %v3438_v25, %v1929_v19  ;;  %v1836_v54 = vmul.f32 %v1804_v34, %v1772_v10  ;;  %v5328_v17 = vand.u32 2147483647, %v1709_v30  ;;  %v1773_v39 = vadd.f32 1.0, %v5311_v29 }
 0x307   : > { %v1957_v1 = vmul.f32 %v3440_v3, %v1925_v63  ;;  %v1800_v15 = vadd.f32 1.0, %v5323_v27  ;;  %v1930_v55 = vsub.f32 2.0, %v1898_v31  ;;  %v1534_v50 = vand.u32 2147483647, %v1502_v51 }
 0x308   : > { %v2025_v11 = vmul.f32 %v1993_v40, %v1961_v37  ;;  %3443 = vrcp.f32 %v1836_v54  ;;  %v1805_v20 = vadd.f32 1.0, %v5328_v17  ;;  %v1996_v38 = vsub.f32 %v5308_v18, %v5290_v22 }
 0x309   : > { %v2021_v49 = vmul.f32 %v1989_v44, %v1957_v1  ;;  %v1832_v59 = vmul.f32 %v1800_v15, %v1768_v35  ;;  %v1711_v13 = vsub.f32 %v5128_v6, %v5325_v21  ;;  %v1962_v33 = vmul.f32 %v3442_v14, %v1930_v55 }
 0x30a   : > { %2066 = vadd.xlane.f32.xlu2 %v2025_v11  ;;  %v1837_v23 = vmul.f32 %v1805_v20, %v1773_v39  ;;  %v1642_v47 = vand.u32 2147483647, %v1610_v8  ;;  %v5337_v4 = vperm.slane %v1451_v36, 0  ;;  %v1992_v28 = vsub.f32 %v5323_v27, %v5306_v53 }
 0x30b   : > { %2058 = vadd.xlane.f32.xlu1 %v2021_v49  ;;  %3445 = vrcp.f32 %v1832_v59  ;;  %v5341_v24 = vand.u32 2147483647, %v1711_v13  ;;  %v1559_v25 = vrot.slane %v5102_v57, 4  ;;  %v2026_v40 = vmul.f32 %v1994_v43, %v1962_v33 }
 0x30c   : > { %3447 = vrcp.f32 %v1837_v23  ;;  %v5344_v22 = vadd.f32 %v1642_v47, %v1534_v50  ;;  %v1507_v44 = vsub.f32 %v5092_v56, %v5337_v4  ;;  %v1775_v2 = vadd.f32 1.0, %v5325_v21 }
 0x30d   : > { %v1807_v12 = vadd.f32 1.0, %v5341_v24  ;;  %v5350_v32 = vperm.slane %v1559_v25, 0  ;;  %v1509_v53 = vsub.f32 %v5090_v58, %v5337_v4  ;;  %2068 = vadd.xlane.f32.xlu0 %v2026_v40  ;;  %v1997_v43 = vsub.f32 %v5328_v17, %v5311_v29 }
 0x30e   : > { %v3444_v62 = vpop.eup %3443  ;;  %v1999_v3 = vsub.f32 %v5341_v24, %v5325_v21  ;;  %v1707_v18 = vsub.f32 %v5128_v6, %v5344_v22  ;;  %v1505_v10 = vsub.f32 %v5090_v58, %v5265_v52  ;;  %v1771_v9 = vadd.f32 1.0, %v5344_v22 }
 0x30f   : > { %v1900_v61 = vmul.f32 %v3444_v62, %v1836_v54  ;;  %v1839_v19 = vmul.f32 %v1807_v12, %v1775_v2  ;;  %v1615_v0 = vsub.f32 %v5116_v41, %v5350_v32  ;;  %v1539_v34 = vand.u32 2147483647, %v1507_v44 }
 0x310   : > { %v5365_v51 = vand.u32 2147483647, %v1707_v18  ;;  %v1617_v29 = vsub.f32 %v5174_v26, %v5350_v32  ;;  %v1613_v30 = vsub.f32 %v5174_v26, %v5276_v48  ;;  %v1541_v14 = vand.u32 2147483647, %v1509_v53 }
 0x311   : > { %v3446_v8 = vpop.eup %3445  ;;  %v1932_v36 = vsub.f32 2.0, %v1900_v61  ;;  %3449 = vrcp.f32 %v1839_v19  ;;  %v1647_v52 = vand.u32 2147483647, %v1615_v0  ;;  %v1510_v54 = vsub.f32 %v5142_v5, %v5337_v4 }
 0x312   : > { %v3448_v37 = vpop.eup %3447  ;;  %v1896_v63 = vmul.f32 %v3446_v8, %v1832_v59  ;;  %v1803_v27 = vadd.f32 1.0, %v5365_v51  ;;  %v1649_v31 = vand.u32 2147483647, %v1617_v29  ;;  %v1645_v1 = vand.u32 2147483647, %v1613_v30 }
 0x313   : > { %v1964_v35 = vmul.f32 %v3444_v62, %v1932_v36  ;;  %v1901_v17 = vmul.f32 %v3448_v37, %v1837_v23  ;;  %v5374_v11 = vadd.f32 %v1647_v52, %v1539_v34  ;;  %v1537_v55 = vand.u32 2147483647, %v1505_v10 }
 0x314   : > { %v1928_v15 = vsub.f32 2.0, %v1896_v63  ;;  %v1835_v48 = vmul.f32 %v1803_v27, %v1771_v9  ;;  %v5376_v39 = vadd.f32 %v1649_v31, %v1541_v14  ;;  %v1618_v59 = vsub.f32 %v5138_v60, %v5350_v32 }
 0x315   : > { %v2028_v20 = vmul.f32 %v1996_v38, %v1964_v35  ;;  %v1933_v50 = vsub.f32 2.0, %v1901_v17  ;;  %v1712_v49 = vsub.f32 %v5128_v6, %v5374_v11  ;;  %v1542_v23 = vand.u32 2147483647, %v1510_v54 }
 0x316   : > { %v1960_v13 = vmul.f32 %v3446_v8, %v1928_v15  ;;  %3451 = vrcp.f32 %v1835_v48  ;;  %v1714_v33 = vsub.f32 %v5128_v6, %v5376_v39  ;;  %v1776_v38 = vadd.f32 1.0, %v5374_v11 }
 0x317   : > { %v3450_v47 = vpop.eup %3449  ;;  %2072 = vadd.xlane.f32.xlu2 %v2028_v20  ;;  %v1965_v25 = vmul.f32 %v3448_v37, %v1933_v50  ;;  %v5384_v40 = vand.u32 2147483647, %v1712_v49  ;;  %v5387_v44 = vadd.f32 %v1645_v1, %v1537_v55  ;;  %v1452_v62 = vrot.slane %v5104_v16, 5 }
 0x318   : > { %v2024_v2 = vmul.f32 %v1992_v28, %v1960_v13  ;;  %v1903_v12 = vmul.f32 %v3450_v47, %v1839_v19  ;;  %v5389_v53 = vand.u32 2147483647, %v1714_v33  ;;  %v1650_v9 = vand.u32 2147483647, %v1618_v59 }
 0x319   : > { %v2029_v18 = vmul.f32 %v1997_v43, %v1965_v25  ;;  %v1808_v10 = vadd.f32 1.0, %v5384_v40  ;;  %v1710_v61 = vsub.f32 %v5128_v6, %v5387_v44  ;;  %v1995_v34 = vsub.f32 %v5365_v51, %v5344_v22 }
 0x31a   : > { %2064 = vadd.xlane.f32.xlu1 %v2024_v2  ;;  %v1935_v0 = vsub.f32 2.0, %v1903_v12  ;;  %v1778_v29 = vadd.f32 1.0, %v5376_v39  ;;  %v1810_v28 = vadd.f32 1.0, %v5389_v53  ;;  %v5401_v43 = vadd.f32 %v1650_v9, %v1542_v23 }
 0x31b   : > { %2074 = vadd.xlane.f32.xlu0 %v2029_v18  ;;  %v1840_v19 = vmul.f32 %v1808_v10, %v1776_v38  ;;  %v5399_v30 = vand.u32 2147483647, %v1710_v61  ;;  %v5403_v8 = vperm.slane %v1452_v62, 0  ;;  %v1560_v37 = vrot.slane %v5102_v57, 5 }
 0x31c   : > { %v3452_v36 = vpop.eup %3451  ;;  %v1967_v52 = vmul.f32 %v3450_v47, %v1935_v0  ;;  %v1842_v14 = vmul.f32 %v1810_v28, %v1778_v29  ;;  %v1508_v22 = vsub.f32 %v5120_v42, %v5337_v4  ;;  %v1774_v63 = vadd.f32 1.0, %v5387_v44 }
 0x31d   : > { %v1899_v51 = vmul.f32 %v3452_v36, %v1835_v48  ;;  %3453 = vrcp.f32 %v1840_v19  ;;  %v1806_v27 = vadd.f32 1.0, %v5399_v30  ;;  %v2000_v54 = vsub.f32 %v5384_v40, %v5374_v11 }
 0x31e   : > { %v2031_v31 = vmul.f32 %v1999_v3, %v1967_v52  ;;  %3455 = vrcp.f32 %v1842_v14  ;;  %v1715_v35 = vsub.f32 %v5128_v6, %v5401_v43  ;;  %v1512_v4 = vsub.f32 %v5120_v42, %v5403_v8 }
 0x31f   : > { %v1931_v17 = vsub.f32 2.0, %v1899_v51  ;;  %v1838_v1 = vmul.f32 %v1806_v27, %v1774_v63  ;;  %v5419_v15 = vperm.slane %v1560_v37, 0  ;;  %v1540_v55 = vand.u32 2147483647, %v1508_v22 }
 0x320   : > { %2078 = vadd.xlane.f32.xlu2 %v2031_v31  ;;  %v5421_v48 = vand.u32 2147483647, %v1715_v35  ;;  %v1616_v21 = vsub.f32 %v5109_v45, %v5350_v32  ;;  %v1513_v24 = vsub.f32 %v5090_v58, %v5403_v8  ;;  %v1544_v11 = vand.u32 2147483647, %v1512_v4 }
 0x321   : > { %v1963_v3 = vmul.f32 %v3452_v36, %v1931_v17  ;;  %3457 = vrcp.f32 %v1838_v1  ;;  %v1620_v20 = vsub.f32 %v5109_v45, %v5419_v15  ;;  %v2002_v50 = vsub.f32 %v5389_v53, %v5376_v39 }
 0x322   : > { %v1779_v49 = vadd.f32 1.0, %v5401_v43  ;;  %v1811_v59 = vadd.f32 1.0, %v5421_v48  ;;  %v1648_v13 = vand.u32 2147483647, %v1616_v21  ;;  %v1621_v47 = vsub.f32 %v5174_v26, %v5419_v15 }
 0x323   : > { %v3454_v33 = vpop.eup %3453  ;;  %v2027_v23 = vmul.f32 %v1995_v34, %v1963_v3  ;;  %v1652_v32 = vand.u32 2147483647, %v1620_v20  ;;  %v1453_v25 = vrot.slane %v5104_v16, 6  ;;  %v1998_v2 = vsub.f32 %v5399_v30, %v5387_v44 }
 0x324   : > { %v3456_v40 = vpop.eup %3455  ;;  %v1904_v38 = vmul.f32 %v3454_v33, %v1840_v19  ;;  %v1843_v12 = vmul.f32 %v1811_v59, %v1779_v49  ;;  %v5438_v39 = vadd.f32 %v1648_v13, %v1540_v55  ;;  %v1545_v18 = vand.u32 2147483647, %v1513_v24 }
 0x325   : > { %2070 = vadd.xlane.f32.xlu1 %v2027_v23  ;;  %v1906_v53 = vmul.f32 %v3456_v40, %v1842_v14  ;;  %v5440_v62 = vadd.f32 %v1652_v32, %v1544_v11  ;;  %v1653_v10 = vand.u32 2147483647, %v1621_v47  ;;  %v2003_v9 = vsub.f32 %v5421_v48, %v5401_v43 }
 0x326   : > { %v1936_v61 = vsub.f32 2.0, %v1904_v38  ;;  %3459 = vrcp.f32 %v1843_v12  ;;  %v1713_v0 = vsub.f32 %v5128_v6, %v5438_v39  ;;  %v5450_v19 = vperm.slane %v1453_v25, 0 }
 0x327   : > { %v3458_v34 = vpop.eup %3457  ;;  %v1938_v29 = vsub.f32 2.0, %v1906_v53  ;;  %v1717_v44 = vsub.f32 %v5128_v6, %v5440_v62  ;;  %v5448_v28 = vadd.f32 %v1653_v10, %v1545_v18  ;;  %v1561_v14 = vrot.slane %v5102_v57, 6 }
 0x328   : > { %v1968_v30 = vmul.f32 %v3454_v33, %v1936_v61  ;;  %v1902_v36 = vmul.f32 %v3458_v34, %v1838_v1  ;;  %v5452_v52 = vand.u32 2147483647, %v1713_v0  ;;  %v1515_v51 = vsub.f32 %v5092_v56, %v5450_v19 }
 0x329   : > { %v1970_v37 = vmul.f32 %v3456_v40, %v1938_v29  ;;  %v5455_v43 = vand.u32 2147483647, %v1717_v44  ;;  %v1718_v22 = vsub.f32 %v5128_v6, %v5448_v28  ;;  %v1777_v31 = vadd.f32 1.0, %v5438_v39 }
 0x32a   : > { %v2032_v63 = vmul.f32 %v2000_v54, %v1968_v30  ;;  %v1934_v27 = vsub.f32 2.0, %v1902_v36  ;;  %v1809_v35 = vadd.f32 1.0, %v5452_v52  ;;  %v1781_v1 = vadd.f32 1.0, %v5440_v62 }
 0x32b   : > { %v2034_v17 = vmul.f32 %v2002_v50, %v1970_v37  ;;  %v1813_v4 = vadd.f32 1.0, %v5455_v43  ;;  %v5465_v48 = vand.u32 2147483647, %v1718_v22  ;;  %v1782_v3 = vadd.f32 1.0, %v5448_v28 }
 0x32c   : > { %v3460_v55 = vpop.eup %3459  ;;  %2080 = vadd.xlane.f32.xlu0 %v2032_v63  ;;  %v1966_v21 = vmul.f32 %v3458_v34, %v1934_v27  ;;  %v1841_v24 = vmul.f32 %v1809_v35, %v1777_v31  ;;  %v5468_v11 = vperm.slane %v1561_v14, 0  ;;  %v1547_v50 = vand.u32 2147483647, %v1515_v51 }
 0x32d   : > { %2084 = vadd.xlane.f32.xlu2 %v2034_v17  ;;  %v1907_v54 = vmul.f32 %v3460_v55, %v1843_v12  ;;  %v1845_v20 = vmul.f32 %v1813_v4, %v1781_v1  ;;  %v1814_v49 = vadd.f32 1.0, %v5465_v48  ;;  %v1511_v33 = vsub.f32 %v5092_v56, %v5403_v8 }
 0x32e   : > { %v2030_v59 = vmul.f32 %v1998_v2, %v1966_v21  ;;  %3461 = vrcp.f32 %v1841_v24  ;;  %v1623_v13 = vsub.f32 %v5116_v41, %v5468_v11  ;;  %v1619_v47 = vsub.f32 %v5116_v41, %v5419_v15 }
 0x32f   : > { %v1939_v23 = vsub.f32 2.0, %v1907_v54  ;;  %3463 = vrcp.f32 %v1845_v20  ;;  %v1846_v32 = vmul.f32 %v1814_v49, %v1782_v3  ;;  %v1543_v40 = vand.u32 2147483647, %v1511_v33 }
 0x330   : > { %2076 = vadd.xlane.f32.xlu1 %v2030_v59  ;;  %v1655_v25 = vand.u32 2147483647, %v1623_v13  ;;  %v1516_v38 = vsub.f32 %v5120_v42, %v5450_v19  ;;  %v1624_v2 = vsub.f32 %v5109_v45, %v5468_v11  ;;  %v1651_v53 = vand.u32 2147483647, %v1619_v47 }
 0x331   : > { %v1971_v12 = vmul.f32 %v3460_v55, %v1939_v23  ;;  %3465 = vrcp.f32 %v1846_v32  ;;  %v1518_v18 = vsub.f32 %v5142_v5, %v5450_v19  ;;  %v1626_v34 = vsub.f32 %v5138_v60, %v5468_v11 }
 0x332   : > { %v5483_v10 = vadd.f32 %v1655_v25, %v1547_v50  ;;  %v1548_v61 = vand.u32 2147483647, %v1516_v38  ;;  %v1656_v0 = vand.u32 2147483647, %v1624_v2  ;;  %v2001_v44 = vsub.f32 %v5452_v52, %v5438_v39 }
 0x333   : > { %v2035_v29 = vmul.f32 %v2003_v9, %v1971_v12  ;;  %v5489_v30 = vadd.f32 %v1651_v53, %v1543_v40  ;;  %v1550_v36 = vand.u32 2147483647, %v1518_v18  ;;  %v2005_v37 = vsub.f32 %v5455_v43, %v5440_v62 }
 0x334   : > { %v3462_v14 = vpop.eup %3461  ;;  %v1720_v22 = vsub.f32 %v5128_v6, %v5483_v10  ;;  %v5495_v51 = vadd.f32 %v1656_v0, %v1548_v61  ;;  %v1514_v63 = vsub.f32 %v5142_v5, %v5403_v8  ;;  %v2006_v39 = vsub.f32 %v5465_v48, %v5448_v28 }
 0x335   : > { %v3464_v27 = vpop.eup %3463  ;;  %2086 = vadd.xlane.f32.xlu0 %v2035_v29  ;;  %v1905_v9 = vmul.f32 %v3462_v14, %v1841_v24  ;;  %v1716_v52 = vsub.f32 %v5128_v6, %v5489_v30  ;;  %v1658_v31 = vand.u32 2147483647, %v1626_v34  ;;  %v1784_v43 = vadd.f32 1.0, %v5483_v10 }
 0x336   : > { %v1909_v35 = vmul.f32 %v3464_v27, %v1845_v20  ;;  %v5503_v62 = vand.u32 2147483647, %v1720_v22  ;;  %v1721_v17 = vsub.f32 %v5128_v6, %v5495_v51  ;;  %v1780_v55 = vadd.f32 1.0, %v5489_v30 }
 0x337   : > { %v3466_v1 = vpop.eup %3465  ;;  %v1937_v8 = vsub.f32 2.0, %v1905_v9  ;;  %v5508_v4 = vand.u32 2147483647, %v1716_v52  ;;  %v5511_v21 = vadd.f32 %v1658_v31, %v1550_v36  ;;  %v1546_v3 = vand.u32 2147483647, %v1514_v63 }
 0x338   : > { %v1941_v28 = vsub.f32 2.0, %v1909_v35  ;;  %v1910_v48 = vmul.f32 %v3466_v1, %v1846_v32  ;;  %v1816_v24 = vadd.f32 1.0, %v5503_v62  ;;  %v5515_v49 = vand.u32 2147483647, %v1721_v17 }
 0x339   : > { %v1969_v54 = vmul.f32 %v3462_v14, %v1937_v8  ;;  %v1812_v20 = vadd.f32 1.0, %v5508_v4  ;;  %v1622_v50 = vsub.f32 %v5138_v60, %v5419_v15  ;;  %v1723_v23 = vsub.f32 %v5128_v6, %v5511_v21 }
 0x33a   : > { %v1973_v59 = vmul.f32 %v3464_v27, %v1941_v28  ;;  %v1942_v13 = vsub.f32 2.0, %v1910_v48  ;;  %v1848_v33 = vmul.f32 %v1816_v24, %v1784_v43  ;;  %v1785_v32 = vadd.f32 1.0, %v5495_v51 }
 0x33b   : > { %v2033_v47 = vmul.f32 %v2001_v44, %v1969_v54  ;;  %v1844_v25 = vmul.f32 %v1812_v20, %v1780_v55  ;;  %v1817_v40 = vadd.f32 1.0, %v5515_v49  ;;  %v5523_v12 = vand.u32 2147483647, %v1723_v23 }
 0x33c   : > { %v2037_v38 = vmul.f32 %v2005_v37, %v1973_v59  ;;  %v1974_v2 = vmul.f32 %v3466_v1, %v1942_v13  ;;  %3467 = vrcp.f32 %v1848_v33  ;;  %v1654_v53 = vand.u32 2147483647, %v1622_v50 }
 0x33d   : > { %2082 = vadd.xlane.f32.xlu1 %v2033_v47  ;;  %3469 = vrcp.f32 %v1844_v25  ;;  %v1849_v15 = vmul.f32 %v1817_v40, %v1785_v32  ;;  %v1787_v61 = vadd.f32 1.0, %v5511_v21  ;;  %v1819_v0 = vadd.f32 1.0, %v5523_v12 }
 0x33e   : > { %2090 = vadd.xlane.f32.xlu2 %v2037_v38  ;;  %v2038_v18 = vmul.f32 %v2006_v39, %v1974_v2  ;;  %v1454_v34 = vrot.slane %v5104_v16, 7  ;;  %v5528_v29 = vadd.f32 %v1654_v53, %v1546_v3  ;;  %v1562_v44 = vrot.slane %v5102_v57, 7 }
 0x33f   : > { %3471 = vrcp.f32 %v1849_v15  ;;  %v2008_v36 = vsub.f32 %v5503_v62, %v5483_v10  ;;  %v1851_v14 = vmul.f32 %v1819_v0, %v1787_v61  ;;  %v1517_v22 = vsub.f32 %v5090_v58, %v5450_v19 }
 0x340   : > { %2092 = vadd.xlane.f32.xlu0 %v2038_v18  ;;  %v5533_v37 = vperm.slane %v1454_v34, 0  ;;  %v2004_v63 = vsub.f32 %v5508_v4, %v5489_v30  ;;  %v1719_v16 = vsub.f32 %v5128_v6, %v5528_v29  ;;  %v1783_v27 = vadd.f32 1.0, %v5528_v29 }
 0x341   : > { %v5542_v9 = vperm.slane %v1562_v44, 0  ;;  %3473 = vrcp.f32 %v1851_v14  ;;  %v1625_v19 = vsub.f32 %v5174_v26, %v5468_v11  ;;  %v1549_v1 = vand.u32 2147483647, %v1517_v22 }
 0x342   : > { %v3468_v57 = vpop.eup %3467  ;;  %v1519_v10 = vsub.f32 %v5092_v56, %v5533_v37  ;;  %v1521_v39 = vsub.f32 %v5090_v58, %v5533_v37  ;;  %v5550_v31 = vand.u32 2147483647, %v1719_v16 }
 0x343   : > { %v3470_v52 = vpop.eup %3469  ;;  %v1912_v30 = vmul.f32 %v3468_v57, %v1848_v33  ;;  %v1627_v35 = vsub.f32 %v5116_v41, %v5542_v9  ;;  %v1629_v62 = vsub.f32 %v5174_v26, %v5542_v9  ;;  %v1657_v56 = vand.u32 2147483647, %v1625_v19 }
 0x344   : > { %v1908_v43 = vmul.f32 %v3470_v52, %v1844_v25  ;;  %v1551_v17 = vand.u32 2147483647, %v1519_v10  ;;  %v1815_v58 = vadd.f32 1.0, %v5550_v31  ;;  %v1553_v11 = vand.u32 2147483647, %v1521_v39 }
 0x345   : > { %v3472_v8 = vpop.eup %3471  ;;  %v1944_v4 = vsub.f32 2.0, %v1912_v30  ;;  %v1659_v55 = vand.u32 2147483647, %v1627_v35  ;;  %v1661_v24 = vand.u32 2147483647, %v1629_v62  ;;  %v5557_v3 = vadd.f32 %v1657_v56, %v1549_v1 }
 0x346   : > { %v1940_v28 = vsub.f32 2.0, %v1908_v43  ;;  %v1913_v48 = vmul.f32 %v3472_v8, %v1849_v15  ;;  %v2009_v41 = vsub.f32 %v5515_v49, %v5495_v51  ;;  %v1847_v26 = vmul.f32 %v1815_v58, %v1783_v27 }
 0x347   : > { %v1976_v54 = vmul.f32 %v3468_v57, %v1944_v4  ;;  %v5561_v20 = vadd.f32 %v1659_v55, %v1551_v17  ;;  %v3474_v50 = vpop.eup %3473  ;;  %v5563_v33 = vadd.f32 %v1661_v24, %v1553_v11  ;;  %v1722_v23 = vsub.f32 %v5128_v6, %v5557_v3 }
 0x348   : > { %v1972_v59 = vmul.f32 %v3470_v52, %v1940_v28  ;;  %v1945_v13 = vsub.f32 2.0, %v1913_v48  ;;  %v1915_v25 = vmul.f32 %v3474_v50, %v1851_v14  ;;  %3475 = vrcp.f32 %v1847_v26 }
 0x349   : > { %v2040_v47 = vmul.f32 %v2008_v36, %v1976_v54  ;;  %v1724_v32 = vsub.f32 %v5128_v6, %v5561_v20  ;;  %v1726_v51 = vsub.f32 %v5128_v6, %v5563_v33  ;;  %v1522_v49 = vsub.f32 %v5142_v5, %v5533_v37 }
 0x34a   : > { %v2036_v40 = vmul.f32 %v2004_v63, %v1972_v59  ;;  %v1977_v38 = vmul.f32 %v3472_v8, %v1945_v13  ;;  %v1947_v2 = vsub.f32 2.0, %v1915_v25  ;;  %v5575_v53 = vand.u32 2147483647, %v1722_v23 }
 0x34b   : > { %2096 = vadd.xlane.f32.xlu2 %v2040_v47  ;;  %v5573_v15 = vand.u32 2147483647, %v1724_v32  ;;  %v1788_v61 = vadd.f32 1.0, %v5561_v20  ;;  %v1758_v0 = vand.u32 2147483647, %v1726_v51  ;;  %v1786_v36 = vadd.f32 1.0, %v5557_v3 }
 0x34c   : > { %2088 = vadd.xlane.f32.xlu1 %v2036_v40  ;;  %v2041_v18 = vmul.f32 %v2009_v41, %v1977_v38  ;;  %v1979_v34 = vmul.f32 %v3474_v50, %v1947_v2  ;;  %v1818_v14 = vadd.f32 1.0, %v5575_v53  ;;  %v1790_v5 = vadd.f32 1.0, %v5563_v33 }
 0x34d   : > { %v1820_v44 = vadd.f32 1.0, %v5573_v15  ;;  %v1822_v22 = vadd.f32 1.0, %v1758_v0  ;;  %v1554_v63 = vand.u32 2147483647, %v1522_v49  ;;  %v1630_v16 = vsub.f32 %v5138_v60, %v5542_v9 }
 0x34e   : > { %2098 = vadd.xlane.f32.xlu0 %v2041_v18  ;;  %v3476_v27 = vpop.eup %3475  ;;  %v2011_v57 = vsub.f32 %v5523_v12, %v5511_v21  ;;  %v1850_v39 = vmul.f32 %v1818_v14, %v1786_v36  ;;  %v1520_v19 = vsub.f32 %v5120_v42, %v5533_v37  ;;  %v1628_v62 = vsub.f32 %v5109_v45, %v5542_v9 }
 0x34f   : > { %v1852_v10 = vmul.f32 %v1820_v44, %v1788_v61  ;;  %v1911_v52 = vmul.f32 %v3476_v27, %v1847_v26  ;;  %v1854_v30 = vmul.f32 %v1822_v22, %v1790_v5  ;;  %v1662_v35 = vand.u32 2147483647, %v1630_v16 }
 0x350   : > { %v2043_v43 = vmul.f32 %v2011_v57, %v1979_v34  ;;  %v1552_v17 = vand.u32 2147483647, %v1520_v19  ;;  %v1660_v56 = vand.u32 2147483647, %v1628_v62  ;;  %v2007_v12 = vsub.f32 %v5550_v31, %v5528_v29 }
 0x351   : > { %3477 = vrcp.f32 %v1852_v10  ;;  %v1943_v1 = vsub.f32 2.0, %v1911_v52  ;;  %v1694_v60 = vadd.f32 %v1662_v35, %v1554_v63  ;;  %v2012_v59 = vsub.f32 %v5573_v15, %v5561_v20 }
 0x352   : > { %3479 = vrcp.f32 %v1854_v30  ;;  %v1692_v37 = vadd.f32 %v1660_v56, %v1552_v17  ;;  %v2014_v32 = vsub.f32 %v1758_v0, %v5563_v33  ;;  %v2010_v51 = vsub.f32 %v5575_v53, %v5557_v3  ;;  %v6352_v17 = vld [vmem:[#allocation21_spill] sm:$0xff] }
 0x353   : > { %2102 = vadd.xlane.f32.xlu2 %v2043_v43  ;;  %3481 = vrcp.f32 %v1850_v39  ;;  %v1975_v21 = vmul.f32 %v3476_v27, %v1943_v1  ;;  %v1727_v42 = vsub.f32 %v5128_v6, %v1694_v60  ;;  %v1791_v11 = vadd.f32 1.0, %v1694_v60 }
 0x354   : > { %v1725_v45 = vsub.f32 %v5128_v6, %v1692_v37  ;;  %v1789_v41 = vadd.f32 1.0, %v1692_v37  ;;  %v5600_v33 = vadd.s32 4294967232, %v4420_v7  ;;  %v5603_v3 = vadd.s32 4294967224, %v4420_v7 }
 0x355   : > { %v2039_v8 = vmul.f32 %v2007_v12, %v1975_v21  ;;  %v1759_v4 = vand.u32 2147483647, %v1727_v42  ;;  %v5609_v52 = vadd.s32 4294967208, %v4420_v7  ;;  %v6353_v42 = vld [vmem:[#allocation22_spill] sm:$0xff] }
 0x356   : > { %v1757_v48 = vand.u32 2147483647, %v1725_v45 }
 0x357   : > { %v3478_v9 = vpop.eup %3477  ;;  %2094 = vadd.xlane.f32.xlu1 %v2039_v8  ;;  %v1823_v28 = vadd.f32 1.0, %v1759_v4  ;;  %v2015_v44 = vsub.f32 %v1759_v4, %v1694_v60 }
 0x358   : > { %v3480_v58 = vpop.eup %3479  ;;  %v1916_v55 = vmul.f32 %v3478_v9, %v1852_v10  ;;  %v1821_v31 = vadd.f32 1.0, %v1757_v48  ;;  %v2013_v5 = vsub.f32 %v1757_v48, %v1692_v37 }
 0x359   : > { %v3482_v24 = vpop.eup %3481  ;;  %v1918_v54 = vmul.f32 %v3480_v58, %v1854_v30  ;;  %v1855_v29 = vmul.f32 %v1823_v28, %v1791_v11  ;;  %v5612_v30 = vadd.s32 4294967216, %v4420_v7 }
 0x35a   : > { %v1948_v26 = vsub.f32 2.0, %v1916_v55  ;;  %v1914_v50 = vmul.f32 %v3482_v24, %v1850_v39  ;;  %v1853_v47 = vmul.f32 %v1821_v31, %v1789_v41  ;;  %v6356_v41 = vld [vmem:[#allocation36_spill] sm:$0xff]  ;;  %v6357_v31 = vld [vmem:[#allocation23_spill] sm:$0xff] }
 0x35b   : > { %v1950_v13 = vsub.f32 2.0, %v1918_v54  ;;  %3483 = vrcp.f32 %v1855_v29  ;;  %v6355_v54 = vld [vmem:[#allocation20_spill] sm:$0xff] }
 0x35c   : > { %v1980_v23 = vmul.f32 %v3478_v9, %v1948_v26  ;;  %v1946_v6 = vsub.f32 2.0, %v1914_v50  ;;  %3485 = vrcp.f32 %v1853_v47  ;;  %v6354_v9 = vld [vmem:[#allocation37_spill] sm:$0xff] }
 0x35d   : > { %v1982_v25 = vmul.f32 %v3480_v58, %v1950_v13 }
 0x35e   : > { %v2044_v40 = vmul.f32 %v2012_v59, %v1980_v23  ;;  %v1978_v38 = vmul.f32 %v3482_v24, %v1946_v6  ;;  %v6358_v6 = vld [vmem:[#allocation39_spill] sm:$0xff] }
 0x35f   : > { %v2046_v49 = vmul.f32 %v2014_v32, %v1982_v25 }
 0x360   : > { %2104 = vadd.xlane.f32.xlu0 %v2044_v40  ;;  %v2042_v2 = vmul.f32 %v2010_v51, %v1978_v38  ;;  %v6359_v51 = vld [vmem:[#allocation38_spill] sm:$0xff] }
 0x361   : > { %2108 = vadd.xlane.f32.xlu2 %v2046_v49  ;;  %v3484_v18 = vpop.eup %3483 }
 0x362   : > { %2100 = vadd.xlane.f32.xlu1 %v2042_v2  ;;  %v1919_v20 = vmul.f32 %v3484_v18, %v1855_v29  ;;  %v3486_v15 = vpop.eup %3485 }
 0x363   : > { %v1917_v34 = vmul.f32 %v3486_v15, %v1853_v47 }
 0x364   : > { %v1951_v61 = vsub.f32 2.0, %v1919_v20  ;;  %v2049_v0 = vpop.xlane.xlu2 %2048 }
 0x365   : > { %v1949_v14 = vsub.f32 2.0, %v1917_v34  ;;  %v2051_v53 = vpop.xlane.xlu0 %2050  ;;  %v3028_v16 = vperm.slane %v2049_v0, %v5600_v33 }
 0x366   : > { %v1983_v36 = vmul.f32 %v3484_v18, %v1951_v61  ;;  %v3030_v27 = vperm.slane %v2051_v53, %v5603_v3 }
 0x367   : > { %v1981_v63 = vmul.f32 %v3486_v15, %v1949_v14 }
 0x368   : > { %v2047_v22 = vmul.f32 %v2015_v44, %v1983_v36  ;;  %v3032_v10 = vsel %vm3031_vm14, %v3030_v27, %v3028_v16 }
 0x369   : > { %v2045_v57 = vmul.f32 %v2013_v5, %v1981_v63 }
 0x36a   : > { %2110 = vadd.xlane.f32.xlu0 %v2047_v22 }
 0x36b   : > { %2106 = vadd.xlane.f32.xlu1 %v2045_v57 }
 0x36c   : > { %v2055_v39 = vpop.xlane.xlu2 %2054 }
 0x36d   : > { %v2057_v19 = vpop.xlane.xlu0 %2056  ;;  %v3038_v1 = vperm.slane %v2055_v39, %v5609_v52 }
 0x36e   : > { %v3041_v37 = vperm.slane %v2057_v19, %v5600_v33 }
 0x374   : > { %v2053_v35 = vpop.xlane.xlu1 %2052  ;;  %v2061_v62 = vpop.xlane.xlu2 %2060 }
 0x375   : > { %v3034_v43 = vperm.slane %v2053_v35, %v5612_v30  ;;  %v2063_v56 = vpop.xlane.xlu0 %2062  ;;  %v3044_v4 = vperm.slane %v2061_v62, %v5612_v30 }
 0x376   : > { %v3046_v58 = vperm.slane %v2063_v56, %v5609_v52 }
 0x377   : > { %v3036_v60 = vsel %vm3035_vm15, %v3034_v43, %v3032_v10 }
 0x378   : > { %v3040_v21 = vsel %vm3039_vm0, %v3038_v1, %v3036_v60 }
 0x379   : > { %2131 = vperm.xlu2 %3294, %v6352_v17  }
 0x37d   : > { %v2067_v45 = vpop.xlane.xlu2 %2066 }
 0x37e   : > { %v2059_v12 = vpop.xlane.xlu1 %2058  ;;  %2136 = vperm.xlu0 %3292, %v6353_v42   ;;  %v3049_v59 = vperm.slane %v2067_v45, %v5603_v3 }
 0x37f   : > { %v3042_v8 = vperm.slane %v2059_v12, %v5603_v3 }
 0x380   : > { %v2069_v48 = vpop.xlane.xlu0 %2068 }
 0x381   : > { %2239 = vperm.xlu2 %3294, %v6354_v9   ;;  %v3043_v55 = vsel %vm3031_vm14, %v3042_v8, %v3041_v37  ;;  %v3051_v47 = vperm.slane %v2069_v48, %v5612_v30 }
 0x382   : > { %v3045_v11 = vsel %vm3035_vm15, %v3044_v4, %v3043_v55 }
 0x383   : > { %v3047_v28 = vsel %vm3039_vm0, %v3046_v58, %v3045_v11 }
 0x384   : > { %v3090_v24 = vsel %vm2877_vm3, %v3047_v28, %v3040_v21  ;;  %2126 = vperm.xlu1 %3293, %v6355_v54  }
 0x386   : > { %2234 = vperm.xlu0 %3292, %v6356_v41  }
 0x38a   : > { %v2073_v26 = vpop.xlane.xlu2 %2072 }
 0x38b   : > { %v3055_v29 = vperm.slane %v2073_v26, %v5600_v33 }
 0x38c   : > { %2141 = vperm.xlu1 %3293, %v6357_v31  }
 0x38d   : > { %v2065_v50 = vpop.xlane.xlu1 %2064 }
 0x38e   : > { %v3048_v13 = vperm.slane %v2065_v50, %v5600_v33  ;;  %v2075_v23 = vpop.xlane.xlu0 %2074  ;;  %2249 = vperm.xlu0 %3292, %v6358_v6  }
 0x38f   : > { %v3056_v25 = vperm.slane %v2075_v23, %v5603_v3 }
 0x390   : > { %v3050_v32 = vsel %vm3031_vm14, %v3049_v59, %v3048_v13 }
 0x391   : > { %v3057_v40 = vsel %vm3031_vm14, %v3056_v25, %v3055_v29  ;;  %v3052_v38 = vsel %vm3035_vm15, %v3051_v47, %v3050_v32  ;;  %v5686_v32 = vld [vmem:[%s2112_s18] sm:$0xff] }
 0x393   : > { %v2079_v15 = vpop.xlane.xlu2 %2078 }
 0x394   : > { %2244 = vperm.xlu1 %3293, %v6359_v51   ;;  %v3060_v36 = vperm.slane %v2079_v15, %v5609_v52  ;;  %v5692_v51 = vperm.slane %v5686_v32, 0 }
 0x398   : > { %v2071_v49 = vpop.xlane.xlu1 %2070 }
 0x399   : > { %v3053_v2 = vperm.slane %v2071_v49, %v5609_v52 }
 0x39b   : > { %v3054_v18 = vsel %vm3039_vm0, %v3053_v2, %v3052_v38 }
 0x39c   : > { %v3091_v20 = vsel %vm2879_vm4, %v3054_v18, %v3090_v24 }
 0x39f   : > { %v2081_v61 = vpop.xlane.xlu0 %2080 }
 0x3a0   : > { %v2085_v5 = vpop.xlane.xlu2 %2084  ;;  %v3062_v16 = vperm.slane %v2081_v61, %v5600_v33 }
 0x3a1   : > { %v3065_v57 = vperm.slane %v2085_v5, %v5612_v30 }
 0x3a3   : > { %v2077_v34 = vpop.xlane.xlu1 %2076 }
 0x3a4   : > { %v3058_v44 = vperm.slane %v2077_v34, %v5612_v30 }
 0x3a6   : > { %v3059_v14 = vsel %vm3035_vm15, %v3058_v44, %v3057_v40  ;;  %v5688_v40 = vld [vmem:[%s2114_s23] sm:$0xff] }
 0x3a7   : > { %v3061_v0 = vsel %vm3039_vm0, %v3060_v36, %v3059_v14  ;;  %v5695_v49 = vperm.slane %v5688_v40, 0 }
 0x3a8   : > { %v3092_v53 = vsel %vm2881_vm5, %v3061_v0, %v3091_v20  ;;  %v2087_v22 = vpop.xlane.xlu0 %2086 }
 0x3a9   : > { %v3067_v10 = vperm.slane %v2087_v22, %v5609_v52 }
 0x3b0   : > { %v2083_v63 = vpop.xlane.xlu1 %2082 }
 0x3b1   : > { %v3063_v27 = vperm.slane %v2083_v63, %v5603_v3  ;;  %v2091_v35 = vpop.xlane.xlu2 %2090 }
 0x3b2   : > { %v3070_v56 = vperm.slane %v2091_v35, %v5603_v3 }
 0x3b3   : > { %v3064_v39 = vsel %vm3031_vm14, %v3063_v27, %v3062_v16  ;;  %v2093_v17 = vpop.xlane.xlu0 %2092  ;;  %v2117_v16 = vrot.slane %v5686_v32, 1  ;;  %v2225_v27 = vrot.slane %v5688_v40, 1 }
 0x3b4   : > { %v3066_v19 = vsel %vm3035_vm15, %v3065_v57, %v3064_v39  ;;  %v3072_v42 = vperm.slane %v2093_v17, %v5612_v30 }
 0x3b5   : > { %v3068_v62 = vsel %vm3039_vm0, %v3067_v10, %v3066_v19  ;;  %v5725_v35 = vperm.slane %v2117_v16, 0 }
 0x3b6   : > { %v3093_v43 = vsel %vm2883_vm6, %v3068_v62, %v3092_v53  ;;  %v5727_v62 = vperm.slane %v2225_v27, 0 }
 0x3be   : > { %v2097_v1 = vpop.xlane.xlu2 %2096 }
 0x3bf   : > { %v2089_v60 = vpop.xlane.xlu1 %2088  ;;  %v3076_v12 = vperm.slane %v2097_v1, %v5600_v33 }
 0x3c0   : > { %v3069_v21 = vperm.slane %v2089_v60, %v5600_v33 }
 0x3c1   : > { %v2099_v37 = vpop.xlane.xlu0 %2098 }
 0x3c2   : > { %v3071_v8 = vsel %vm3031_vm14, %v3070_v56, %v3069_v21  ;;  %v3077_v4 = vperm.slane %v2099_v37, %v5603_v3 }
 0x3c3   : > { %v3073_v45 = vsel %vm3035_vm15, %v3072_v42, %v3071_v8 }
 0x3c4   : > { %v3078_v9 = vsel %vm3031_vm14, %v3077_v4, %v3076_v12 }
 0x3c6   : > { %v2103_v58 = vpop.xlane.xlu2 %2102 }
 0x3c7   : > { %v3081_v50 = vperm.slane %v2103_v58, %v5609_v52 }
 0x3ca   : > { %v2095_v55 = vpop.xlane.xlu1 %2094 }
 0x3cb   : > { %v3074_v11 = vperm.slane %v2095_v55, %v5609_v52 }
 0x3cd   : > { %v3075_v28 = vsel %vm3039_vm0, %v3074_v11, %v3073_v45 }
 0x3ce   : > { %v3094_v48 = vsel %vm2885_vm7, %v3075_v28, %v3093_v43 }
 0x3d3   : > { %v2105_v41 = vpop.xlane.xlu0 %2104 }
 0x3d4   : > { %v2109_v24 = vpop.xlane.xlu2 %2108  ;;  %v3083_v47 = vperm.slane %v2105_v41, %v5600_v33 }
 0x3d5   : > { %v2101_v54 = vpop.xlane.xlu1 %2100  ;;  %v3086_v38 = vperm.slane %v2109_v24, %v5612_v30 }
 0x3d6   : > { %v3079_v26 = vperm.slane %v2101_v54, %v5612_v30 }
 0x3d8   : > { %v3080_v29 = vsel %vm3035_vm15, %v3079_v26, %v3078_v9 }
 0x3d9   : > { %v3082_v31 = vsel %vm3039_vm0, %v3081_v50, %v3080_v29 }
 0x3da   : > { %v3095_v59 = vsel %vm2887_vm8, %v3082_v31, %v3094_v48 }
 0x3dc   : > { %v5674_v13 = vpop.permute.xlu2 %2131 }
 0x3dd   : > { %v2111_v23 = vpop.xlane.xlu0 %2110  ;;  %v2161_v20 = vsub.f32 %v5674_v13, %v5692_v51 }
 0x3de   : > { %v2107_v6 = vpop.xlane.xlu1 %2106  ;;  %v3088_v2 = vperm.slane %v2111_v23, %v5609_v52  ;;  %v5712_v52 = vstv %s97_s17 }
 0x3df   : > { %v3084_v25 = vperm.slane %v2107_v6, %v5603_v3  ;;  %v2193_v34 = vand.u32 2147483647, %v2161_v20 }
 0x3e1   : > { %v3085_v18 = vsel %vm3031_vm14, %v3084_v25, %v3083_v47 }
 0x3e2   : > { %v3087_v33 = vsel %vm3035_vm15, %v3086_v38, %v3085_v18 }
 0x3e3   : > { %v3089_v15 = vsel %vm3039_vm0, %v3088_v2, %v3087_v33 }
 0x3e4   : > { %v5700_v3 = vpop.permute.xlu2 %2239  ;;  %v5708_v61 = vsel %vm2889_vm9, %v3089_v15, %v3095_v59 }
 0x3e5   : > { %v2269_v30 = vsub.f32 %v5700_v3, %v5695_v49 }
 0x3e7   : > { %v2301_v44 = vand.u32 2147483647, %v2269_v30 }
 0x3e9   : > { %v2333_v36 = vadd.f32 %v2301_v44, %v2193_v34 }
 0x3eb   : > { %v2366_v14 = vsub.f32 %v5712_v52, %v2333_v36  ;;  %v2430_v53 = vadd.f32 1.0, %v2333_v36 }
 0x3ed   : > { %v2398_v0 = vand.u32 2147483647, %v2366_v14 }
 0x3ef   : > { %v2462_v5 = vadd.f32 1.0, %v2398_v0  ;;  %v2654_v4 = vsub.f32 %v2398_v0, %v2333_v36 }
 0x3f0   : > { %v5715_v22 = vpop.permute.xlu0 %2136 }
 0x3f1   : > { %v2494_v63 = vmul.f32 %v2462_v5, %v2430_v53  ;;  %v2162_v30 = vsub.f32 %v5715_v22, %v5692_v51  ;;  %v2166_v0 = vsub.f32 %v5715_v22, %v5725_v35 }
 0x3f3   : > { %3487 = vrcp.f32 %v2494_v63  ;;  %v2194_v16 = vand.u32 2147483647, %v2162_v30 }
 0x3f6   : > { %v5719_v57 = vpop.permute.xlu1 %2126 }
 0x3f7   : > { %v2160_v19 = vsub.f32 %v5719_v57, %v5692_v51  ;;  %v2164_v60 = vsub.f32 %v5719_v57, %v5725_v35 }
 0x3f8   : > { %v5721_v39 = vpop.permute.xlu0 %2234 }
 0x3f9   : > { %v3488_v10 = vpop.eup %3487  ;;  %v2268_v17 = vsub.f32 %v5721_v39, %v5695_v49  ;;  %v2192_v1 = vand.u32 2147483647, %v2160_v19  ;;  %v2272_v56 = vsub.f32 %v5721_v39, %v5727_v62  ;;  %v2196_v42 = vand.u32 2147483647, %v2164_v60 }
 0x3fa   : > { %v2558_v43 = vmul.f32 %v3488_v10, %v2494_v63  ;;  %v2118_v63 = vrot.slane %v5686_v32, 2 }
 0x3fb   : > { %v2300_v12 = vand.u32 2147483647, %v2268_v17  ;;  %v2304_v37 = vand.u32 2147483647, %v2272_v56  ;;  %v2198_v56 = vand.u32 2147483647, %v2166_v0 }
 0x3fc   : > { %v2590_v21 = vsub.f32 2.0, %v2558_v43 }
 0x3fd   : > { %v5735_v45 = vadd.f32 %v2300_v12, %v2192_v1  ;;  %v5737_v9 = vadd.f32 %v2304_v37, %v2196_v42 }
 0x3fe   : > { %v2622_v8 = vmul.f32 %v3488_v10, %v2590_v21  ;;  %v5739_v58 = vpop.permute.xlu1 %2141  ;;  %v2226_v10 = vrot.slane %v5688_v40, 2 }
 0x3ff   : > { %v2365_v11 = vsub.f32 %v5712_v52, %v5735_v45  ;;  %v2369_v48 = vsub.f32 %v5712_v52, %v5737_v9  ;;  %v2163_v24 = vsub.f32 %v5739_v58, %v5692_v51  ;;  %v2167_v54 = vsub.f32 %v5739_v58, %v5725_v35 }
 0x400   : > { %v2686_v55 = vmul.f32 %v2654_v4, %v2622_v8  ;;  %v5743_v28 = vpop.permute.xlu0 %2249  ;;  %v2429_v23 = vadd.f32 1.0, %v5735_v45  ;;  %v2433_v38 = vadd.f32 1.0, %v5737_v9  ;;  %v5795_v8 = vperm.slane %v2118_v63, 0 }
 0x401   : > { %v5751_v41 = vand.u32 2147483647, %v2365_v11  ;;  %v2271_v26 = vsub.f32 %v5743_v28, %v5695_v49  ;;  %v2275_v50 = vsub.f32 %v5743_v28, %v5727_v62  ;;  %v5757_v29 = vand.u32 2147483647, %v2369_v48 }
 0x402   : > { %2719 = vadd.xlane.f32.xlu1 %v2686_v55  ;;  %v2195_v31 = vand.u32 2147483647, %v2163_v24  ;;  %v2199_v59 = vand.u32 2147483647, %v2167_v54  ;;  %v5797_v4 = vperm.slane %v2226_v10, 0  ;;  %v2169_v30 = vsub.f32 %v5674_v13, %v5795_v8 }
 0x403   : > { %v2461_v6 = vadd.f32 1.0, %v5751_v41  ;;  %v2303_v47 = vand.u32 2147483647, %v2271_v26  ;;  %v2307_v25 = vand.u32 2147483647, %v2275_v50  ;;  %v2465_v2 = vadd.f32 1.0, %v5757_v29 }
 0x404   : > { %v2653_v1 = vsub.f32 %v5751_v41, %v5735_v45  ;;  %v2657_v48 = vsub.f32 %v5757_v29, %v5737_v9  ;;  %v2170_v41 = vsub.f32 %v5715_v22, %v5795_v8 }
 0x405   : > { %v2493_v18 = vmul.f32 %v2461_v6, %v2429_v23  ;;  %v5763_v33 = vadd.f32 %v2303_v47, %v2195_v31  ;;  %v5765_v20 = vadd.f32 %v2307_v25, %v2199_v59  ;;  %v2497_v15 = vmul.f32 %v2465_v2, %v2433_v38 }
 0x406   : > { %v5769_v34 = vpop.permute.xlu1 %2244  ;;  %v2202_v23 = vand.u32 2147483647, %v2170_v41 }
 0x407   : > { %3489 = vrcp.f32 %v2493_v18  ;;  %v2368_v44 = vsub.f32 %v5712_v52, %v5763_v33  ;;  %v2372_v36 = vsub.f32 %v5712_v52, %v5765_v20  ;;  %v2270_v14 = vsub.f32 %v5769_v34, %v5695_v49 }
 0x408   : > { %3491 = vrcp.f32 %v2497_v15  ;;  %v2274_v51 = vsub.f32 %v5769_v34, %v5727_v62  ;;  %v2432_v19 = vadd.f32 1.0, %v5763_v33  ;;  %v2436_v43 = vadd.f32 1.0, %v5765_v20 }
 0x409   : > { %v5779_v53 = vand.u32 2147483647, %v2368_v44  ;;  %v5781_v5 = vand.u32 2147483647, %v2372_v36  ;;  %v2302_v27 = vand.u32 2147483647, %v2270_v14  ;;  %v2278_v26 = vsub.f32 %v5769_v34, %v5797_v4 }
 0x40a   : > { %v2306_v21 = vand.u32 2147483647, %v2274_v51  ;;  %v2277_v44 = vsub.f32 %v5700_v3, %v5797_v4 }
 0x40b   : > { %v2464_v49 = vadd.f32 1.0, %v5779_v53  ;;  %v2468_v17 = vadd.f32 1.0, %v5781_v5  ;;  %v5793_v60 = vadd.f32 %v2302_v27, %v2194_v16  ;;  %v2656_v59 = vsub.f32 %v5779_v53, %v5763_v33 }
 0x40c   : > { %v5803_v45 = vadd.f32 %v2306_v21, %v2198_v56  ;;  %v2310_v6 = vand.u32 2147483647, %v2278_v26  ;;  %v2660_v63 = vsub.f32 %v5781_v5, %v5765_v20  ;;  %v2201_v27 = vand.u32 2147483647, %v2169_v30 }
 0x40d   : > { %v3490_v12 = vpop.eup %3489  ;;  %v2496_v42 = vmul.f32 %v2464_v49, %v2432_v19  ;;  %v2500_v37 = vmul.f32 %v2468_v17, %v2436_v43  ;;  %v2367_v24 = vsub.f32 %v5712_v52, %v5793_v60  ;;  %v2431_v25 = vadd.f32 1.0, %v5793_v60 }
 0x40e   : > { %v3492_v55 = vpop.eup %3491  ;;  %v2557_v11 = vmul.f32 %v3490_v12, %v2493_v18  ;;  %v2371_v9 = vsub.f32 %v5712_v52, %v5803_v45  ;;  %v2435_v14 = vadd.f32 1.0, %v5803_v45  ;;  %v2309_v43 = vand.u32 2147483647, %v2277_v44 }
 0x40f   : > { %v2561_v54 = vmul.f32 %v3492_v55, %v2497_v15  ;;  %3493 = vrcp.f32 %v2496_v42  ;;  %v5809_v31 = vand.u32 2147483647, %v2367_v24  ;;  %v5819_v15 = vadd.f32 %v2310_v6, %v2202_v23 }
 0x410   : > { %v2589_v50 = vsub.f32 2.0, %v2557_v11  ;;  %3495 = vrcp.f32 %v2500_v37  ;;  %v5817_v2 = vand.u32 2147483647, %v2371_v9  ;;  %v2165_v56 = vsub.f32 %v5674_v13, %v5725_v35 }
 0x411   : > { %v2593_v29 = vsub.f32 2.0, %v2561_v54  ;;  %v2463_v38 = vadd.f32 1.0, %v5809_v31  ;;  %v2375_v16 = vsub.f32 %v5712_v52, %v5819_v15  ;;  %v2273_v20 = vsub.f32 %v5700_v3, %v5727_v62 }
 0x412   : > { %v2621_v47 = vmul.f32 %v3490_v12, %v2589_v50  ;;  %v2467_v0 = vadd.f32 1.0, %v5817_v2  ;;  %v5837_v21 = vadd.f32 %v2309_v43, %v2201_v27  ;;  %v2119_v12 = vrot.slane %v5686_v32, 3 }
 0x413   : > { %v2625_v18 = vmul.f32 %v3492_v55, %v2593_v29  ;;  %v2495_v33 = vmul.f32 %v2463_v38, %v2431_v25  ;;  %v2655_v55 = vsub.f32 %v5809_v31, %v5793_v60  ;;  %v2197_v24 = vand.u32 2147483647, %v2165_v56 }
 0x414   : > { %v2685_v36 = vmul.f32 %v2653_v1, %v2621_v47  ;;  %v2499_v49 = vmul.f32 %v2467_v0, %v2435_v14  ;;  %v5831_v1 = vand.u32 2147483647, %v2375_v16  ;;  %v2374_v35 = vsub.f32 %v5712_v52, %v5837_v21 }
 0x415   : > { %v3494_v53 = vpop.eup %3493  ;;  %v2689_v51 = vmul.f32 %v2657_v48, %v2625_v18  ;;  %3497 = vrcp.f32 %v2495_v33  ;;  %v2305_v62 = vand.u32 2147483647, %v2273_v20  ;;  %v5846_v26 = vperm.slane %v2119_v12, 0 }
 0x416   : > { %v3496_v10 = vpop.eup %3495  ;;  %2717 = vadd.xlane.f32.xlu2 %v2685_v36  ;;  %v2560_v19 = vmul.f32 %v3494_v53, %v2496_v42  ;;  %3499 = vrcp.f32 %v2499_v49  ;;  %v2471_v11 = vadd.f32 1.0, %v5831_v1  ;;  %v2227_v50 = vrot.slane %v5688_v40, 3 }
 0x417   : > { %2725 = vadd.xlane.f32.xlu1 %v2689_v51  ;;  %v2564_v17 = vmul.f32 %v3496_v10, %v2500_v37  ;;  %v2439_v37 = vadd.f32 1.0, %v5819_v15  ;;  %v2659_v60 = vsub.f32 %v5817_v2, %v5803_v45  ;;  %v5851_v31 = vand.u32 2147483647, %v2374_v35 }
 0x418   : > { %v2592_v5 = vsub.f32 2.0, %v2560_v19  ;;  %v5853_v23 = vadd.f32 %v2305_v62, %v2197_v24  ;;  %v2438_v25 = vadd.f32 1.0, %v5837_v21  ;;  %v2120_v45 = vrot.slane %v5686_v32, 4 }
 0x419   : > { %v2596_v42 = vsub.f32 2.0, %v2564_v17  ;;  %v2503_v41 = vmul.f32 %v2471_v11, %v2439_v37  ;;  %v2470_v18 = vadd.f32 1.0, %v5851_v31  ;;  %v2168_v51 = vsub.f32 %v5719_v57, %v5795_v8 }
 0x41a   : > { %v2624_v48 = vmul.f32 %v3494_v53, %v2592_v5  ;;  %v2370_v30 = vsub.f32 %v5712_v52, %v5853_v23  ;;  %v2434_v36 = vadd.f32 1.0, %v5853_v23  ;;  %v2172_v53 = vsub.f32 %v5719_v57, %v5846_v26 }
 0x41b   : > { %v2628_v54 = vmul.f32 %v3496_v10, %v2596_v42  ;;  %v3498_v9 = vpop.eup %3497  ;;  %3501 = vrcp.f32 %v2503_v41  ;;  %v2502_v14 = vmul.f32 %v2470_v18, %v2438_v25  ;;  %v2200_v11 = vand.u32 2147483647, %v2168_v51 }
 0x41c   : > { %v2688_v29 = vmul.f32 %v2656_v59, %v2624_v48  ;;  %v2559_v47 = vmul.f32 %v3498_v9, %v2495_v33  ;;  %v3500_v38 = vpop.eup %3499  ;;  %v2173_v59 = vsub.f32 %v5674_v13, %v5846_v26  ;;  %v5863_v33 = vperm.slane %v2227_v50, 0 }
 0x41d   : > { %v2692_v6 = vmul.f32 %v2660_v63, %v2628_v54  ;;  %v2563_v44 = vmul.f32 %v3500_v38, %v2499_v49  ;;  %v5865_v0 = vand.u32 2147483647, %v2370_v30  ;;  %3503 = vrcp.f32 %v2502_v14 }
 0x41e   : > { %2723 = vadd.xlane.f32.xlu2 %v2688_v29  ;;  %v2591_v2 = vsub.f32 2.0, %v2559_v47  ;;  %v2281_v27 = vsub.f32 %v5700_v3, %v5863_v33  ;;  %v2280_v10 = vsub.f32 %v5721_v39, %v5863_v33  ;;  %v2205_v49 = vand.u32 2147483647, %v2173_v59 }
 0x41f   : > { %2731 = vadd.xlane.f32.xlu1 %v2692_v6  ;;  %v2595_v16 = vsub.f32 2.0, %v2563_v44  ;;  %v2466_v19 = vadd.f32 1.0, %v5865_v0  ;;  %v2204_v43 = vand.u32 2147483647, %v2172_v53  ;;  %v2276_v48 = vsub.f32 %v5721_v39, %v5797_v4 }
 0x420   : > { %v2623_v63 = vmul.f32 %v3498_v9, %v2591_v2  ;;  %v2313_v5 = vand.u32 2147483647, %v2281_v27  ;;  %v2312_v12 = vand.u32 2147483647, %v2280_v10  ;;  %v5882_v54 = vperm.slane %v2120_v45, 0 }
 0x421   : > { %v3502_v17 = vpop.eup %3501  ;;  %v2627_v20 = vmul.f32 %v3500_v38, %v2595_v16  ;;  %v2498_v37 = vmul.f32 %v2466_v19, %v2434_v36  ;;  %v2228_v9 = vrot.slane %v5688_v40, 4  ;;  %v2662_v29 = vsub.f32 %v5851_v31, %v5837_v21 }
 0x422   : > { %v2687_v56 = vmul.f32 %v2655_v55, %v2623_v63  ;;  %v2567_v42 = vmul.f32 %v3502_v17, %v2503_v41  ;;  %v5878_v24 = vadd.f32 %v2313_v5, %v2205_v49  ;;  %v5880_v62 = vadd.f32 %v2312_v12, %v2204_v43 }
 0x423   : > { %v2691_v35 = vmul.f32 %v2659_v60, %v2627_v20  ;;  %3505 = vrcp.f32 %v2498_v37  ;;  %v2308_v55 = vand.u32 2147483647, %v2276_v48  ;;  %v2663_v41 = vsub.f32 %v5831_v1, %v5819_v15  ;;  %v3504_v47 = vpop.eup %3503 }
 0x424   : > { %2721 = vadd.xlane.f32.xlu0 %v2687_v56  ;;  %v2599_v50 = vsub.f32 2.0, %v2567_v42  ;;  %v2378_v60 = vsub.f32 %v5712_v52, %v5878_v24  ;;  %v2377_v6 = vsub.f32 %v5712_v52, %v5880_v62  ;;  %v2658_v38 = vsub.f32 %v5865_v0, %v5853_v23 }
 0x425   : > { %v5895_v18 = vadd.f32 %v2308_v55, %v2200_v11  ;;  %v2176_v30 = vsub.f32 %v5719_v57, %v5882_v54  ;;  %v2566_v15 = vmul.f32 %v3504_v47, %v2502_v14  ;;  %v2442_v21 = vadd.f32 1.0, %v5878_v24 }
 0x426   : > { %2729 = vadd.xlane.f32.xlu2 %v2691_v35  ;;  %v2631_v25 = vmul.f32 %v3502_v17, %v2599_v50  ;;  %v5899_v1 = vand.u32 2147483647, %v2378_v60  ;;  %v5902_v31 = vand.u32 2147483647, %v2377_v6  ;;  %v5906_v2 = vperm.slane %v2228_v9, 0 }
 0x427   : > { %v2373_v45 = vsub.f32 %v5712_v52, %v5895_v18  ;;  %v2175_v23 = vsub.f32 %v5739_v58, %v5846_v26  ;;  %v2598_v44 = vsub.f32 2.0, %v2566_v15  ;;  %v2441_v14 = vadd.f32 1.0, %v5880_v62 }
 0x428   : > { %v2695_v59 = vmul.f32 %v2663_v41, %v2631_v25  ;;  %v2474_v36 = vadd.f32 1.0, %v5899_v1  ;;  %v2473_v0 = vadd.f32 1.0, %v5902_v31  ;;  %v2437_v63 = vadd.f32 1.0, %v5895_v18 }
 0x429   : > { %v3506_v53 = vpop.eup %3505  ;;  %v5913_v51 = vand.u32 2147483647, %v2373_v45  ;;  %v2208_v16 = vand.u32 2147483647, %v2176_v30  ;;  %v2284_v27 = vsub.f32 %v5721_v39, %v5906_v2  ;;  %v2630_v10 = vmul.f32 %v3504_v47, %v2598_v44 }
 0x42a   : > { %2737 = vadd.xlane.f32.xlu1 %v2695_v59  ;;  %v2562_v19 = vmul.f32 %v3506_v53, %v2498_v37  ;;  %v2506_v49 = vmul.f32 %v2474_v36, %v2442_v21  ;;  %v2505_v43 = vmul.f32 %v2473_v0, %v2441_v14  ;;  %v2207_v20 = vand.u32 2147483647, %v2175_v23 }
 0x42b   : > { %v2469_v17 = vadd.f32 1.0, %v5913_v51  ;;  %v2316_v56 = vand.u32 2147483647, %v2284_v27  ;;  %v2283_v5 = vsub.f32 %v5743_v28, %v5863_v33  ;;  %v2694_v12 = vmul.f32 %v2662_v29, %v2630_v10 }
 0x42c   : > { %v2594_v42 = vsub.f32 2.0, %v2562_v19  ;;  %3507 = vrcp.f32 %v2506_v49  ;;  %v2171_v11 = vsub.f32 %v5739_v58, %v5795_v8  ;;  %v2279_v9 = vsub.f32 %v5743_v28, %v5797_v4 }
 0x42d   : > { %3509 = vrcp.f32 %v2505_v43  ;;  %v2501_v48 = vmul.f32 %v2469_v17, %v2437_v63  ;;  %v5923_v35 = vadd.f32 %v2316_v56, %v2208_v16  ;;  %v2315_v37 = vand.u32 2147483647, %v2283_v5 }
 0x42e   : > { %2735 = vadd.xlane.f32.xlu2 %v2694_v12  ;;  %v2626_v50 = vmul.f32 %v3506_v53, %v2594_v42  ;;  %v2203_v55 = vand.u32 2147483647, %v2171_v11  ;;  %v2121_v41 = vrot.slane %v5686_v32, 5  ;;  %v2666_v29 = vsub.f32 %v5899_v1, %v5878_v24 }
 0x42f   : > { %3511 = vrcp.f32 %v2501_v48  ;;  %v2381_v8 = vsub.f32 %v5712_v52, %v5923_v35  ;;  %v5932_v60 = vadd.f32 %v2315_v37, %v2207_v20  ;;  %v2665_v47 = vsub.f32 %v5902_v31, %v5880_v62 }
 0x430   : > { %v2690_v6 = vmul.f32 %v2658_v38, %v2626_v50  ;;  %v2311_v25 = vand.u32 2147483647, %v2279_v9  ;;  %v2229_v30 = vrot.slane %v5688_v40, 5  ;;  %v2661_v4 = vsub.f32 %v5913_v51, %v5895_v18 }
 0x431   : > { %v5939_v15 = vand.u32 2147483647, %v2381_v8  ;;  %v2380_v24 = vsub.f32 %v5712_v52, %v5932_v60  ;;  %v5943_v1 = vperm.slane %v2121_v41, 0  ;;  %v2445_v38 = vadd.f32 1.0, %v5923_v35 }
 0x432   : > { %v3508_v21 = vpop.eup %3507  ;;  %2727 = vadd.xlane.f32.xlu0 %v2690_v6  ;;  %v2444_v59 = vadd.f32 1.0, %v5932_v60  ;;  %v5947_v62 = vadd.f32 %v2311_v25, %v2203_v55  ;;  %v2178_v31 = vsub.f32 %v5715_v22, %v5882_v54  ;;  %v5958_v53 = vperm.slane %v2229_v30, 0 }
 0x433   : > { %v3510_v45 = vpop.eup %3509  ;;  %v2570_v18 = vmul.f32 %v3508_v21, %v2506_v49  ;;  %v2477_v23 = vadd.f32 1.0, %v5939_v15  ;;  %v5952_v44 = vand.u32 2147483647, %v2380_v24  ;;  %v2180_v36 = vsub.f32 %v5719_v57, %v5943_v1 }
 0x434   : > { %v2569_v14 = vmul.f32 %v3510_v45, %v2505_v43  ;;  %v2376_v0 = vsub.f32 %v5712_v52, %v5947_v62  ;;  %v2174_v51 = vsub.f32 %v5715_v22, %v5846_v26  ;;  %v2669_v10 = vsub.f32 %v5939_v15, %v5923_v35 }
 0x435   : > { %v3512_v63 = vpop.eup %3511  ;;  %v2602_v16 = vsub.f32 2.0, %v2570_v18  ;;  %v2509_v27 = vmul.f32 %v2477_v23, %v2445_v38  ;;  %v2476_v19 = vadd.f32 1.0, %v5952_v44  ;;  %v2288_v43 = vsub.f32 %v5721_v39, %v5958_v53 }
 0x436   : > { %v2601_v49 = vsub.f32 2.0, %v2569_v14  ;;  %v2565_v17 = vmul.f32 %v3512_v63, %v2501_v48  ;;  %v5965_v56 = vand.u32 2147483647, %v2376_v0  ;;  %v2212_v12 = vand.u32 2147483647, %v2180_v36 }
 0x437   : > { %v2634_v20 = vmul.f32 %v3508_v21, %v2602_v16  ;;  %3513 = vrcp.f32 %v2509_v27  ;;  %v2508_v5 = vmul.f32 %v2476_v19, %v2444_v59  ;;  %v2440_v11 = vadd.f32 1.0, %v5947_v62 }
 0x438   : > { %v2633_v26 = vmul.f32 %v3510_v45, %v2601_v49  ;;  %v2597_v42 = vsub.f32 2.0, %v2565_v17  ;;  %v2472_v37 = vadd.f32 1.0, %v5965_v56  ;;  %v2320_v55 = vand.u32 2147483647, %v2288_v43 }
 0x439   : > { %v2698_v50 = vmul.f32 %v2666_v29, %v2634_v20  ;;  %3515 = vrcp.f32 %v2508_v5  ;;  %v2286_v48 = vsub.f32 %v5769_v34, %v5906_v2  ;;  %v2210_v6 = vand.u32 2147483647, %v2178_v31 }
 0x43a   : > { %v2697_v9 = vmul.f32 %v2665_v47, %v2633_v26  ;;  %v2629_v41 = vmul.f32 %v3512_v63, %v2597_v42  ;;  %v2504_v8 = vmul.f32 %v2472_v37, %v2440_v11  ;;  %v5973_v25 = vadd.f32 %v2320_v55, %v2212_v12 }
 0x43b   : > { %2743 = vadd.xlane.f32.xlu1 %v2698_v50  ;;  %v2318_v30 = vand.u32 2147483647, %v2286_v48  ;;  %v2282_v24 = vsub.f32 %v5769_v34, %v5863_v33  ;;  %v2182_v21 = vsub.f32 %v5715_v22, %v5943_v1  ;;  %v2206_v38 = vand.u32 2147483647, %v2174_v51 }
 0x43c   : > { %2741 = vadd.xlane.f32.xlu2 %v2697_v9  ;;  %v2693_v29 = vmul.f32 %v2661_v4, %v2629_v41  ;;  %3517 = vrcp.f32 %v2504_v8  ;;  %v2290_v47 = vsub.f32 %v5769_v34, %v5958_v53  ;;  %v2385_v31 = vsub.f32 %v5712_v52, %v5973_v25 }
 0x43d   : > { %v3514_v59 = vpop.eup %3513  ;;  %v5983_v45 = vadd.f32 %v2318_v30, %v2210_v6  ;;  %v2314_v18 = vand.u32 2147483647, %v2282_v24  ;;  %v2179_v33 = vsub.f32 %v5739_v58, %v5882_v54  ;;  %v2668_v4 = vsub.f32 %v5952_v44, %v5932_v60 }
 0x43e   : > { %2733 = vadd.xlane.f32.xlu0 %v2693_v29  ;;  %v2573_v23 = vmul.f32 %v3514_v59, %v2509_v27  ;;  %v2214_v36 = vand.u32 2147483647, %v2182_v21  ;;  %v2322_v14 = vand.u32 2147483647, %v2290_v47  ;;  %v2664_v51 = vsub.f32 %v5965_v56, %v5947_v62 }
 0x43f   : > { %v3516_v0 = vpop.eup %3515  ;;  %v5991_v63 = vand.u32 2147483647, %v2385_v31  ;;  %v2383_v16 = vsub.f32 %v5712_v52, %v5983_v45  ;;  %v5995_v19 = vadd.f32 %v2314_v18, %v2206_v38  ;;  %v2449_v27 = vadd.f32 1.0, %v5973_v25 }
 0x440   : > { %v2605_v49 = vsub.f32 2.0, %v2573_v23  ;;  %v2572_v17 = vmul.f32 %v3516_v0, %v2508_v5  ;;  %v5998_v43 = vadd.f32 %v2322_v14, %v2214_v36  ;;  %v2211_v56 = vand.u32 2147483647, %v2179_v33 }
 0x441   : > { %v2481_v60 = vadd.f32 1.0, %v5991_v63  ;;  %v6001_v44 = vand.u32 2147483647, %v2383_v16  ;;  %v2379_v62 = vsub.f32 %v5712_v52, %v5995_v19  ;;  %v2447_v42 = vadd.f32 1.0, %v5983_v45 }
 0x442   : > { %v3518_v20 = vpop.eup %3517  ;;  %v2637_v12 = vmul.f32 %v3514_v59, %v2605_v49  ;;  %v2604_v26 = vsub.f32 2.0, %v2572_v17  ;;  %v2387_v5 = vsub.f32 %v5712_v52, %v5998_v43  ;;  %v2287_v55 = vsub.f32 %v5743_v28, %v5906_v2 }
 0x443   : > { %v2568_v11 = vmul.f32 %v3518_v20, %v2504_v8  ;;  %v2513_v37 = vmul.f32 %v2481_v60, %v2449_v27  ;;  %v2479_v50 = vadd.f32 1.0, %v6001_v44  ;;  %v6014_v41 = vand.u32 2147483647, %v2379_v62 }
 0x444   : > { %v2701_v48 = vmul.f32 %v2669_v10, %v2637_v12  ;;  %v2636_v9 = vmul.f32 %v3516_v0, %v2604_v26  ;;  %v6016_v6 = vand.u32 2147483647, %v2387_v5  ;;  %v2443_v8 = vadd.f32 1.0, %v5995_v19 }
 0x445   : > { %v2600_v30 = vsub.f32 2.0, %v2568_v11  ;;  %3519 = vrcp.f32 %v2513_v37  ;;  %v2511_v24 = vmul.f32 %v2479_v50, %v2447_v42  ;;  %v2475_v29 = vadd.f32 1.0, %v6014_v41 }
 0x446   : > { %2749 = vadd.xlane.f32.xlu1 %v2701_v48  ;;  %v2700_v21 = vmul.f32 %v2668_v4, %v2636_v9  ;;  %v2451_v38 = vadd.f32 1.0, %v5998_v43  ;;  %v2483_v47 = vadd.f32 1.0, %v6016_v6  ;;  %v2673_v15 = vsub.f32 %v5991_v63, %v5973_v25 }
 0x447   : > { %v2632_v35 = vmul.f32 %v3518_v20, %v2600_v30  ;;  %3521 = vrcp.f32 %v2511_v24  ;;  %v2319_v10 = vand.u32 2147483647, %v2287_v55  ;;  %v2507_v59 = vmul.f32 %v2475_v29, %v2443_v8 }
 0x448   : > { %2747 = vadd.xlane.f32.xlu2 %v2700_v21  ;;  %v2515_v31 = vmul.f32 %v2483_v47, %v2451_v38  ;;  %v2177_v18 = vsub.f32 %v5674_v13, %v5882_v54  ;;  %v2285_v33 = vsub.f32 %v5700_v3, %v5906_v2  ;;  %v2183_v36 = vsub.f32 %v5739_v58, %v5943_v1 }
 0x449   : > { %v2696_v23 = vmul.f32 %v2664_v51, %v2632_v35  ;;  %v6028_v4 = vadd.f32 %v2319_v10, %v2211_v56  ;;  %v2291_v25 = vsub.f32 %v5743_v28, %v5958_v53  ;;  %3523 = vrcp.f32 %v2507_v59 }
 0x44a   : > { %v2209_v14 = vand.u32 2147483647, %v2177_v18  ;;  %v2317_v0 = vand.u32 2147483647, %v2285_v33  ;;  %v2122_v63 = vrot.slane %v5686_v32, 6  ;;  %v2671_v54 = vsub.f32 %v6001_v44, %v5983_v45 }
 0x44b   : > { %v3520_v16 = vpop.eup %3519  ;;  %2739 = vadd.xlane.f32.xlu0 %v2696_v23  ;;  %3525 = vrcp.f32 %v2515_v31  ;;  %v2384_v2 = vsub.f32 %v5712_v52, %v6028_v4  ;;  %v2215_v51 = vand.u32 2147483647, %v2183_v36  ;;  %v2667_v17 = vsub.f32 %v6014_v41, %v5995_v19 }
 0x44c   : > { %v2577_v49 = vmul.f32 %v3520_v16, %v2513_v37  ;;  %v6041_v27 = vadd.f32 %v2317_v0, %v2209_v14  ;;  %v6043_v60 = vperm.slane %v2122_v63, 0  ;;  %v2448_v20 = vadd.f32 1.0, %v6028_v4 }
 0x44d   : > { %v3522_v62 = vpop.eup %3521  ;;  %v6045_v56 = vand.u32 2147483647, %v2384_v2  ;;  %v2323_v12 = vand.u32 2147483647, %v2291_v25  ;;  %v2230_v45 = vrot.slane %v5688_v40, 6  ;;  %v2181_v19 = vsub.f32 %v5674_v13, %v5943_v1 }
 0x44e   : > { %v2609_v44 = vsub.f32 2.0, %v2577_v49  ;;  %v2575_v26 = vmul.f32 %v3522_v62, %v2511_v24  ;;  %v2382_v42 = vsub.f32 %v5712_v52, %v6041_v27  ;;  %v2446_v11 = vadd.f32 1.0, %v6041_v27 }
 0x44f   : > { %v2480_v5 = vadd.f32 1.0, %v6045_v56  ;;  %v6055_v37 = vadd.f32 %v2323_v12, %v2215_v51  ;;  %v2289_v50 = vsub.f32 %v5700_v3, %v5958_v53  ;;  %v3524_v55 = vpop.eup %3523  ;;  %v2185_v30 = vsub.f32 %v5674_v13, %v6043_v60 }
 0x450   : > { %v2641_v48 = vmul.f32 %v3520_v16, %v2609_v44  ;;  %v2607_v9 = vsub.f32 2.0, %v2575_v26  ;;  %v6059_v41 = vand.u32 2147483647, %v2382_v42  ;;  %v2571_v8 = vmul.f32 %v3524_v55, %v2507_v59 }
 0x451   : > { %v3526_v24 = vpop.eup %3525  ;;  %v2512_v1 = vmul.f32 %v2480_v5, %v2448_v20  ;;  %v2388_v21 = vsub.f32 %v5712_v52, %v6055_v37  ;;  %v6065_v29 = vperm.slane %v2230_v45, 0  ;;  %v2675_v18 = vsub.f32 %v6016_v6, %v5998_v43 }
 0x452   : > { %v2705_v38 = vmul.f32 %v2673_v15, %v2641_v48  ;;  %v2639_v47 = vmul.f32 %v3522_v62, %v2607_v9  ;;  %v2579_v35 = vmul.f32 %v3526_v24, %v2515_v31  ;;  %v2478_v53 = vadd.f32 1.0, %v6059_v41 }
 0x453   : > { %v2603_v10 = vsub.f32 2.0, %v2571_v8  ;;  %3527 = vrcp.f32 %v2512_v1  ;;  %v6070_v33 = vand.u32 2147483647, %v2388_v21  ;;  %v2452_v25 = vadd.f32 1.0, %v6055_v37 }
 0x454   : > { %2757 = vadd.xlane.f32.xlu1 %v2705_v38  ;;  %v2703_v59 = vmul.f32 %v2671_v54, %v2639_v47  ;;  %v2611_v23 = vsub.f32 2.0, %v2579_v35  ;;  %v2510_v36 = vmul.f32 %v2478_v53, %v2446_v11  ;;  %v2217_v0 = vand.u32 2147483647, %v2185_v30 }
 0x455   : > { %v2635_v14 = vmul.f32 %v3524_v55, %v2603_v10  ;;  %v2484_v15 = vadd.f32 1.0, %v6070_v33  ;;  %v2293_v31 = vsub.f32 %v5700_v3, %v6065_v29  ;;  %v2213_v43 = vand.u32 2147483647, %v2181_v19 }
 0x456   : > { %2753 = vadd.xlane.f32.xlu2 %v2703_v59  ;;  %v2643_v63 = vmul.f32 %v3526_v24, %v2611_v23  ;;  %3529 = vrcp.f32 %v2510_v36  ;;  %v2321_v6 = vand.u32 2147483647, %v2289_v50  ;;  %v2123_v54 = vrot.slane %v5686_v32, 7 }
 0x457   : > { %v2699_v16 = vmul.f32 %v2667_v17, %v2635_v14  ;;  %v2516_v2 = vmul.f32 %v2484_v15, %v2452_v25  ;;  %v2325_v51 = vand.u32 2147483647, %v2293_v31  ;;  %v2672_v49 = vsub.f32 %v6045_v56, %v6028_v4 }
 0x458   : > { %v6079_v62 = vadd.f32 %v2321_v6, %v2213_v43  ;;  %v2231_v20 = vrot.slane %v5688_v40, 7  ;;  %v2707_v45 = vmul.f32 %v2675_v18, %v2643_v63  ;;  %v6084_v26 = vperm.slane %v2123_v54, 0 }
 0x459   : > { %v3528_v12 = vpop.eup %3527  ;;  %2745 = vadd.xlane.f32.xlu0 %v2699_v16  ;;  %3531 = vrcp.f32 %v2516_v2  ;;  %v6082_v44 = vadd.f32 %v2325_v51, %v2217_v0  ;;  %v2184_v4 = vsub.f32 %v5719_v57, %v6043_v60  ;;  %v2292_v5 = vsub.f32 %v5721_v39, %v6065_v29 }
 0x45a   : > { %v2576_v17 = vmul.f32 %v3528_v12, %v2512_v1  ;;  %v2386_v42 = vsub.f32 %v5712_v52, %v6079_v62  ;;  %v6088_v32 = vperm.slane %v2231_v20, 0  ;;  %v2189_v56 = vsub.f32 %v5674_v13, %v6084_v26 }
 0x45b   : > { %v2390_v40 = vsub.f32 %v5712_v52, %v6082_v44  ;;  %v2188_v19 = vsub.f32 %v5719_v57, %v6084_v26  ;;  %v2450_v13 = vadd.f32 1.0, %v6079_v62  ;;  %v2454_v53 = vadd.f32 1.0, %v6082_v44 }
 0x45c   : > { %v3530_v11 = vpop.eup %3529  ;;  %2761 = vadd.xlane.f32.xlu1 %v2707_v45  ;;  %v2608_v50 = vsub.f32 2.0, %v2576_v17  ;;  %v6100_v55 = vand.u32 2147483647, %v2386_v42  ;;  %v2297_v48 = vsub.f32 %v5700_v3, %v6088_v32  ;;  %v2296_v9 = vsub.f32 %v5721_v39, %v6088_v32 }
 0x45d   : > { %v2574_v30 = vmul.f32 %v3530_v11, %v2510_v36  ;;  %v6106_v24 = vand.u32 2147483647, %v2390_v40  ;;  %v2220_v57 = vand.u32 2147483647, %v2188_v19  ;;  %v2221_v21 = vand.u32 2147483647, %v2189_v56 }
 0x45e   : > { %v2640_v8 = vmul.f32 %v3528_v12, %v2608_v50  ;;  %v2482_v1 = vadd.f32 1.0, %v6100_v55  ;;  %v2329_v38 = vand.u32 2147483647, %v2297_v48  ;;  %v2328_v10 = vand.u32 2147483647, %v2296_v9 }
 0x45f   : > { %v3532_v47 = vpop.eup %3531  ;;  %v2606_v35 = vsub.f32 2.0, %v2574_v30  ;;  %v2486_v3 = vadd.f32 1.0, %v6106_v24  ;;  %v2670_v25 = vsub.f32 %v6059_v41, %v6041_v27  ;;  %v2216_v63 = vand.u32 2147483647, %v2184_v4 }
 0x460   : > { %v2704_v18 = vmul.f32 %v2672_v49, %v2640_v8  ;;  %v2580_v39 = vmul.f32 %v3532_v47, %v2516_v2  ;;  %v2514_v59 = vmul.f32 %v2482_v1, %v2450_v13  ;;  %v6112_v23 = vadd.f32 %v2329_v38, %v2221_v21 }
 0x461   : > { %v2638_v36 = vmul.f32 %v3530_v11, %v2606_v35  ;;  %v2518_v14 = vmul.f32 %v2486_v3, %v2454_v53  ;;  %v6116_v15 = vadd.f32 %v2328_v10, %v2220_v57  ;;  %v2676_v6 = vsub.f32 %v6070_v33, %v6055_v37 }
 0x462   : > { %2755 = vadd.xlane.f32.xlu2 %v2704_v18  ;;  %v2612_v0 = vsub.f32 2.0, %v2580_v39  ;;  %3533 = vrcp.f32 %v2514_v59  ;;  %v2394_v31 = vsub.f32 %v5712_v52, %v6112_v23  ;;  %v2324_v41 = vand.u32 2147483647, %v2292_v5 }
 0x463   : > { %v2702_v43 = vmul.f32 %v2670_v25, %v2638_v36  ;;  %3535 = vrcp.f32 %v2518_v14  ;;  %v2393_v16 = vsub.f32 %v5712_v52, %v6116_v15  ;;  %v2191_v51 = vsub.f32 %v5739_v58, %v6084_v26 }
 0x464   : > { %v2644_v2 = vmul.f32 %v3532_v47, %v2612_v0  ;;  %v6124_v27 = vand.u32 2147483647, %v2394_v31  ;;  %v2458_v54 = vadd.f32 1.0, %v6112_v23  ;;  %v2299_v20 = vsub.f32 %v5743_v28, %v6088_v32 }
 0x465   : > { %2751 = vadd.xlane.f32.xlu0 %v2702_v43  ;;  %v6129_v49 = vand.u32 2147483647, %v2393_v16  ;;  %v2298_v37 = vsub.f32 %v5769_v34, %v6088_v32  ;;  %v6136_v45 = vadd.f32 %v2324_v41, %v2216_v63  ;;  %v2190_v17 = vsub.f32 %v5715_v22, %v6084_v26 }
 0x466   : > { %v2708_v33 = vmul.f32 %v2676_v6, %v2644_v2  ;;  %v2490_v12 = vadd.f32 1.0, %v6124_v27  ;;  %v2457_v42 = vadd.f32 1.0, %v6116_v15  ;;  %v2223_v40 = vand.u32 2147483647, %v2191_v51 }
 0x467   : > { %v2489_v4 = vadd.f32 1.0, %v6129_v49  ;;  %v2331_v56 = vand.u32 2147483647, %v2299_v20  ;;  %v2674_v5 = vsub.f32 %v6100_v55, %v6079_v62  ;;  %v2389_v11 = vsub.f32 %v5712_v52, %v6136_v45 }
 0x468   : > { %v3534_v19 = vpop.eup %3533  ;;  %2763 = vadd.xlane.f32.xlu1 %v2708_v33  ;;  %v2522_v32 = vmul.f32 %v2490_v12, %v2458_v54  ;;  %v2330_v26 = vand.u32 2147483647, %v2298_v37  ;;  %v2222_v8 = vand.u32 2147483647, %v2190_v17  ;;  %v2186_v55 = vsub.f32 %v5715_v22, %v6043_v60 }
 0x469   : > { %v3536_v50 = vpop.eup %3535  ;;  %v2578_v48 = vmul.f32 %v3534_v19, %v2514_v59  ;;  %v2521_v9 = vmul.f32 %v2489_v4, %v2457_v42  ;;  %v6146_v30 = vadd.f32 %v2331_v56, %v2223_v40  ;;  %v6148_v57 = vand.u32 2147483647, %v2389_v11 }
 0x46a   : > { %v2582_v13 = vmul.f32 %v3536_v50, %v2518_v14  ;;  %3537 = vrcp.f32 %v2522_v32  ;;  %v2453_v38 = vadd.f32 1.0, %v6136_v45  ;;  %v6156_v35 = vadd.f32 %v2330_v26, %v2222_v8 }
 0x46b   : > { %v2610_v1 = vsub.f32 2.0, %v2578_v48  ;;  %3539 = vrcp.f32 %v2521_v9  ;;  %v2396_v62 = vsub.f32 %v5712_v52, %v6146_v30  ;;  %v2485_v47 = vadd.f32 1.0, %v6148_v57 }
 0x46c   : > { %v2614_v21 = vsub.f32 2.0, %v2582_v13  ;;  %v2678_v53 = vsub.f32 %v6106_v24, %v6082_v44  ;;  %v2294_v18 = vsub.f32 %v5769_v34, %v6065_v29  ;;  %v2460_v22 = vadd.f32 1.0, %v6146_v30 }
 0x46d   : > { %v2642_v3 = vmul.f32 %v3534_v19, %v2610_v1  ;;  %v6160_v10 = vand.u32 2147483647, %v2396_v62  ;;  %v2517_v59 = vmul.f32 %v2485_v47, %v2453_v38  ;;  %v2395_v36 = vsub.f32 %v5712_v52, %v6156_v35 }
 0x46e   : > { %v2646_v39 = vmul.f32 %v3536_v50, %v2614_v21  ;;  %v2218_v0 = vand.u32 2147483647, %v2186_v55  ;;  %v2326_v31 = vand.u32 2147483647, %v2294_v18  ;;  %v2187_v34 = vsub.f32 %v5739_v58, %v6043_v60 }
 0x46f   : > { %v2706_v25 = vmul.f32 %v2674_v5, %v2642_v3  ;;  %v2492_v14 = vadd.f32 1.0, %v6160_v10  ;;  %3541 = vrcp.f32 %v2517_v59  ;;  %v6168_v24 = vand.u32 2147483647, %v2395_v36 }
 0x470   : > { %v3538_v63 = vpop.eup %3537  ;;  %v2710_v44 = vmul.f32 %v2678_v53, %v2646_v39  ;;  %v6172_v2 = vadd.f32 %v2326_v31, %v2218_v0  ;;  %v2295_v41 = vsub.f32 %v5743_v28, %v6065_v29  ;;  %v2459_v54 = vadd.f32 1.0, %v6156_v35 }
 0x471   : > { %v3540_v43 = vpop.eup %3539  ;;  %2759 = vadd.xlane.f32.xlu0 %v2706_v25  ;;  %v2586_v6 = vmul.f32 %v3538_v63, %v2522_v32  ;;  %v2524_v16 = vmul.f32 %v2492_v14, %v2460_v22  ;;  %v2491_v20 = vadd.f32 1.0, %v6168_v24  ;;  %v2219_v37 = vand.u32 2147483647, %v2187_v34 }
 0x472   : > { %2767 = vadd.xlane.f32.xlu2 %v2710_v44  ;;  %v2585_v51 = vmul.f32 %v3540_v43, %v2521_v9  ;;  %v2391_v58 = vsub.f32 %v5712_v52, %v6172_v2  ;;  %v2327_v17 = vand.u32 2147483647, %v2295_v41  ;;  %v2682_v4 = vsub.f32 %v6124_v27, %v6112_v23 }
 0x473   : > { %v2618_v33 = vsub.f32 2.0, %v2586_v6  ;;  %3543 = vrcp.f32 %v2524_v16  ;;  %v2523_v12 = vmul.f32 %v2491_v20, %v2459_v54  ;;  %v2681_v56 = vsub.f32 %v6129_v49, %v6116_v15 }
 0x474   : > { %v2617_v60 = vsub.f32 2.0, %v2585_v51  ;;  %v2423_v28 = vand.u32 2147483647, %v2391_v58  ;;  %v2359_v19 = vadd.f32 %v2327_v17, %v2219_v37  ;;  %v2455_v11 = vadd.f32 1.0, %v6172_v2 }
 0x475   : > { %v2650_v42 = vmul.f32 %v3538_v63, %v2618_v33  ;;  %v3542_v29 = vpop.eup %3541  ;;  %3545 = vrcp.f32 %v2523_v12  ;;  %v2677_v15 = vsub.f32 %v6148_v57, %v6136_v45  ;;  %v6190_v49 = vsel %vm3203_vm1, %v5088_v46, %v5708_v61 }
 0x476   : > { %v2649_v40 = vmul.f32 %v3540_v43, %v2617_v60  ;;  %v2581_v32 = vmul.f32 %v3542_v29, %v2517_v59  ;;  %v2487_v50 = vadd.f32 1.0, %v2423_v28  ;;  %v2392_v9 = vsub.f32 %v5712_v52, %v2359_v19 }
 0x477   : > { %v2714_v5 = vmul.f32 %v2682_v4, %v2650_v42  ;;  %v2456_v52 = vadd.f32 1.0, %v2359_v19  ;;  %v2684_v3 = vsub.f32 %v6160_v10, %v6146_v30  ;;  %v2683_v46 = vsub.f32 %v6168_v24, %v6156_v35  ;;  %v2720_v10 = vpop.xlane.xlu1 %2719 }
 0x478   : > { %v2713_v48 = vmul.f32 %v2681_v56, %v2649_v40  ;;  %v2613_v13 = vsub.f32 2.0, %v2581_v32  ;;  %v2519_v23 = vmul.f32 %v2487_v50, %v2455_v11  ;;  %v2424_v8 = vand.u32 2147483647, %v2392_v9 }
 0x479   : > { %v3544_v26 = vpop.eup %3543  ;;  %2775 = vadd.xlane.f32.xlu1 %v2714_v5  ;;  %v6197_v36 = vadd.s32 4294967192, %v4420_v7  ;;  %v6200_v25 = vadd.s32 4294967200, %v4420_v7  ;;  %v2679_v31 = vsub.f32 %v2423_v28, %v6172_v2  ;;  %v6207_v54 = vadd.s32 4294967184, %v4420_v7 }
 0x47a   : > { %2773 = vadd.xlane.f32.xlu2 %v2713_v48  ;;  %v2588_v27 = vmul.f32 %v3544_v26, %v2524_v16  ;;  %v2645_v1 = vmul.f32 %v3542_v29, %v2613_v13  ;;  %3547 = vrcp.f32 %v2519_v23  ;;  %v2488_v21 = vadd.f32 1.0, %v2424_v8 }
 0x47b   : > { %v3546_v62 = vpop.eup %3545  ;;  %v3133_v35 = vperm.slane %v2720_v10, %v6197_v36  ;;  %v2680_v41 = vsub.f32 %v2424_v8, %v2359_v19  ;;  %v6210_v2 = vadd.s32 4294967176, %v4420_v7 }
 0x47c   : > { %v2620_v55 = vsub.f32 2.0, %v2588_v27  ;;  %v2709_v38 = vmul.f32 %v2677_v15, %v2645_v1  ;;  %v2587_v47 = vmul.f32 %v3546_v62, %v2523_v12  ;;  %v2520_v18 = vmul.f32 %v2488_v21, %v2456_v52 }
 0x47e   : > { %v2652_v53 = vmul.f32 %v3544_v26, %v2620_v55  ;;  %2765 = vadd.xlane.f32.xlu0 %v2709_v38  ;;  %v2619_v39 = vsub.f32 2.0, %v2587_v47  ;;  %3549 = vrcp.f32 %v2520_v18 }
 0x480   : > { %v2716_v59 = vmul.f32 %v2684_v3, %v2652_v53  ;;  %v3548_v45 = vpop.eup %3547  ;;  %v2651_v57 = vmul.f32 %v3546_v62, %v2619_v39 }
 0x481   : > { %v2583_v61 = vmul.f32 %v3548_v45, %v2519_v23 }
 0x482   : > { %2779 = vadd.xlane.f32.xlu1 %v2716_v59  ;;  %v2715_v22 = vmul.f32 %v2683_v46, %v2651_v57 }
 0x483   : > { %v2615_v30 = vsub.f32 2.0, %v2583_v61 }
 0x484   : > { %2777 = vadd.xlane.f32.xlu2 %v2715_v22  ;;  %v3550_v14 = vpop.eup %3549 }
 0x485   : > { %v2647_v0 = vmul.f32 %v3548_v45, %v2615_v30  ;;  %v2584_v44 = vmul.f32 %v3550_v14, %v2520_v18 }
 0x487   : > { %v2711_v34 = vmul.f32 %v2679_v31, %v2647_v0  ;;  %v2616_v43 = vsub.f32 2.0, %v2584_v44 }
 0x489   : > { %v2718_v63 = vpop.xlane.xlu2 %2717  ;;  %2769 = vadd.xlane.f32.xlu0 %v2711_v34  ;;  %v2648_v16 = vmul.f32 %v3550_v14, %v2616_v43 }
 0x48a   : > { %v3131_v24 = vperm.slane %v2718_v63, %v6200_v25  ;;  %v2726_v17 = vpop.xlane.xlu1 %2725 }
 0x48b   : > { %v2712_v51 = vmul.f32 %v2680_v41, %v2648_v16  ;;  %v3144_v29 = vperm.slane %v2726_v17, %v6200_v25 }
 0x48c   : > { %v3135_v6 = vsel %vm3134_vm2, %v3133_v35, %v3131_v24 }
 0x491   : > { %2771 = vadd.xlane.f32.xlu0 %v2712_v51  ;;  %v2724_v20 = vpop.xlane.xlu2 %2723 }
 0x492   : > { %v3141_v58 = vperm.slane %v2724_v20, %v6210_v2  ;;  %v2732_v4 = vpop.xlane.xlu1 %2731 }
 0x493   : > { %v3149_v56 = vperm.slane %v2732_v4, %v6210_v2 }
 0x497   : > { %v2722_v37 = vpop.xlane.xlu0 %2721 }
 0x498   : > { %v3137_v33 = vperm.slane %v2722_v37, %v6207_v54 }
 0x499   : > { %v2730_v42 = vpop.xlane.xlu2 %2729 }
 0x49a   : > { %v3139_v60 = vsel %vm3138_vm10, %v3137_v33, %v3135_v6  ;;  %v3147_v40 = vperm.slane %v2730_v42, %v6207_v54 }
 0x49b   : > { %v3143_v12 = vsel %vm3142_vm11, %v3141_v58, %v3139_v60 }
 0x49d   : > { %v2738_v48 = vpop.xlane.xlu1 %2737 }
 0x49e   : > { %v3154_v44 = vperm.slane %v2738_v48, %v6207_v54 }
 0x4a1   : > { %v2736_v50 = vpop.xlane.xlu2 %2735 }
 0x4a2   : > { %v3152_v57 = vperm.slane %v2736_v50, %v6197_v36 }
 0x4a5   : > { %v2728_v28 = vpop.xlane.xlu0 %2727 }
 0x4a6   : > { %v3145_v7 = vperm.slane %v2728_v28, %v6197_v36 }
 0x4a8   : > { %v3146_v19 = vsel %vm3134_vm2, %v3145_v7, %v3144_v29 }
 0x4a9   : > { %v3148_v5 = vsel %vm3138_vm10, %v3147_v40, %v3146_v19 }
 0x4aa   : > { %v3150_v32 = vsel %vm3142_vm11, %v3149_v56, %v3148_v5 }
 0x4ab   : > { %v3193_v11 = vsel %vm2877_vm3, %v3150_v32, %v3143_v12  ;;  %vm3205_vm3 = vcmask 785408  }
 0x4ae   : > { %v2744_v13 = vpop.xlane.xlu1 %2743 }
 0x4af   : > { %v2742_v26 = vpop.xlane.xlu2 %2741  ;;  %v3159_v10 = vperm.slane %v2744_v13, %v6197_v36 }
 0x4b0   : > { %v3158_v46 = vperm.slane %v2742_v26, %v6200_v25 }
 0x4b1   : > { %v2734_v9 = vpop.xlane.xlu0 %2733 }
 0x4b2   : > { %v3151_v39 = vperm.slane %v2734_v9, %v6200_v25  ;;  %v3160_v24 = vsel %vm3134_vm2, %v3159_v10, %v3158_v46 }
 0x4b4   : > { %v3153_v14 = vsel %vm3134_vm2, %v3152_v57, %v3151_v39 }
 0x4b5   : > { %v3155_v16 = vsel %vm3138_vm10, %v3154_v44, %v3153_v14 }
 0x4b9   : > { %v2750_v8 = vpop.xlane.xlu1 %2749 }
 0x4ba   : > { %v3165_v22 = vperm.slane %v2750_v8, %v6200_v25 }
 0x4bb   : > { %v2748_v27 = vpop.xlane.xlu2 %2747 }
 0x4bc   : > { %v3163_v37 = vperm.slane %v2748_v27, %v6210_v2 }
 0x4be   : > { %v2740_v23 = vpop.xlane.xlu0 %2739 }
 0x4bf   : > { %v3156_v0 = vperm.slane %v2740_v23, %v6210_v2 }
 0x4c1   : > { %v3157_v20 = vsel %vm3142_vm11, %v3156_v0, %v3155_v16 }
 0x4c2   : > { %v3194_v5 = vsel %vm2879_vm4, %v3157_v20, %v3193_v11 }
 0x4c7   : > { %v2758_v62 = vpop.xlane.xlu1 %2757 }
 0x4c8   : > { %v3172_v31 = vperm.slane %v2758_v62, %v6200_v25 }
 0x4c9   : > { %v2754_v15 = vpop.xlane.xlu2 %2753 }
 0x4ca   : > { %v3168_v34 = vperm.slane %v2754_v15, %v6207_v54 }
 0x4cc   : > { %v2746_v1 = vpop.xlane.xlu0 %2745 }
 0x4cd   : > { %v3161_v30 = vperm.slane %v2746_v1, %v6207_v54 }
 0x4cf   : > { %v2762_v21 = vpop.xlane.xlu1 %2761  ;;  %v3162_v41 = vsel %vm3138_vm10, %v3161_v30, %v3160_v24 }
 0x4d0   : > { %v3175_v51 = vperm.slane %v2762_v21, %v6207_v54  ;;  %v3164_v4 = vsel %vm3142_vm11, %v3163_v37, %v3162_v41 }
 0x4d1   : > { %v3195_v48 = vsel %vm2881_vm5, %v3164_v4, %v3194_v5 }
 0x4d5   : > { %v2756_v52 = vpop.xlane.xlu2 %2755 }
 0x4d6   : > { %v3170_v60 = vperm.slane %v2756_v52, %v6210_v2 }
 0x4d8   : > { %v2752_v55 = vpop.xlane.xlu0 %2751 }
 0x4d9   : > { %v3166_v59 = vperm.slane %v2752_v55, %v6197_v36 }
 0x4db   : > { %v2764_v53 = vpop.xlane.xlu1 %2763  ;;  %v3167_v35 = vsel %vm3134_vm2, %v3166_v59, %v3165_v22 }
 0x4dc   : > { %v3169_v33 = vsel %vm3138_vm10, %v3168_v34, %v3167_v35  ;;  %v3177_v28 = vperm.slane %v2764_v53, %v6210_v2 }
 0x4dd   : > { %v3171_v40 = vsel %vm3142_vm11, %v3170_v60, %v3169_v33 }
 0x4de   : > { %v3196_v13 = vsel %vm2883_vm6, %v3171_v40, %v3195_v48 }
 0x4e4   : > { %v2760_v38 = vpop.xlane.xlu0 %2759 }
 0x4e5   : > { %v2768_v47 = vpop.xlane.xlu2 %2767  ;;  %v3173_v61 = vperm.slane %v2760_v38, %v6197_v36 }
 0x4e6   : > { %v3180_v56 = vperm.slane %v2768_v47, %v6197_v36 }
 0x4e7   : > { %v3174_v43 = vsel %vm3134_vm2, %v3173_v61, %v3172_v31 }
 0x4e8   : > { %v3176_v12 = vsel %vm3138_vm10, %v3175_v51, %v3174_v43 }
 0x4e9   : > { %v3178_v32 = vsel %vm3142_vm11, %v3177_v28, %v3176_v12 }
 0x4ea   : > { %v3197_v27 = vsel %vm2885_vm7, %v3178_v32, %v3196_v13 }
 0x4ec   : > { %v2776_v45 = vpop.xlane.xlu1 %2775 }
 0x4ed   : > { %v2774_v18 = vpop.xlane.xlu2 %2773  ;;  %v3187_v29 = vperm.slane %v2776_v45, %v6197_v36 }
 0x4ee   : > { %v3186_v58 = vperm.slane %v2774_v18, %v6200_v25 }
 0x4f1   : > { %v2766_v3 = vpop.xlane.xlu0 %2765 }
 0x4f2   : > { %v3179_v17 = vperm.slane %v2766_v3, %v6200_v25  ;;  %v3188_v25 = vsel %vm3134_vm2, %v3187_v29, %v3186_v58 }
 0x4f4   : > { %v3181_v9 = vsel %vm3134_vm2, %v3180_v56, %v3179_v17 }
 0x4f5   : > { %v2780_v19 = vpop.xlane.xlu1 %2779 }
 0x4f6   : > { %v3191_v36 = vperm.slane %v2780_v19, %v6210_v2 }
 0x4f7   : > { %v2778_v6 = vpop.xlane.xlu2 %2777 }
 0x4f8   : > { %v3189_v42 = vperm.slane %v2778_v6, %v6207_v54 }
 0x4fa   : > { %v3190_v26 = vsel %vm3138_vm10, %v3189_v42, %v3188_v25 }
 0x4fb   : > { %v3192_v8 = vsel %vm3142_vm11, %v3191_v36, %v3190_v26 }
 0x4fc   : > { %v2770_v63 = vpop.xlane.xlu0 %2769 }
 0x4fd   : > { %v3182_v7 = vperm.slane %v2770_v63, %v6207_v54 }
 0x4ff   : > { %v3183_v11 = vsel %vm3138_vm10, %v3182_v7, %v3181_v9 }
 0x504   : > { %v2772_v50 = vpop.xlane.xlu0 %2771 }
 0x505   : > { %v3184_v54 = vperm.slane %v2772_v50, %v6210_v2 }
 0x507   : > { %v3185_v23 = vsel %vm3142_vm11, %v3184_v54, %v3183_v11  ;;  %102 = sbr.rel (!%p100_p0) target bundleno = 39 (0x27), region = 90 }
 0x508   : > { %v3198_v1 = vsel %vm2887_vm8, %v3185_v23, %v3197_v27 }
 0x509   : > { %v3199_v15 = vsel %vm2889_vm9, %v3192_v8, %v3198_v1 }
 0x50a   : > { %v3206_v62 = vsel %vm3205_vm3, %v6190_v49, %v3199_v15 }
 0x50b   : > { %3208 = vst [vmem:[%s3207_s25] sm:$0xff] %v3206_v62 }
 0x50c   :  { %3221 = dma.vmem_to_hbm [thread:$0]  %s3214_s13, 256, %s3216_s29, [#allocation3], %s3602_s15, %s3602_s15, %s3603_s16  }
 0x50d   :  { %3593 = dma.done.wait [#allocation3], 256  }
 0x50e   :  { %3594 = vsyncadd [#allocation3], 4294967040 }
 0x50f   :  { %3226 = vsyncpa [#allocation3], 1 }
 0x510   :  { %3227 = vsyncpa [#allocation4], 1 }

</bundles_post_ra>
